<compile_context>
chip_gen: v7x
topology: tpu7x:2x2x1
jax: 0.10.0
libtpu: 0.0.40
codegen_flags: <defaults>
</compile_context>

<pallas_src>
import functools

import jax
import jax.numpy as jnp
import numpy as np
from jax import lax
from jax.experimental import pallas as pl
from jax.experimental.pallas import tpu as pltpu

START_TAG = -2
STOP_TAG = -1


def crf_viterbi_kernel(feats_ref, trans_to_ref, stop_col_ref, len_ref, out_ref, bp_ref,
                       *, unroll):
    # feats_ref   : (S, T, TB) f32   time-major, batch on lanes
    # trans_to_ref: (T, T)     f32   trans_to[j, i] = transitions[i, j]
    # stop_col_ref: (T, 1)     f32   transitions[:, STOP_TAG]
    # len_ref     : (1, TB)    i32
    # out_ref     : (S, 1, TB) i32
    # bp_ref      : (S, T, TB) i32   back-pointer scratch
    S, T, TB = feats_ref.shape

    trans_to = trans_to_ref[...]                 # (T_to, T_from)
    stop_col = stop_col_ref[...]                 # (T_from, 1)
    lengths = len_ref[...]                       # (1, TB)
    len_m1 = lengths - 1

    # ---- hoisted loop invariants (JAX does not CSE broadcast_in_dim) ----
    trans_cols = [trans_to[:, i:i + 1] for i in range(T)]   # per from-tag: (T_to, 1)
    zero_idx = jnp.zeros((T, TB), jnp.int32)

    # t = 0 : partition[j, b] = feats[0, j, b] + transitions[START_TAG, j]
    partition0 = feats_ref[0] + trans_cols[T - 2]           # (T, TB)

    # ---- forward max-product recursion (fused max/argmax over from-tags, pure VPU) ----
    def fwd_body(t, carry):
        partition, last_part = carry
        feat_t = feats_ref[t]                               # (T_to, TB)
        # cand_i[j, b] = (feats[t, j, b] + trans[i, j]) + partition[i, b]
        best = (feat_t + trans_cols[0]) + partition[0:1, :]
        best_idx = zero_idx
        for i in range(1, T):
            cand = (feat_t + trans_cols[i]) + partition[i:i + 1, :]
            take = cand > best                              # strict > => first-occurrence argmax
            best = jnp.where(take, cand, best)
            best_idx = jnp.where(take, jnp.int32(i), best_idx)
        valid = lengths > t                                 # mask derived from lengths (prefix mask)
        bp_ref[t - 1] = jnp.where(valid, best_idx, 0)       # masked_fill_(~mask, 0)
        # remember partition at the last valid step of each sequence
        last_part = jnp.where(len_m1 == t, best, last_part)
        return best, last_part

    _, last_part = lax.fori_loop(1, S, fwd_body, (partition0, partition0), unroll=unroll)

    # ---- transition to STOP_TAG and initial back-pointer (fused max/argmax) ----
    stop_scores = last_part + stop_col                      # (T_from, TB)
    best = stop_scores[0:1, :]
    pointer0 = jnp.zeros((1, TB), jnp.int32)
    for i in range(1, T):
        cand = stop_scores[i:i + 1, :]
        take = cand > best
        best = jnp.where(take, cand, best)
        pointer0 = jnp.where(take, jnp.int32(i), pointer0)
    out_ref[S - 1] = pointer0                               # lane-dense (1, TB) row store

    # ---- back-trace ----
    def gather_rows(bp_row, pointer):
        # g[b] = bp_row[pointer[b], b]   (per-lane select over the small T axis, pure VPU)
        g = jnp.where(pointer == 0, bp_row[0:1, :], 0)
        for i in range(1, T):
            g = g + jnp.where(pointer == i, bp_row[i:i + 1, :], 0)
        return g

    def bwd_body(k, pointer):
        idx = S - 2 - k
        bp_row = bp_ref[idx]                                # (T, TB)
        g = gather_rows(bp_row, pointer)                    # (1, TB)
        # emulate the scatter of `insert_last` at position length-1
        new_pointer = jnp.where(len_m1 == idx, pointer0, g).astype(jnp.int32)
        out_ref[idx] = new_pointer
        return new_pointer

    lax.fori_loop(0, S - 1, bwd_body, pointer0, unroll=unroll)


def crf_forward(feats, mask, transitions):
    """CRF.forward: returns (path_score=None, decode_idx (B, S) int32)."""
    B, S, T = feats.shape
    assert transitions.shape == (T, T)

    mask_i = mask.astype(jnp.int32)
    lengths = jnp.sum(mask_i, axis=1).astype(jnp.int32)             # (B,)

    # batch-on-lanes, time-major layout
    feats_tm = jnp.transpose(feats.astype(jnp.float32), (1, 2, 0))  # (S, T, B)

    # tile the batch (lane) axis; pad to a multiple of 128 only when B > 128
    if B <= 128:
        TB, Bp = B, B
    else:
        TB = 128
        Bp = ((B + TB - 1) // TB) * TB
    if Bp != B:
        feats_tm = jnp.pad(feats_tm, ((0, 0), (0, 0), (0, Bp - B)))
        lengths = jnp.pad(lengths, (0, Bp - B))                     # padded lanes: length 0
    lengths_row = lengths.reshape(1, Bp)

    trans_f32 = transitions.astype(jnp.float32)
    trans_to = trans_f32.T                                          # (T_to, T_from)
    stop_col = trans_f32[:, T - 1:T]                                # (T, 1)  STOP_TAG column

    grid = (Bp // TB,)
    unroll = max(1, min(8, S - 1))

    # VMEM budget: double-buffered feats/out blocks + int32 back-pointer scratch (+slack)
    vmem_need = (2 * S * T * TB * 4 + 2 * S * TB * 4 + S * T * TB * 4
                 + 4 * T * T * 4 + 4 * TB * 4 + (2 << 20))
    vmem_limit = int(min(max(vmem_need, 16 << 20), 64 << 20))       # safe on v5e/v6e/v7x

    out = pl.pallas_call(
        functools.partial(crf_viterbi_kernel, unroll=unroll),
        out_shape=jax.ShapeDtypeStruct((S, 1, Bp), jnp.int32),
        grid_spec=pltpu.PrefetchScalarGridSpec(
            num_scalar_prefetch=0,
            grid=grid,
            in_specs=[
                pl.BlockSpec((S, T, TB), lambda i: (0, 0, i)),
                pl.BlockSpec((T, T), lambda i: (0, 0)),
                pl.BlockSpec((T, 1), lambda i: (0, 0)),
                pl.BlockSpec((1, TB), lambda i: (0, i)),
            ],
            out_specs=pl.BlockSpec((S, 1, TB), lambda i: (0, 0, i)),
            scratch_shapes=[pltpu.VMEM((S, T, TB), jnp.int32)],     # back-pointer table
        ),
        compiler_params=pltpu.CompilerParams(
            dimension_semantics=("parallel",),                      # megacore sharding on v7x
            vmem_limit_bytes=vmem_limit,
        ),
    )(feats_tm, trans_to, stop_col, lengths_row)

    decode_idx = jnp.transpose(out[:, 0, :B], (1, 0))               # (B, S)
    path_score = None  # matches the torch module (viterbi_decode returns None score)
    return path_score, decode_idx


# ---------------- pure-JAX reference (direct translation of the torch code) ----------------
def viterbi_ref(feats, mask, transitions):
    B, S, T = feats.shape
    mask = mask.astype(jnp.int32)
    lengths = jnp.sum(mask, axis=1)
    scores = feats[:, :, None, :] + transitions[None, None, :, :]   # (B, S, T, T)
    scores = jnp.transpose(scores, (1, 0, 2, 3))                    # (S, B, T, T)
    partition = scores[0][:, T - 2, :]
    part_hist = [partition]
    bps = []
    for t in range(1, S):
        cur = scores[t] + partition[:, :, None]
        partition = jnp.max(cur, axis=1)
        bp = jnp.argmax(cur, axis=1).astype(jnp.int32)
        bp = jnp.where(mask[:, t:t + 1] > 0, bp, 0)
        bps.append(bp)
        part_hist.append(partition)
    part_hist = jnp.stack(part_hist, axis=1)                        # (B, S, T)
    last_part = jnp.take_along_axis(part_hist, (lengths - 1)[:, None, None], axis=1)[:, 0, :]
    last_values = last_part[:, :, None] + transitions[None, :, :]
    last_bp = jnp.argmax(last_values, axis=1).astype(jnp.int32)
    pointer = last_bp[:, T - 1]
    bps.append(jnp.zeros((B, T), jnp.int32))
    back_points = jnp.stack(bps, axis=0)                            # (S, B, T)
    bp_bt = jnp.transpose(back_points, (1, 0, 2))
    pos = (lengths - 1)[:, None, None]
    bp_bt = jnp.where(jnp.arange(S)[None, :, None] == pos, pointer[:, None, None], bp_bt)
    back_points = jnp.transpose(bp_bt, (1, 0, 2))
    decode = [None] * S
    decode[S - 1] = pointer
    ptr = pointer
    for idx in range(S - 2, -1, -1):
        ptr = jnp.take_along_axis(back_points[idx], ptr[:, None], axis=1)[:, 0]
        decode[idx] = ptr
    return jnp.stack(decode, axis=1).astype(jnp.int32)


if __name__ == "__main__":
    B, S = 2, 8
    tagset_size = 6
    T = tagset_size + 2

    key = jax.random.PRNGKey(0)
    kf, kt = jax.random.split(key)
    feats = jax.random.normal(kf, (B, S, T), dtype=jnp.float32)

    # transitions per CRF.__init__ shape (T, T); small deterministic perturbation to
    # emulate trained weights, then the START/STOP constraints from __init__.
    transitions = 0.1 * jax.random.normal(kt, (T, T), dtype=jnp.float32)
    transitions = transitions.at[:, T + START_TAG].set(-1000.0)     # [:, START_TAG]
    transitions = transitions.at[T + STOP_TAG, :].set(-1000.0)      # [STOP_TAG, :]

    lengths = jnp.array([S, 5], dtype=jnp.int32)                    # variable-length batch
    mask = (jnp.arange(S)[None, :] < lengths[:, None]).astype(jnp.int32)

    path_score, decode = crf_forward(feats, mask, transitions)
    decode = jax.block_until_ready(decode)

    ref = viterbi_ref(feats, mask, transitions)
    assert decode.shape == (B, S)
    assert np.array_equal(np.asarray(decode), np.asarray(ref)), (decode, ref)
    print("KERNEL_OK")
</pallas_src>

<mosaic_0001>
module attributes {stable_mosaic.version = 11 : i64} {
  func.func @crf_viterbi_kernel(%arg0: i32, %arg1: memref<8x8x2xf32, #tpu.memory_space<vmem>>, %arg2: memref<8x8xf32, #tpu.memory_space<vmem>>, %arg3: memref<8x1xf32, #tpu.memory_space<vmem>>, %arg4: memref<1x2xi32, #tpu.memory_space<vmem>>, %arg5: memref<8x1x2xi32, #tpu.memory_space<vmem>>, %arg6: memref<8x8x2xi32, #tpu.memory_space<vmem>>) attributes {dimension_semantics = [#tpu.dimension_semantics<parallel>], iteration_bounds = array<i64: 1>, scalar_prefetch = 0 : i64, scratch_operands = 1 : i64, tpu.core_type = #tpu.core_type<tc>, window_params = [{transform_indices = @transform_0, window_bounds = array<i64: 8, 8, 2>}, {pipeline_mode = #tpu.pipeline_mode<synchronous>, transform_indices = @transform_1, window_bounds = array<i64: 8, 8>}, {pipeline_mode = #tpu.pipeline_mode<synchronous>, transform_indices = @transform_2, window_bounds = array<i64: 8, 1>}, {transform_indices = @transform_3, window_bounds = array<i64: 1, 2>}, {transform_indices = @transform_4, window_bounds = array<i64: 8, 1, 2>}]} {
    %c0 = arith.constant 0 : index
    %c0_0 = arith.constant 0 : index
    %0 = vector.load %arg2[%c0, %c0_0] : memref<8x8xf32, #tpu.memory_space<vmem>>, vector<8x8xf32>
    %c0_1 = arith.constant 0 : index
    %c0_2 = arith.constant 0 : index
    %1 = vector.load %arg3[%c0_1, %c0_2] : memref<8x1xf32, #tpu.memory_space<vmem>>, vector<8x1xf32>
    %c0_3 = arith.constant 0 : index
    %c0_4 = arith.constant 0 : index
    %2 = vector.load %arg4[%c0_3, %c0_4] : memref<1x2xi32, #tpu.memory_space<vmem>>, vector<1x2xi32>
    %c1_i32 = arith.constant 1 : i32
    %3 = vector.broadcast %c1_i32 : i32 to vector<1x2xi32>
    %4 = arith.subi %2, %3 : vector<1x2xi32>
    %5 = vector.extract_strided_slice %0 {offsets = [0, 0], sizes = [8, 1], strides = [1, 1]} : vector<8x8xf32> to vector<8x1xf32>
    %6 = vector.extract_strided_slice %0 {offsets = [0, 1], sizes = [8, 1], strides = [1, 1]} : vector<8x8xf32> to vector<8x1xf32>
    %7 = vector.extract_strided_slice %0 {offsets = [0, 2], sizes = [8, 1], strides = [1, 1]} : vector<8x8xf32> to vector<8x1xf32>
    %8 = vector.extract_strided_slice %0 {offsets = [0, 3], sizes = [8, 1], strides = [1, 1]} : vector<8x8xf32> to vector<8x1xf32>
    %9 = vector.extract_strided_slice %0 {offsets = [0, 4], sizes = [8, 1], strides = [1, 1]} : vector<8x8xf32> to vector<8x1xf32>
    %10 = vector.extract_strided_slice %0 {offsets = [0, 5], sizes = [8, 1], strides = [1, 1]} : vector<8x8xf32> to vector<8x1xf32>
    %11 = vector.extract_strided_slice %0 {offsets = [0, 6], sizes = [8, 1], strides = [1, 1]} : vector<8x8xf32> to vector<8x1xf32>
    %12 = vector.extract_strided_slice %0 {offsets = [0, 7], sizes = [8, 1], strides = [1, 1]} : vector<8x8xf32> to vector<8x1xf32>
    %c0_i32 = arith.constant 0 : i32
    %13 = vector.broadcast %c0_i32 : i32 to vector<8x2xi32>
    %c0_5 = arith.constant 0 : index
    %c0_6 = arith.constant 0 : index
    %c0_7 = arith.constant 0 : index
    %14 = vector.load %arg1[%c0_5, %c0_6, %c0_7] : memref<8x8x2xf32, #tpu.memory_space<vmem>>, vector<1x8x2xf32>
    %15 = vector.shape_cast %14 : vector<1x8x2xf32> to vector<8x2xf32>
    %16 = vector.broadcast %11 : vector<8x1xf32> to vector<8x2xf32>
    %17 = arith.addf %15, %16 : vector<8x2xf32>
    %c1_i32_8 = arith.constant 1 : i32
    %18 = arith.index_cast %c1_i32_8 : i32 to index
    %c0_9 = arith.constant 0 : index
    %c0_10 = arith.constant 0 : index
    %19 = vector.load %arg1[%18, %c0_9, %c0_10] : memref<8x8x2xf32, #tpu.memory_space<vmem>>, vector<1x8x2xf32>
    %20 = vector.shape_cast %19 : vector<1x8x2xf32> to vector<8x2xf32>
    %21 = vector.broadcast %5 : vector<8x1xf32> to vector<8x2xf32>
    %22 = arith.addf %20, %21 : vector<8x2xf32>
    %23 = vector.extract_strided_slice %17 {offsets = [0, 0], sizes = [1, 2], strides = [1, 1]} : vector<8x2xf32> to vector<1x2xf32>
    %24 = vector.broadcast %23 : vector<1x2xf32> to vector<8x2xf32>
    %25 = arith.addf %22, %24 : vector<8x2xf32>
    %26 = vector.broadcast %6 : vector<8x1xf32> to vector<8x2xf32>
    %27 = arith.addf %20, %26 : vector<8x2xf32>
    %28 = vector.extract_strided_slice %17 {offsets = [1, 0], sizes = [1, 2], strides = [1, 1]} : vector<8x2xf32> to vector<1x2xf32>
    %29 = vector.broadcast %28 : vector<1x2xf32> to vector<8x2xf32>
    %30 = arith.addf %27, %29 : vector<8x2xf32>
    %31 = arith.cmpf ogt, %30, %25 : vector<8x2xf32>
    %32 = arith.select %31, %30, %25 : vector<8x2xi1>, vector<8x2xf32>
    %c1_i32_11 = arith.constant 1 : i32
    %33 = vector.broadcast %c1_i32_11 : i32 to vector<8x2xi32>
    %34 = arith.select %31, %33, %13 : vector<8x2xi1>, vector<8x2xi32>
    %35 = vector.broadcast %7 : vector<8x1xf32> to vector<8x2xf32>
    %36 = arith.addf %20, %35 : vector<8x2xf32>
    %37 = vector.extract_strided_slice %17 {offsets = [2, 0], sizes = [1, 2], strides = [1, 1]} : vector<8x2xf32> to vector<1x2xf32>
    %38 = vector.broadcast %37 : vector<1x2xf32> to vector<8x2xf32>
    %39 = arith.addf %36, %38 : vector<8x2xf32>
    %40 = arith.cmpf ogt, %39, %32 : vector<8x2xf32>
    %41 = arith.select %40, %39, %32 : vector<8x2xi1>, vector<8x2xf32>
    %c2_i32 = arith.constant 2 : i32
    %42 = vector.broadcast %c2_i32 : i32 to vector<8x2xi32>
    %43 = arith.select %40, %42, %34 : vector<8x2xi1>, vector<8x2xi32>
    %44 = vector.broadcast %8 : vector<8x1xf32> to vector<8x2xf32>
    %45 = arith.addf %20, %44 : vector<8x2xf32>
    %46 = vector.extract_strided_slice %17 {offsets = [3, 0], sizes = [1, 2], strides = [1, 1]} : vector<8x2xf32> to vector<1x2xf32>
    %47 = vector.broadcast %46 : vector<1x2xf32> to vector<8x2xf32>
    %48 = arith.addf %45, %47 : vector<8x2xf32>
    %49 = arith.cmpf ogt, %48, %41 : vector<8x2xf32>
    %50 = arith.select %49, %48, %41 : vector<8x2xi1>, vector<8x2xf32>
    %c3_i32 = arith.constant 3 : i32
    %51 = vector.broadcast %c3_i32 : i32 to vector<8x2xi32>
    %52 = arith.select %49, %51, %43 : vector<8x2xi1>, vector<8x2xi32>
    %53 = vector.broadcast %9 : vector<8x1xf32> to vector<8x2xf32>
    %54 = arith.addf %20, %53 : vector<8x2xf32>
    %55 = vector.extract_strided_slice %17 {offsets = [4, 0], sizes = [1, 2], strides = [1, 1]} : vector<8x2xf32> to vector<1x2xf32>
    %56 = vector.broadcast %55 : vector<1x2xf32> to vector<8x2xf32>
    %57 = arith.addf %54, %56 : vector<8x2xf32>
    %58 = arith.cmpf ogt, %57, %50 : vector<8x2xf32>
    %59 = arith.select %58, %57, %50 : vector<8x2xi1>, vector<8x2xf32>
    %c4_i32 = arith.constant 4 : i32
    %60 = vector.broadcast %c4_i32 : i32 to vector<8x2xi32>
    %61 = arith.select %58, %60, %52 : vector<8x2xi1>, vector<8x2xi32>
    %62 = vector.broadcast %10 : vector<8x1xf32> to vector<8x2xf32>
    %63 = arith.addf %20, %62 : vector<8x2xf32>
    %64 = vector.extract_strided_slice %17 {offsets = [5, 0], sizes = [1, 2], strides = [1, 1]} : vector<8x2xf32> to vector<1x2xf32>
    %65 = vector.broadcast %64 : vector<1x2xf32> to vector<8x2xf32>
    %66 = arith.addf %63, %65 : vector<8x2xf32>
    %67 = arith.cmpf ogt, %66, %59 : vector<8x2xf32>
    %68 = arith.select %67, %66, %59 : vector<8x2xi1>, vector<8x2xf32>
    %c5_i32 = arith.constant 5 : i32
    %69 = vector.broadcast %c5_i32 : i32 to vector<8x2xi32>
    %70 = arith.select %67, %69, %61 : vector<8x2xi1>, vector<8x2xi32>
    %71 = vector.broadcast %11 : vector<8x1xf32> to vector<8x2xf32>
    %72 = arith.addf %20, %71 : vector<8x2xf32>
    %73 = vector.extract_strided_slice %17 {offsets = [6, 0], sizes = [1, 2], strides = [1, 1]} : vector<8x2xf32> to vector<1x2xf32>
    %74 = vector.broadcast %73 : vector<1x2xf32> to vector<8x2xf32>
    %75 = arith.addf %72, %74 : vector<8x2xf32>
    %76 = arith.cmpf ogt, %75, %68 : vector<8x2xf32>
    %77 = arith.select %76, %75, %68 : vector<8x2xi1>, vector<8x2xf32>
    %c6_i32 = arith.constant 6 : i32
    %78 = vector.broadcast %c6_i32 : i32 to vector<8x2xi32>
    %79 = arith.select %76, %78, %70 : vector<8x2xi1>, vector<8x2xi32>
    %80 = vector.broadcast %12 : vector<8x1xf32> to vector<8x2xf32>
    %81 = arith.addf %20, %80 : vector<8x2xf32>
    %82 = vector.extract_strided_slice %17 {offsets = [7, 0], sizes = [1, 2], strides = [1, 1]} : vector<8x2xf32> to vector<1x2xf32>
    %83 = vector.broadcast %82 : vector<1x2xf32> to vector<8x2xf32>
    %84 = arith.addf %81, %83 : vector<8x2xf32>
    %85 = arith.cmpf ogt, %84, %77 : vector<8x2xf32>
    %86 = arith.select %85, %84, %77 : vector<8x2xi1>, vector<8x2xf32>
    %c7_i32 = arith.constant 7 : i32
    %87 = vector.broadcast %c7_i32 : i32 to vector<8x2xi32>
    %88 = arith.select %85, %87, %79 : vector<8x2xi1>, vector<8x2xi32>
    %89 = vector.broadcast %c1_i32_8 : i32 to vector<1x2xi32>
    %90 = arith.cmpi sgt, %2, %89 : vector<1x2xi32>
    %c0_i32_12 = arith.constant 0 : i32
    %91 = vector.shape_cast %90 : vector<1x2xi1> to vector<1x2xi1>
    %92 = vector.broadcast %91 : vector<1x2xi1> to vector<8x2xi1>
    %93 = vector.broadcast %c0_i32_12 : i32 to vector<8x2xi32>
    %94 = arith.select %92, %88, %93 : vector<8x2xi1>, vector<8x2xi32>
    %c1_i32_13 = arith.constant 1 : i32
    %95 = arith.subi %c1_i32_8, %c1_i32_13 : i32
    %96 = arith.index_cast %95 : i32 to index
    %c0_14 = arith.constant 0 : index
    %c0_15 = arith.constant 0 : index
    %97 = vector.load %arg6[%96, %c0_14, %c0_15] : memref<8x8x2xi32, #tpu.memory_space<vmem>>, vector<1x8x2xi32>
    %98 = vector.shape_cast %97 : vector<1x8x2xi32> to vector<8x2xi32>
    %99 = vector.shape_cast %94 : vector<8x2xi32> to vector<1x8x2xi32>
    tpu.vector_store %arg6[%96, %c0_14, %c0_15], %99 {strides = array<i32>} : memref<8x8x2xi32, #tpu.memory_space<vmem>>, vector<1x8x2xi32>,
    %100 = vector.broadcast %c1_i32_8 : i32 to vector<1x2xi32>
    %101 = arith.cmpi eq, %4, %100 : vector<1x2xi32>
    %102 = vector.shape_cast %101 : vector<1x2xi1> to vector<1x2xi1>
    %103 = vector.broadcast %102 : vector<1x2xi1> to vector<8x2xi1>
    %104 = arith.select %103, %86, %17 : vector<8x2xi1>, vector<8x2xf32>
    %c2_i32_16 = arith.constant 2 : i32
    %105 = arith.index_cast %c2_i32_16 : i32 to index
    %c0_17 = arith.constant 0 : index
    %c0_18 = arith.constant 0 : index
    %106 = vector.load %arg1[%105, %c0_17, %c0_18] : memref<8x8x2xf32, #tpu.memory_space<vmem>>, vector<1x8x2xf32>
    %107 = vector.shape_cast %106 : vector<1x8x2xf32> to vector<8x2xf32>
    %108 = vector.broadcast %5 : vector<8x1xf32> to vector<8x2xf32>
    %109 = arith.addf %107, %108 : vector<8x2xf32>
    %110 = vector.extract_strided_slice %86 {offsets = [0, 0], sizes = [1, 2], strides = [1, 1]} : vector<8x2xf32> to vector<1x2xf32>
    %111 = vector.broadcast %110 : vector<1x2xf32> to vector<8x2xf32>
    %112 = arith.addf %109, %111 : vector<8x2xf32>
    %113 = vector.broadcast %6 : vector<8x1xf32> to vector<8x2xf32>
    %114 = arith.addf %107, %113 : vector<8x2xf32>
    %115 = vector.extract_strided_slice %86 {offsets = [1, 0], sizes = [1, 2], strides = [1, 1]} : vector<8x2xf32> to vector<1x2xf32>
    %116 = vector.broadcast %115 : vector<1x2xf32> to vector<8x2xf32>
    %117 = arith.addf %114, %116 : vector<8x2xf32>
    %118 = arith.cmpf ogt, %117, %112 : vector<8x2xf32>
    %119 = arith.select %118, %117, %112 : vector<8x2xi1>, vector<8x2xf32>
    %c1_i32_19 = arith.constant 1 : i32
    %120 = vector.broadcast %c1_i32_19 : i32 to vector<8x2xi32>
    %121 = arith.select %118, %120, %13 : vector<8x2xi1>, vector<8x2xi32>
    %122 = vector.broadcast %7 : vector<8x1xf32> to vector<8x2xf32>
    %123 = arith.addf %107, %122 : vector<8x2xf32>
    %124 = vector.extract_strided_slice %86 {offsets = [2, 0], sizes = [1, 2], strides = [1, 1]} : vector<8x2xf32> to vector<1x2xf32>
    %125 = vector.broadcast %124 : vector<1x2xf32> to vector<8x2xf32>
    %126 = arith.addf %123, %125 : vector<8x2xf32>
    %127 = arith.cmpf ogt, %126, %119 : vector<8x2xf32>
    %128 = arith.select %127, %126, %119 : vector<8x2xi1>, vector<8x2xf32>
    %c2_i32_20 = arith.constant 2 : i32
    %129 = vector.broadcast %c2_i32_20 : i32 to vector<8x2xi32>
    %130 = arith.select %127, %129, %121 : vector<8x2xi1>, vector<8x2xi32>
    %131 = vector.broadcast %8 : vector<8x1xf32> to vector<8x2xf32>
    %132 = arith.addf %107, %131 : vector<8x2xf32>
    %133 = vector.extract_strided_slice %86 {offsets = [3, 0], sizes = [1, 2], strides = [1, 1]} : vector<8x2xf32> to vector<1x2xf32>
    %134 = vector.broadcast %133 : vector<1x2xf32> to vector<8x2xf32>
    %135 = arith.addf %132, %134 : vector<8x2xf32>
    %136 = arith.cmpf ogt, %135, %128 : vector<8x2xf32>
    %137 = arith.select %136, %135, %128 : vector<8x2xi1>, vector<8x2xf32>
    %c3_i32_21 = arith.constant 3 : i32
    %138 = vector.broadcast %c3_i32_21 : i32 to vector<8x2xi32>
    %139 = arith.select %136, %138, %130 : vector<8x2xi1>, vector<8x2xi32>
    %140 = vector.broadcast %9 : vector<8x1xf32> to vector<8x2xf32>
    %141 = arith.addf %107, %140 : vector<8x2xf32>
    %142 = vector.extract_strided_slice %86 {offsets = [4, 0], sizes = [1, 2], strides = [1, 1]} : vector<8x2xf32> to vector<1x2xf32>
    %143 = vector.broadcast %142 : vector<1x2xf32> to vector<8x2xf32>
    %144 = arith.addf %141, %143 : vector<8x2xf32>
    %145 = arith.cmpf ogt, %144, %137 : vector<8x2xf32>
    %146 = arith.select %145, %144, %137 : vector<8x2xi1>, vector<8x2xf32>
    %c4_i32_22 = arith.constant 4 : i32
    %147 = vector.broadcast %c4_i32_22 : i32 to vector<8x2xi32>
    %148 = arith.select %145, %147, %139 : vector<8x2xi1>, vector<8x2xi32>
    %149 = vector.broadcast %10 : vector<8x1xf32> to vector<8x2xf32>
    %150 = arith.addf %107, %149 : vector<8x2xf32>
    %151 = vector.extract_strided_slice %86 {offsets = [5, 0], sizes = [1, 2], strides = [1, 1]} : vector<8x2xf32> to vector<1x2xf32>
    %152 = vector.broadcast %151 : vector<1x2xf32> to vector<8x2xf32>
    %153 = arith.addf %150, %152 : vector<8x2xf32>
    %154 = arith.cmpf ogt, %153, %146 : vector<8x2xf32>
    %155 = arith.select %154, %153, %146 : vector<8x2xi1>, vector<8x2xf32>
    %c5_i32_23 = arith.constant 5 : i32
    %156 = vector.broadcast %c5_i32_23 : i32 to vector<8x2xi32>
    %157 = arith.select %154, %156, %148 : vector<8x2xi1>, vector<8x2xi32>
    %158 = vector.broadcast %11 : vector<8x1xf32> to vector<8x2xf32>
    %159 = arith.addf %107, %158 : vector<8x2xf32>
    %160 = vector.extract_strided_slice %86 {offsets = [6, 0], sizes = [1, 2], strides = [1, 1]} : vector<8x2xf32> to vector<1x2xf32>
    %161 = vector.broadcast %160 : vector<1x2xf32> to vector<8x2xf32>
    %162 = arith.addf %159, %161 : vector<8x2xf32>
    %163 = arith.cmpf ogt, %162, %155 : vector<8x2xf32>
    %164 = arith.select %163, %162, %155 : vector<8x2xi1>, vector<8x2xf32>
    %c6_i32_24 = arith.constant 6 : i32
    %165 = vector.broadcast %c6_i32_24 : i32 to vector<8x2xi32>
    %166 = arith.select %163, %165, %157 : vector<8x2xi1>, vector<8x2xi32>
    %167 = vector.broadcast %12 : vector<8x1xf32> to vector<8x2xf32>
    %168 = arith.addf %107, %167 : vector<8x2xf32>
    %169 = vector.extract_strided_slice %86 {offsets = [7, 0], sizes = [1, 2], strides = [1, 1]} : vector<8x2xf32> to vector<1x2xf32>
    %170 = vector.broadcast %169 : vector<1x2xf32> to vector<8x2xf32>
    %171 = arith.addf %168, %170 : vector<8x2xf32>
    %172 = arith.cmpf ogt, %171, %164 : vector<8x2xf32>
    %173 = arith.select %172, %171, %164 : vector<8x2xi1>, vector<8x2xf32>
    %c7_i32_25 = arith.constant 7 : i32
    %174 = vector.broadcast %c7_i32_25 : i32 to vector<8x2xi32>
    %175 = arith.select %172, %174, %166 : vector<8x2xi1>, vector<8x2xi32>
    %176 = vector.broadcast %c2_i32_16 : i32 to vector<1x2xi32>
    %177 = arith.cmpi sgt, %2, %176 : vector<1x2xi32>
    %c0_i32_26 = arith.constant 0 : i32
    %178 = vector.shape_cast %177 : vector<1x2xi1> to vector<1x2xi1>
    %179 = vector.broadcast %178 : vector<1x2xi1> to vector<8x2xi1>
    %180 = vector.broadcast %c0_i32_26 : i32 to vector<8x2xi32>
    %181 = arith.select %179, %175, %180 : vector<8x2xi1>, vector<8x2xi32>
    %c1_i32_27 = arith.constant 1 : i32
    %182 = arith.subi %c2_i32_16, %c1_i32_27 : i32
    %183 = arith.index_cast %182 : i32 to index
    %c0_28 = arith.constant 0 : index
    %c0_29 = arith.constant 0 : index
    %184 = vector.load %arg6[%183, %c0_28, %c0_29] : memref<8x8x2xi32, #tpu.memory_space<vmem>>, vector<1x8x2xi32>
    %185 = vector.shape_cast %184 : vector<1x8x2xi32> to vector<8x2xi32>
    %186 = vector.shape_cast %181 : vector<8x2xi32> to vector<1x8x2xi32>
    tpu.vector_store %arg6[%183, %c0_28, %c0_29], %186 {strides = array<i32>} : memref<8x8x2xi32, #tpu.memory_space<vmem>>, vector<1x8x2xi32>,
    %187 = vector.broadcast %c2_i32_16 : i32 to vector<1x2xi32>
    %188 = arith.cmpi eq, %4, %187 : vector<1x2xi32>
    %189 = vector.shape_cast %188 : vector<1x2xi1> to vector<1x2xi1>
    %190 = vector.broadcast %189 : vector<1x2xi1> to vector<8x2xi1>
    %191 = arith.select %190, %173, %104 : vector<8x2xi1>, vector<8x2xf32>
    %c3_i32_30 = arith.constant 3 : i32
    %192 = arith.index_cast %c3_i32_30 : i32 to index
    %c0_31 = arith.constant 0 : index
    %c0_32 = arith.constant 0 : index
    %193 = vector.load %arg1[%192, %c0_31, %c0_32] : memref<8x8x2xf32, #tpu.memory_space<vmem>>, vector<1x8x2xf32>
    %194 = vector.shape_cast %193 : vector<1x8x2xf32> to vector<8x2xf32>
    %195 = vector.broadcast %5 : vector<8x1xf32> to vector<8x2xf32>
    %196 = arith.addf %194, %195 : vector<8x2xf32>
    %197 = vector.extract_strided_slice %173 {offsets = [0, 0], sizes = [1, 2], strides = [1, 1]} : vector<8x2xf32> to vector<1x2xf32>
    %198 = vector.broadcast %197 : vector<1x2xf32> to vector<8x2xf32>
    %199 = arith.addf %196, %198 : vector<8x2xf32>
    %200 = vector.broadcast %6 : vector<8x1xf32> to vector<8x2xf32>
    %201 = arith.addf %194, %200 : vector<8x2xf32>
    %202 = vector.extract_strided_slice %173 {offsets = [1, 0], sizes = [1, 2], strides = [1, 1]} : vector<8x2xf32> to vector<1x2xf32>
    %203 = vector.broadcast %202 : vector<1x2xf32> to vector<8x2xf32>
    %204 = arith.addf %201, %203 : vector<8x2xf32>
    %205 = arith.cmpf ogt, %204, %199 : vector<8x2xf32>
    %206 = arith.select %205, %204, %199 : vector<8x2xi1>, vector<8x2xf32>
    %c1_i32_33 = arith.constant 1 : i32
    %207 = vector.broadcast %c1_i32_33 : i32 to vector<8x2xi32>
    %208 = arith.select %205, %207, %13 : vector<8x2xi1>, vector<8x2xi32>
    %209 = vector.broadcast %7 : vector<8x1xf32> to vector<8x2xf32>
    %210 = arith.addf %194, %209 : vector<8x2xf32>
    %211 = vector.extract_strided_slice %173 {offsets = [2, 0], sizes = [1, 2], strides = [1, 1]} : vector<8x2xf32> to vector<1x2xf32>
    %212 = vector.broadcast %211 : vector<1x2xf32> to vector<8x2xf32>
    %213 = arith.addf %210, %212 : vector<8x2xf32>
    %214 = arith.cmpf ogt, %213, %206 : vector<8x2xf32>
    %215 = arith.select %214, %213, %206 : vector<8x2xi1>, vector<8x2xf32>
    %c2_i32_34 = arith.constant 2 : i32
    %216 = vector.broadcast %c2_i32_34 : i32 to vector<8x2xi32>
    %217 = arith.select %214, %216, %208 : vector<8x2xi1>, vector<8x2xi32>
    %218 = vector.broadcast %8 : vector<8x1xf32> to vector<8x2xf32>
    %219 = arith.addf %194, %218 : vector<8x2xf32>
    %220 = vector.extract_strided_slice %173 {offsets = [3, 0], sizes = [1, 2], strides = [1, 1]} : vector<8x2xf32> to vector<1x2xf32>
    %221 = vector.broadcast %220 : vector<1x2xf32> to vector<8x2xf32>
    %222 = arith.addf %219, %221 : vector<8x2xf32>
    %223 = arith.cmpf ogt, %222, %215 : vector<8x2xf32>
    %224 = arith.select %223, %222, %215 : vector<8x2xi1>, vector<8x2xf32>
    %c3_i32_35 = arith.constant 3 : i32
    %225 = vector.broadcast %c3_i32_35 : i32 to vector<8x2xi32>
    %226 = arith.select %223, %225, %217 : vector<8x2xi1>, vector<8x2xi32>
    %227 = vector.broadcast %9 : vector<8x1xf32> to vector<8x2xf32>
    %228 = arith.addf %194, %227 : vector<8x2xf32>
    %229 = vector.extract_strided_slice %173 {offsets = [4, 0], sizes = [1, 2], strides = [1, 1]} : vector<8x2xf32> to vector<1x2xf32>
    %230 = vector.broadcast %229 : vector<1x2xf32> to vector<8x2xf32>
    %231 = arith.addf %228, %230 : vector<8x2xf32>
    %232 = arith.cmpf ogt, %231, %224 : vector<8x2xf32>
    %233 = arith.select %232, %231, %224 : vector<8x2xi1>, vector<8x2xf32>
    %c4_i32_36 = arith.constant 4 : i32
    %234 = vector.broadcast %c4_i32_36 : i32 to vector<8x2xi32>
    %235 = arith.select %232, %234, %226 : vector<8x2xi1>, vector<8x2xi32>
    %236 = vector.broadcast %10 : vector<8x1xf32> to vector<8x2xf32>
    %237 = arith.addf %194, %236 : vector<8x2xf32>
    %238 = vector.extract_strided_slice %173 {offsets = [5, 0], sizes = [1, 2], strides = [1, 1]} : vector<8x2xf32> to vector<1x2xf32>
    %239 = vector.broadcast %238 : vector<1x2xf32> to vector<8x2xf32>
    %240 = arith.addf %237, %239 : vector<8x2xf32>
    %241 = arith.cmpf ogt, %240, %233 : vector<8x2xf32>
    %242 = arith.select %241, %240, %233 : vector<8x2xi1>, vector<8x2xf32>
    %c5_i32_37 = arith.constant 5 : i32
    %243 = vector.broadcast %c5_i32_37 : i32 to vector<8x2xi32>
    %244 = arith.select %241, %243, %235 : vector<8x2xi1>, vector<8x2xi32>
    %245 = vector.broadcast %11 : vector<8x1xf32> to vector<8x2xf32>
    %246 = arith.addf %194, %245 : vector<8x2xf32>
    %247 = vector.extract_strided_slice %173 {offsets = [6, 0], sizes = [1, 2], strides = [1, 1]} : vector<8x2xf32> to vector<1x2xf32>
    %248 = vector.broadcast %247 : vector<1x2xf32> to vector<8x2xf32>
    %249 = arith.addf %246, %248 : vector<8x2xf32>
    %250 = arith.cmpf ogt, %249, %242 : vector<8x2xf32>
    %251 = arith.select %250, %249, %242 : vector<8x2xi1>, vector<8x2xf32>
    %c6_i32_38 = arith.constant 6 : i32
    %252 = vector.broadcast %c6_i32_38 : i32 to vector<8x2xi32>
    %253 = arith.select %250, %252, %244 : vector<8x2xi1>, vector<8x2xi32>
    %254 = vector.broadcast %12 : vector<8x1xf32> to vector<8x2xf32>
    %255 = arith.addf %194, %254 : vector<8x2xf32>
    %256 = vector.extract_strided_slice %173 {offsets = [7, 0], sizes = [1, 2], strides = [1, 1]} : vector<8x2xf32> to vector<1x2xf32>
    %257 = vector.broadcast %256 : vector<1x2xf32> to vector<8x2xf32>
    %258 = arith.addf %255, %257 : vector<8x2xf32>
    %259 = arith.cmpf ogt, %258, %251 : vector<8x2xf32>
    %260 = arith.select %259, %258, %251 : vector<8x2xi1>, vector<8x2xf32>
    %c7_i32_39 = arith.constant 7 : i32
    %261 = vector.broadcast %c7_i32_39 : i32 to vector<8x2xi32>
    %262 = arith.select %259, %261, %253 : vector<8x2xi1>, vector<8x2xi32>
    %263 = vector.broadcast %c3_i32_30 : i32 to vector<1x2xi32>
    %264 = arith.cmpi sgt, %2, %263 : vector<1x2xi32>
    %c0_i32_40 = arith.constant 0 : i32
    %265 = vector.shape_cast %264 : vector<1x2xi1> to vector<1x2xi1>
    %266 = vector.broadcast %265 : vector<1x2xi1> to vector<8x2xi1>
    %267 = vector.broadcast %c0_i32_40 : i32 to vector<8x2xi32>
    %268 = arith.select %266, %262, %267 : vector<8x2xi1>, vector<8x2xi32>
    %c1_i32_41 = arith.constant 1 : i32
    %269 = arith.subi %c3_i32_30, %c1_i32_41 : i32
    %270 = arith.index_cast %269 : i32 to index
    %c0_42 = arith.constant 0 : index
    %c0_43 = arith.constant 0 : index
    %271 = vector.load %arg6[%270, %c0_42, %c0_43] : memref<8x8x2xi32, #tpu.memory_space<vmem>>, vector<1x8x2xi32>
    %272 = vector.shape_cast %271 : vector<1x8x2xi32> to vector<8x2xi32>
    %273 = vector.shape_cast %268 : vector<8x2xi32> to vector<1x8x2xi32>
    tpu.vector_store %arg6[%270, %c0_42, %c0_43], %273 {strides = array<i32>} : memref<8x8x2xi32, #tpu.memory_space<vmem>>, vector<1x8x2xi32>,
    %274 = vector.broadcast %c3_i32_30 : i32 to vector<1x2xi32>
    %275 = arith.cmpi eq, %4, %274 : vector<1x2xi32>
    %276 = vector.shape_cast %275 : vector<1x2xi1> to vector<1x2xi1>
    %277 = vector.broadcast %276 : vector<1x2xi1> to vector<8x2xi1>
    %278 = arith.select %277, %260, %191 : vector<8x2xi1>, vector<8x2xf32>
    %c4_i32_44 = arith.constant 4 : i32
    %279 = arith.index_cast %c4_i32_44 : i32 to index
    %c0_45 = arith.constant 0 : index
    %c0_46 = arith.constant 0 : index
    %280 = vector.load %arg1[%279, %c0_45, %c0_46] : memref<8x8x2xf32, #tpu.memory_space<vmem>>, vector<1x8x2xf32>
    %281 = vector.shape_cast %280 : vector<1x8x2xf32> to vector<8x2xf32>
    %282 = vector.broadcast %5 : vector<8x1xf32> to vector<8x2xf32>
    %283 = arith.addf %281, %282 : vector<8x2xf32>
    %284 = vector.extract_strided_slice %260 {offsets = [0, 0], sizes = [1, 2], strides = [1, 1]} : vector<8x2xf32> to vector<1x2xf32>
    %285 = vector.broadcast %284 : vector<1x2xf32> to vector<8x2xf32>
    %286 = arith.addf %283, %285 : vector<8x2xf32>
    %287 = vector.broadcast %6 : vector<8x1xf32> to vector<8x2xf32>
    %288 = arith.addf %281, %287 : vector<8x2xf32>
    %289 = vector.extract_strided_slice %260 {offsets = [1, 0], sizes = [1, 2], strides = [1, 1]} : vector<8x2xf32> to vector<1x2xf32>
    %290 = vector.broadcast %289 : vector<1x2xf32> to vector<8x2xf32>
    %291 = arith.addf %288, %290 : vector<8x2xf32>
    %292 = arith.cmpf ogt, %291, %286 : vector<8x2xf32>
    %293 = arith.select %292, %291, %286 : vector<8x2xi1>, vector<8x2xf32>
    %c1_i32_47 = arith.constant 1 : i32
    %294 = vector.broadcast %c1_i32_47 : i32 to vector<8x2xi32>
    %295 = arith.select %292, %294, %13 : vector<8x2xi1>, vector<8x2xi32>
    %296 = vector.broadcast %7 : vector<8x1xf32> to vector<8x2xf32>
    %297 = arith.addf %281, %296 : vector<8x2xf32>
    %298 = vector.extract_strided_slice %260 {offsets = [2, 0], sizes = [1, 2], strides = [1, 1]} : vector<8x2xf32> to vector<1x2xf32>
    %299 = vector.broadcast %298 : vector<1x2xf32> to vector<8x2xf32>
    %300 = arith.addf %297, %299 : vector<8x2xf32>
    %301 = arith.cmpf ogt, %300, %293 : vector<8x2xf32>
    %302 = arith.select %301, %300, %293 : vector<8x2xi1>, vector<8x2xf32>
    %c2_i32_48 = arith.constant 2 : i32
    %303 = vector.broadcast %c2_i32_48 : i32 to vector<8x2xi32>
    %304 = arith.select %301, %303, %295 : vector<8x2xi1>, vector<8x2xi32>
    %305 = vector.broadcast %8 : vector<8x1xf32> to vector<8x2xf32>
    %306 = arith.addf %281, %305 : vector<8x2xf32>
    %307 = vector.extract_strided_slice %260 {offsets = [3, 0], sizes = [1, 2], strides = [1, 1]} : vector<8x2xf32> to vector<1x2xf32>
    %308 = vector.broadcast %307 : vector<1x2xf32> to vector<8x2xf32>
    %309 = arith.addf %306, %308 : vector<8x2xf32>
    %310 = arith.cmpf ogt, %309, %302 : vector<8x2xf32>
    %311 = arith.select %310, %309, %302 : vector<8x2xi1>, vector<8x2xf32>
    %c3_i32_49 = arith.constant 3 : i32
    %312 = vector.broadcast %c3_i32_49 : i32 to vector<8x2xi32>
    %313 = arith.select %310, %312, %304 : vector<8x2xi1>, vector<8x2xi32>
    %314 = vector.broadcast %9 : vector<8x1xf32> to vector<8x2xf32>
    %315 = arith.addf %281, %314 : vector<8x2xf32>
    %316 = vector.extract_strided_slice %260 {offsets = [4, 0], sizes = [1, 2], strides = [1, 1]} : vector<8x2xf32> to vector<1x2xf32>
    %317 = vector.broadcast %316 : vector<1x2xf32> to vector<8x2xf32>
    %318 = arith.addf %315, %317 : vector<8x2xf32>
    %319 = arith.cmpf ogt, %318, %311 : vector<8x2xf32>
    %320 = arith.select %319, %318, %311 : vector<8x2xi1>, vector<8x2xf32>
    %c4_i32_50 = arith.constant 4 : i32
    %321 = vector.broadcast %c4_i32_50 : i32 to vector<8x2xi32>
    %322 = arith.select %319, %321, %313 : vector<8x2xi1>, vector<8x2xi32>
    %323 = vector.broadcast %10 : vector<8x1xf32> to vector<8x2xf32>
    %324 = arith.addf %281, %323 : vector<8x2xf32>
    %325 = vector.extract_strided_slice %260 {offsets = [5, 0], sizes = [1, 2], strides = [1, 1]} : vector<8x2xf32> to vector<1x2xf32>
    %326 = vector.broadcast %325 : vector<1x2xf32> to vector<8x2xf32>
    %327 = arith.addf %324, %326 : vector<8x2xf32>
    %328 = arith.cmpf ogt, %327, %320 : vector<8x2xf32>
    %329 = arith.select %328, %327, %320 : vector<8x2xi1>, vector<8x2xf32>
    %c5_i32_51 = arith.constant 5 : i32
    %330 = vector.broadcast %c5_i32_51 : i32 to vector<8x2xi32>
    %331 = arith.select %328, %330, %322 : vector<8x2xi1>, vector<8x2xi32>
    %332 = vector.broadcast %11 : vector<8x1xf32> to vector<8x2xf32>
    %333 = arith.addf %281, %332 : vector<8x2xf32>
    %334 = vector.extract_strided_slice %260 {offsets = [6, 0], sizes = [1, 2], strides = [1, 1]} : vector<8x2xf32> to vector<1x2xf32>
    %335 = vector.broadcast %334 : vector<1x2xf32> to vector<8x2xf32>
    %336 = arith.addf %333, %335 : vector<8x2xf32>
    %337 = arith.cmpf ogt, %336, %329 : vector<8x2xf32>
    %338 = arith.select %337, %336, %329 : vector<8x2xi1>, vector<8x2xf32>
    %c6_i32_52 = arith.constant 6 : i32
    %339 = vector.broadcast %c6_i32_52 : i32 to vector<8x2xi32>
    %340 = arith.select %337, %339, %331 : vector<8x2xi1>, vector<8x2xi32>
    %341 = vector.broadcast %12 : vector<8x1xf32> to vector<8x2xf32>
    %342 = arith.addf %281, %341 : vector<8x2xf32>
    %343 = vector.extract_strided_slice %260 {offsets = [7, 0], sizes = [1, 2], strides = [1, 1]} : vector<8x2xf32> to vector<1x2xf32>
    %344 = vector.broadcast %343 : vector<1x2xf32> to vector<8x2xf32>
    %345 = arith.addf %342, %344 : vector<8x2xf32>
    %346 = arith.cmpf ogt, %345, %338 : vector<8x2xf32>
    %347 = arith.select %346, %345, %338 : vector<8x2xi1>, vector<8x2xf32>
    %c7_i32_53 = arith.constant 7 : i32
    %348 = vector.broadcast %c7_i32_53 : i32 to vector<8x2xi32>
    %349 = arith.select %346, %348, %340 : vector<8x2xi1>, vector<8x2xi32>
    %350 = vector.broadcast %c4_i32_44 : i32 to vector<1x2xi32>
    %351 = arith.cmpi sgt, %2, %350 : vector<1x2xi32>
    %c0_i32_54 = arith.constant 0 : i32
    %352 = vector.shape_cast %351 : vector<1x2xi1> to vector<1x2xi1>
    %353 = vector.broadcast %352 : vector<1x2xi1> to vector<8x2xi1>
    %354 = vector.broadcast %c0_i32_54 : i32 to vector<8x2xi32>
    %355 = arith.select %353, %349, %354 : vector<8x2xi1>, vector<8x2xi32>
    %c1_i32_55 = arith.constant 1 : i32
    %356 = arith.subi %c4_i32_44, %c1_i32_55 : i32
    %357 = arith.index_cast %356 : i32 to index
    %c0_56 = arith.constant 0 : index
    %c0_57 = arith.constant 0 : index
    %358 = vector.load %arg6[%357, %c0_56, %c0_57] : memref<8x8x2xi32, #tpu.memory_space<vmem>>, vector<1x8x2xi32>
    %359 = vector.shape_cast %358 : vector<1x8x2xi32> to vector<8x2xi32>
    %360 = vector.shape_cast %355 : vector<8x2xi32> to vector<1x8x2xi32>
    tpu.vector_store %arg6[%357, %c0_56, %c0_57], %360 {strides = array<i32>} : memref<8x8x2xi32, #tpu.memory_space<vmem>>, vector<1x8x2xi32>,
    %361 = vector.broadcast %c4_i32_44 : i32 to vector<1x2xi32>
    %362 = arith.cmpi eq, %4, %361 : vector<1x2xi32>
    %363 = vector.shape_cast %362 : vector<1x2xi1> to vector<1x2xi1>
    %364 = vector.broadcast %363 : vector<1x2xi1> to vector<8x2xi1>
    %365 = arith.select %364, %347, %278 : vector<8x2xi1>, vector<8x2xf32>
    %c5_i32_58 = arith.constant 5 : i32
    %366 = arith.index_cast %c5_i32_58 : i32 to index
    %c0_59 = arith.constant 0 : index
    %c0_60 = arith.constant 0 : index
    %367 = vector.load %arg1[%366, %c0_59, %c0_60] : memref<8x8x2xf32, #tpu.memory_space<vmem>>, vector<1x8x2xf32>
    %368 = vector.shape_cast %367 : vector<1x8x2xf32> to vector<8x2xf32>
    %369 = vector.broadcast %5 : vector<8x1xf32> to vector<8x2xf32>
    %370 = arith.addf %368, %369 : vector<8x2xf32>
    %371 = vector.extract_strided_slice %347 {offsets = [0, 0], sizes = [1, 2], strides = [1, 1]} : vector<8x2xf32> to vector<1x2xf32>
    %372 = vector.broadcast %371 : vector<1x2xf32> to vector<8x2xf32>
    %373 = arith.addf %370, %372 : vector<8x2xf32>
    %374 = vector.broadcast %6 : vector<8x1xf32> to vector<8x2xf32>
    %375 = arith.addf %368, %374 : vector<8x2xf32>
    %376 = vector.extract_strided_slice %347 {offsets = [1, 0], sizes = [1, 2], strides = [1, 1]} : vector<8x2xf32> to vector<1x2xf32>
    %377 = vector.broadcast %376 : vector<1x2xf32> to vector<8x2xf32>
    %378 = arith.addf %375, %377 : vector<8x2xf32>
    %379 = arith.cmpf ogt, %378, %373 : vector<8x2xf32>
    %380 = arith.select %379, %378, %373 : vector<8x2xi1>, vector<8x2xf32>
    %c1_i32_61 = arith.constant 1 : i32
    %381 = vector.broadcast %c1_i32_61 : i32 to vector<8x2xi32>
    %382 = arith.select %379, %381, %13 : vector<8x2xi1>, vector<8x2xi32>
    %383 = vector.broadcast %7 : vector<8x1xf32> to vector<8x2xf32>
    %384 = arith.addf %368, %383 : vector<8x2xf32>
    %385 = vector.extract_strided_slice %347 {offsets = [2, 0], sizes = [1, 2], strides = [1, 1]} : vector<8x2xf32> to vector<1x2xf32>
    %386 = vector.broadcast %385 : vector<1x2xf32> to vector<8x2xf32>
    %387 = arith.addf %384, %386 : vector<8x2xf32>
    %388 = arith.cmpf ogt, %387, %380 : vector<8x2xf32>
    %389 = arith.select %388, %387, %380 : vector<8x2xi1>, vector<8x2xf32>
    %c2_i32_62 = arith.constant 2 : i32
    %390 = vector.broadcast %c2_i32_62 : i32 to vector<8x2xi32>
    %391 = arith.select %388, %390, %382 : vector<8x2xi1>, vector<8x2xi32>
    %392 = vector.broadcast %8 : vector<8x1xf32> to vector<8x2xf32>
    %393 = arith.addf %368, %392 : vector<8x2xf32>
    %394 = vector.extract_strided_slice %347 {offsets = [3, 0], sizes = [1, 2], strides = [1, 1]} : vector<8x2xf32> to vector<1x2xf32>
    %395 = vector.broadcast %394 : vector<1x2xf32> to vector<8x2xf32>
    %396 = arith.addf %393, %395 : vector<8x2xf32>
    %397 = arith.cmpf ogt, %396, %389 : vector<8x2xf32>
    %398 = arith.select %397, %396, %389 : vector<8x2xi1>, vector<8x2xf32>
    %c3_i32_63 = arith.constant 3 : i32
    %399 = vector.broadcast %c3_i32_63 : i32 to vector<8x2xi32>
    %400 = arith.select %397, %399, %391 : vector<8x2xi1>, vector<8x2xi32>
    %401 = vector.broadcast %9 : vector<8x1xf32> to vector<8x2xf32>
    %402 = arith.addf %368, %401 : vector<8x2xf32>
    %403 = vector.extract_strided_slice %347 {offsets = [4, 0], sizes = [1, 2], strides = [1, 1]} : vector<8x2xf32> to vector<1x2xf32>
    %404 = vector.broadcast %403 : vector<1x2xf32> to vector<8x2xf32>
    %405 = arith.addf %402, %404 : vector<8x2xf32>
    %406 = arith.cmpf ogt, %405, %398 : vector<8x2xf32>
    %407 = arith.select %406, %405, %398 : vector<8x2xi1>, vector<8x2xf32>
    %c4_i32_64 = arith.constant 4 : i32
    %408 = vector.broadcast %c4_i32_64 : i32 to vector<8x2xi32>
    %409 = arith.select %406, %408, %400 : vector<8x2xi1>, vector<8x2xi32>
    %410 = vector.broadcast %10 : vector<8x1xf32> to vector<8x2xf32>
    %411 = arith.addf %368, %410 : vector<8x2xf32>
    %412 = vector.extract_strided_slice %347 {offsets = [5, 0], sizes = [1, 2], strides = [1, 1]} : vector<8x2xf32> to vector<1x2xf32>
    %413 = vector.broadcast %412 : vector<1x2xf32> to vector<8x2xf32>
    %414 = arith.addf %411, %413 : vector<8x2xf32>
    %415 = arith.cmpf ogt, %414, %407 : vector<8x2xf32>
    %416 = arith.select %415, %414, %407 : vector<8x2xi1>, vector<8x2xf32>
    %c5_i32_65 = arith.constant 5 : i32
    %417 = vector.broadcast %c5_i32_65 : i32 to vector<8x2xi32>
    %418 = arith.select %415, %417, %409 : vector<8x2xi1>, vector<8x2xi32>
    %419 = vector.broadcast %11 : vector<8x1xf32> to vector<8x2xf32>
    %420 = arith.addf %368, %419 : vector<8x2xf32>
    %421 = vector.extract_strided_slice %347 {offsets = [6, 0], sizes = [1, 2], strides = [1, 1]} : vector<8x2xf32> to vector<1x2xf32>
    %422 = vector.broadcast %421 : vector<1x2xf32> to vector<8x2xf32>
    %423 = arith.addf %420, %422 : vector<8x2xf32>
    %424 = arith.cmpf ogt, %423, %416 : vector<8x2xf32>
    %425 = arith.select %424, %423, %416 : vector<8x2xi1>, vector<8x2xf32>
    %c6_i32_66 = arith.constant 6 : i32
    %426 = vector.broadcast %c6_i32_66 : i32 to vector<8x2xi32>
    %427 = arith.select %424, %426, %418 : vector<8x2xi1>, vector<8x2xi32>
    %428 = vector.broadcast %12 : vector<8x1xf32> to vector<8x2xf32>
    %429 = arith.addf %368, %428 : vector<8x2xf32>
    %430 = vector.extract_strided_slice %347 {offsets = [7, 0], sizes = [1, 2], strides = [1, 1]} : vector<8x2xf32> to vector<1x2xf32>
    %431 = vector.broadcast %430 : vector<1x2xf32> to vector<8x2xf32>
    %432 = arith.addf %429, %431 : vector<8x2xf32>
    %433 = arith.cmpf ogt, %432, %425 : vector<8x2xf32>
    %434 = arith.select %433, %432, %425 : vector<8x2xi1>, vector<8x2xf32>
    %c7_i32_67 = arith.constant 7 : i32
    %435 = vector.broadcast %c7_i32_67 : i32 to vector<8x2xi32>
    %436 = arith.select %433, %435, %427 : vector<8x2xi1>, vector<8x2xi32>
    %437 = vector.broadcast %c5_i32_58 : i32 to vector<1x2xi32>
    %438 = arith.cmpi sgt, %2, %437 : vector<1x2xi32>
    %c0_i32_68 = arith.constant 0 : i32
    %439 = vector.shape_cast %438 : vector<1x2xi1> to vector<1x2xi1>
    %440 = vector.broadcast %439 : vector<1x2xi1> to vector<8x2xi1>
    %441 = vector.broadcast %c0_i32_68 : i32 to vector<8x2xi32>
    %442 = arith.select %440, %436, %441 : vector<8x2xi1>, vector<8x2xi32>
    %c1_i32_69 = arith.constant 1 : i32
    %443 = arith.subi %c5_i32_58, %c1_i32_69 : i32
    %444 = arith.index_cast %443 : i32 to index
    %c0_70 = arith.constant 0 : index
    %c0_71 = arith.constant 0 : index
    %445 = vector.load %arg6[%444, %c0_70, %c0_71] : memref<8x8x2xi32, #tpu.memory_space<vmem>>, vector<1x8x2xi32>
    %446 = vector.shape_cast %445 : vector<1x8x2xi32> to vector<8x2xi32>
    %447 = vector.shape_cast %442 : vector<8x2xi32> to vector<1x8x2xi32>
    tpu.vector_store %arg6[%444, %c0_70, %c0_71], %447 {strides = array<i32>} : memref<8x8x2xi32, #tpu.memory_space<vmem>>, vector<1x8x2xi32>,
    %448 = vector.broadcast %c5_i32_58 : i32 to vector<1x2xi32>
    %449 = arith.cmpi eq, %4, %448 : vector<1x2xi32>
    %450 = vector.shape_cast %449 : vector<1x2xi1> to vector<1x2xi1>
    %451 = vector.broadcast %450 : vector<1x2xi1> to vector<8x2xi1>
    %452 = arith.select %451, %434, %365 : vector<8x2xi1>, vector<8x2xf32>
    %c6_i32_72 = arith.constant 6 : i32
    %453 = arith.index_cast %c6_i32_72 : i32 to index
    %c0_73 = arith.constant 0 : index
    %c0_74 = arith.constant 0 : index
    %454 = vector.load %arg1[%453, %c0_73, %c0_74] : memref<8x8x2xf32, #tpu.memory_space<vmem>>, vector<1x8x2xf32>
    %455 = vector.shape_cast %454 : vector<1x8x2xf32> to vector<8x2xf32>
    %456 = vector.broadcast %5 : vector<8x1xf32> to vector<8x2xf32>
    %457 = arith.addf %455, %456 : vector<8x2xf32>
    %458 = vector.extract_strided_slice %434 {offsets = [0, 0], sizes = [1, 2], strides = [1, 1]} : vector<8x2xf32> to vector<1x2xf32>
    %459 = vector.broadcast %458 : vector<1x2xf32> to vector<8x2xf32>
    %460 = arith.addf %457, %459 : vector<8x2xf32>
    %461 = vector.broadcast %6 : vector<8x1xf32> to vector<8x2xf32>
    %462 = arith.addf %455, %461 : vector<8x2xf32>
    %463 = vector.extract_strided_slice %434 {offsets = [1, 0], sizes = [1, 2], strides = [1, 1]} : vector<8x2xf32> to vector<1x2xf32>
    %464 = vector.broadcast %463 : vector<1x2xf32> to vector<8x2xf32>
    %465 = arith.addf %462, %464 : vector<8x2xf32>
    %466 = arith.cmpf ogt, %465, %460 : vector<8x2xf32>
    %467 = arith.select %466, %465, %460 : vector<8x2xi1>, vector<8x2xf32>
    %c1_i32_75 = arith.constant 1 : i32
    %468 = vector.broadcast %c1_i32_75 : i32 to vector<8x2xi32>
    %469 = arith.select %466, %468, %13 : vector<8x2xi1>, vector<8x2xi32>
    %470 = vector.broadcast %7 : vector<8x1xf32> to vector<8x2xf32>
    %471 = arith.addf %455, %470 : vector<8x2xf32>
    %472 = vector.extract_strided_slice %434 {offsets = [2, 0], sizes = [1, 2], strides = [1, 1]} : vector<8x2xf32> to vector<1x2xf32>
    %473 = vector.broadcast %472 : vector<1x2xf32> to vector<8x2xf32>
    %474 = arith.addf %471, %473 : vector<8x2xf32>
    %475 = arith.cmpf ogt, %474, %467 : vector<8x2xf32>
    %476 = arith.select %475, %474, %467 : vector<8x2xi1>, vector<8x2xf32>
    %c2_i32_76 = arith.constant 2 : i32
    %477 = vector.broadcast %c2_i32_76 : i32 to vector<8x2xi32>
    %478 = arith.select %475, %477, %469 : vector<8x2xi1>, vector<8x2xi32>
    %479 = vector.broadcast %8 : vector<8x1xf32> to vector<8x2xf32>
    %480 = arith.addf %455, %479 : vector<8x2xf32>
    %481 = vector.extract_strided_slice %434 {offsets = [3, 0], sizes = [1, 2], strides = [1, 1]} : vector<8x2xf32> to vector<1x2xf32>
    %482 = vector.broadcast %481 : vector<1x2xf32> to vector<8x2xf32>
    %483 = arith.addf %480, %482 : vector<8x2xf32>
    %484 = arith.cmpf ogt, %483, %476 : vector<8x2xf32>
    %485 = arith.select %484, %483, %476 : vector<8x2xi1>, vector<8x2xf32>
    %c3_i32_77 = arith.constant 3 : i32
    %486 = vector.broadcast %c3_i32_77 : i32 to vector<8x2xi32>
    %487 = arith.select %484, %486, %478 : vector<8x2xi1>, vector<8x2xi32>
    %488 = vector.broadcast %9 : vector<8x1xf32> to vector<8x2xf32>
    %489 = arith.addf %455, %488 : vector<8x2xf32>
    %490 = vector.extract_strided_slice %434 {offsets = [4, 0], sizes = [1, 2], strides = [1, 1]} : vector<8x2xf32> to vector<1x2xf32>
    %491 = vector.broadcast %490 : vector<1x2xf32> to vector<8x2xf32>
    %492 = arith.addf %489, %491 : vector<8x2xf32>
    %493 = arith.cmpf ogt, %492, %485 : vector<8x2xf32>
    %494 = arith.select %493, %492, %485 : vector<8x2xi1>, vector<8x2xf32>
    %c4_i32_78 = arith.constant 4 : i32
    %495 = vector.broadcast %c4_i32_78 : i32 to vector<8x2xi32>
    %496 = arith.select %493, %495, %487 : vector<8x2xi1>, vector<8x2xi32>
    %497 = vector.broadcast %10 : vector<8x1xf32> to vector<8x2xf32>
    %498 = arith.addf %455, %497 : vector<8x2xf32>
    %499 = vector.extract_strided_slice %434 {offsets = [5, 0], sizes = [1, 2], strides = [1, 1]} : vector<8x2xf32> to vector<1x2xf32>
    %500 = vector.broadcast %499 : vector<1x2xf32> to vector<8x2xf32>
    %501 = arith.addf %498, %500 : vector<8x2xf32>
    %502 = arith.cmpf ogt, %501, %494 : vector<8x2xf32>
    %503 = arith.select %502, %501, %494 : vector<8x2xi1>, vector<8x2xf32>
    %c5_i32_79 = arith.constant 5 : i32
    %504 = vector.broadcast %c5_i32_79 : i32 to vector<8x2xi32>
    %505 = arith.select %502, %504, %496 : vector<8x2xi1>, vector<8x2xi32>
    %506 = vector.broadcast %11 : vector<8x1xf32> to vector<8x2xf32>
    %507 = arith.addf %455, %506 : vector<8x2xf32>
    %508 = vector.extract_strided_slice %434 {offsets = [6, 0], sizes = [1, 2], strides = [1, 1]} : vector<8x2xf32> to vector<1x2xf32>
    %509 = vector.broadcast %508 : vector<1x2xf32> to vector<8x2xf32>
    %510 = arith.addf %507, %509 : vector<8x2xf32>
    %511 = arith.cmpf ogt, %510, %503 : vector<8x2xf32>
    %512 = arith.select %511, %510, %503 : vector<8x2xi1>, vector<8x2xf32>
    %c6_i32_80 = arith.constant 6 : i32
    %513 = vector.broadcast %c6_i32_80 : i32 to vector<8x2xi32>
    %514 = arith.select %511, %513, %505 : vector<8x2xi1>, vector<8x2xi32>
    %515 = vector.broadcast %12 : vector<8x1xf32> to vector<8x2xf32>
    %516 = arith.addf %455, %515 : vector<8x2xf32>
    %517 = vector.extract_strided_slice %434 {offsets = [7, 0], sizes = [1, 2], strides = [1, 1]} : vector<8x2xf32> to vector<1x2xf32>
    %518 = vector.broadcast %517 : vector<1x2xf32> to vector<8x2xf32>
    %519 = arith.addf %516, %518 : vector<8x2xf32>
    %520 = arith.cmpf ogt, %519, %512 : vector<8x2xf32>
    %521 = arith.select %520, %519, %512 : vector<8x2xi1>, vector<8x2xf32>
    %c7_i32_81 = arith.constant 7 : i32
    %522 = vector.broadcast %c7_i32_81 : i32 to vector<8x2xi32>
    %523 = arith.select %520, %522, %514 : vector<8x2xi1>, vector<8x2xi32>
    %524 = vector.broadcast %c6_i32_72 : i32 to vector<1x2xi32>
    %525 = arith.cmpi sgt, %2, %524 : vector<1x2xi32>
    %c0_i32_82 = arith.constant 0 : i32
    %526 = vector.shape_cast %525 : vector<1x2xi1> to vector<1x2xi1>
    %527 = vector.broadcast %526 : vector<1x2xi1> to vector<8x2xi1>
    %528 = vector.broadcast %c0_i32_82 : i32 to vector<8x2xi32>
    %529 = arith.select %527, %523, %528 : vector<8x2xi1>, vector<8x2xi32>
    %c1_i32_83 = arith.constant 1 : i32
    %530 = arith.subi %c6_i32_72, %c1_i32_83 : i32
    %531 = arith.index_cast %530 : i32 to index
    %c0_84 = arith.constant 0 : index
    %c0_85 = arith.constant 0 : index
    %532 = vector.load %arg6[%531, %c0_84, %c0_85] : memref<8x8x2xi32, #tpu.memory_space<vmem>>, vector<1x8x2xi32>
    %533 = vector.shape_cast %532 : vector<1x8x2xi32> to vector<8x2xi32>
    %534 = vector.shape_cast %529 : vector<8x2xi32> to vector<1x8x2xi32>
    tpu.vector_store %arg6[%531, %c0_84, %c0_85], %534 {strides = array<i32>} : memref<8x8x2xi32, #tpu.memory_space<vmem>>, vector<1x8x2xi32>,
    %535 = vector.broadcast %c6_i32_72 : i32 to vector<1x2xi32>
    %536 = arith.cmpi eq, %4, %535 : vector<1x2xi32>
    %537 = vector.shape_cast %536 : vector<1x2xi1> to vector<1x2xi1>
    %538 = vector.broadcast %537 : vector<1x2xi1> to vector<8x2xi1>
    %539 = arith.select %538, %521, %452 : vector<8x2xi1>, vector<8x2xf32>
    %c7_i32_86 = arith.constant 7 : i32
    %540 = arith.index_cast %c7_i32_86 : i32 to index
    %c0_87 = arith.constant 0 : index
    %c0_88 = arith.constant 0 : index
    %541 = vector.load %arg1[%540, %c0_87, %c0_88] : memref<8x8x2xf32, #tpu.memory_space<vmem>>, vector<1x8x2xf32>
    %542 = vector.shape_cast %541 : vector<1x8x2xf32> to vector<8x2xf32>
    %543 = vector.broadcast %5 : vector<8x1xf32> to vector<8x2xf32>
    %544 = arith.addf %542, %543 : vector<8x2xf32>
    %545 = vector.extract_strided_slice %521 {offsets = [0, 0], sizes = [1, 2], strides = [1, 1]} : vector<8x2xf32> to vector<1x2xf32>
    %546 = vector.broadcast %545 : vector<1x2xf32> to vector<8x2xf32>
    %547 = arith.addf %544, %546 : vector<8x2xf32>
    %548 = vector.broadcast %6 : vector<8x1xf32> to vector<8x2xf32>
    %549 = arith.addf %542, %548 : vector<8x2xf32>
    %550 = vector.extract_strided_slice %521 {offsets = [1, 0], sizes = [1, 2], strides = [1, 1]} : vector<8x2xf32> to vector<1x2xf32>
    %551 = vector.broadcast %550 : vector<1x2xf32> to vector<8x2xf32>
    %552 = arith.addf %549, %551 : vector<8x2xf32>
    %553 = arith.cmpf ogt, %552, %547 : vector<8x2xf32>
    %554 = arith.select %553, %552, %547 : vector<8x2xi1>, vector<8x2xf32>
    %c1_i32_89 = arith.constant 1 : i32
    %555 = vector.broadcast %c1_i32_89 : i32 to vector<8x2xi32>
    %556 = arith.select %553, %555, %13 : vector<8x2xi1>, vector<8x2xi32>
    %557 = vector.broadcast %7 : vector<8x1xf32> to vector<8x2xf32>
    %558 = arith.addf %542, %557 : vector<8x2xf32>
    %559 = vector.extract_strided_slice %521 {offsets = [2, 0], sizes = [1, 2], strides = [1, 1]} : vector<8x2xf32> to vector<1x2xf32>
    %560 = vector.broadcast %559 : vector<1x2xf32> to vector<8x2xf32>
    %561 = arith.addf %558, %560 : vector<8x2xf32>
    %562 = arith.cmpf ogt, %561, %554 : vector<8x2xf32>
    %563 = arith.select %562, %561, %554 : vector<8x2xi1>, vector<8x2xf32>
    %c2_i32_90 = arith.constant 2 : i32
    %564 = vector.broadcast %c2_i32_90 : i32 to vector<8x2xi32>
    %565 = arith.select %562, %564, %556 : vector<8x2xi1>, vector<8x2xi32>
    %566 = vector.broadcast %8 : vector<8x1xf32> to vector<8x2xf32>
    %567 = arith.addf %542, %566 : vector<8x2xf32>
    %568 = vector.extract_strided_slice %521 {offsets = [3, 0], sizes = [1, 2], strides = [1, 1]} : vector<8x2xf32> to vector<1x2xf32>
    %569 = vector.broadcast %568 : vector<1x2xf32> to vector<8x2xf32>
    %570 = arith.addf %567, %569 : vector<8x2xf32>
    %571 = arith.cmpf ogt, %570, %563 : vector<8x2xf32>
    %572 = arith.select %571, %570, %563 : vector<8x2xi1>, vector<8x2xf32>
    %c3_i32_91 = arith.constant 3 : i32
    %573 = vector.broadcast %c3_i32_91 : i32 to vector<8x2xi32>
    %574 = arith.select %571, %573, %565 : vector<8x2xi1>, vector<8x2xi32>
    %575 = vector.broadcast %9 : vector<8x1xf32> to vector<8x2xf32>
    %576 = arith.addf %542, %575 : vector<8x2xf32>
    %577 = vector.extract_strided_slice %521 {offsets = [4, 0], sizes = [1, 2], strides = [1, 1]} : vector<8x2xf32> to vector<1x2xf32>
    %578 = vector.broadcast %577 : vector<1x2xf32> to vector<8x2xf32>
    %579 = arith.addf %576, %578 : vector<8x2xf32>
    %580 = arith.cmpf ogt, %579, %572 : vector<8x2xf32>
    %581 = arith.select %580, %579, %572 : vector<8x2xi1>, vector<8x2xf32>
    %c4_i32_92 = arith.constant 4 : i32
    %582 = vector.broadcast %c4_i32_92 : i32 to vector<8x2xi32>
    %583 = arith.select %580, %582, %574 : vector<8x2xi1>, vector<8x2xi32>
    %584 = vector.broadcast %10 : vector<8x1xf32> to vector<8x2xf32>
    %585 = arith.addf %542, %584 : vector<8x2xf32>
    %586 = vector.extract_strided_slice %521 {offsets = [5, 0], sizes = [1, 2], strides = [1, 1]} : vector<8x2xf32> to vector<1x2xf32>
    %587 = vector.broadcast %586 : vector<1x2xf32> to vector<8x2xf32>
    %588 = arith.addf %585, %587 : vector<8x2xf32>
    %589 = arith.cmpf ogt, %588, %581 : vector<8x2xf32>
    %590 = arith.select %589, %588, %581 : vector<8x2xi1>, vector<8x2xf32>
    %c5_i32_93 = arith.constant 5 : i32
    %591 = vector.broadcast %c5_i32_93 : i32 to vector<8x2xi32>
    %592 = arith.select %589, %591, %583 : vector<8x2xi1>, vector<8x2xi32>
    %593 = vector.broadcast %11 : vector<8x1xf32> to vector<8x2xf32>
    %594 = arith.addf %542, %593 : vector<8x2xf32>
    %595 = vector.extract_strided_slice %521 {offsets = [6, 0], sizes = [1, 2], strides = [1, 1]} : vector<8x2xf32> to vector<1x2xf32>
    %596 = vector.broadcast %595 : vector<1x2xf32> to vector<8x2xf32>
    %597 = arith.addf %594, %596 : vector<8x2xf32>
    %598 = arith.cmpf ogt, %597, %590 : vector<8x2xf32>
    %599 = arith.select %598, %597, %590 : vector<8x2xi1>, vector<8x2xf32>
    %c6_i32_94 = arith.constant 6 : i32
    %600 = vector.broadcast %c6_i32_94 : i32 to vector<8x2xi32>
    %601 = arith.select %598, %600, %592 : vector<8x2xi1>, vector<8x2xi32>
    %602 = vector.broadcast %12 : vector<8x1xf32> to vector<8x2xf32>
    %603 = arith.addf %542, %602 : vector<8x2xf32>
    %604 = vector.extract_strided_slice %521 {offsets = [7, 0], sizes = [1, 2], strides = [1, 1]} : vector<8x2xf32> to vector<1x2xf32>
    %605 = vector.broadcast %604 : vector<1x2xf32> to vector<8x2xf32>
    %606 = arith.addf %603, %605 : vector<8x2xf32>
    %607 = arith.cmpf ogt, %606, %599 : vector<8x2xf32>
    %608 = arith.select %607, %606, %599 : vector<8x2xi1>, vector<8x2xf32>
    %c7_i32_95 = arith.constant 7 : i32
    %609 = vector.broadcast %c7_i32_95 : i32 to vector<8x2xi32>
    %610 = arith.select %607, %609, %601 : vector<8x2xi1>, vector<8x2xi32>
    %611 = vector.broadcast %c7_i32_86 : i32 to vector<1x2xi32>
    %612 = arith.cmpi sgt, %2, %611 : vector<1x2xi32>
    %c0_i32_96 = arith.constant 0 : i32
    %613 = vector.shape_cast %612 : vector<1x2xi1> to vector<1x2xi1>
    %614 = vector.broadcast %613 : vector<1x2xi1> to vector<8x2xi1>
    %615 = vector.broadcast %c0_i32_96 : i32 to vector<8x2xi32>
    %616 = arith.select %614, %610, %615 : vector<8x2xi1>, vector<8x2xi32>
    %c1_i32_97 = arith.constant 1 : i32
    %617 = arith.subi %c7_i32_86, %c1_i32_97 : i32
    %618 = arith.index_cast %617 : i32 to index
    %c0_98 = arith.constant 0 : index
    %c0_99 = arith.constant 0 : index
    %619 = vector.load %arg6[%618, %c0_98, %c0_99] : memref<8x8x2xi32, #tpu.memory_space<vmem>>, vector<1x8x2xi32>
    %620 = vector.shape_cast %619 : vector<1x8x2xi32> to vector<8x2xi32>
    %621 = vector.shape_cast %616 : vector<8x2xi32> to vector<1x8x2xi32>
    tpu.vector_store %arg6[%618, %c0_98, %c0_99], %621 {strides = array<i32>} : memref<8x8x2xi32, #tpu.memory_space<vmem>>, vector<1x8x2xi32>,
    %622 = vector.broadcast %c7_i32_86 : i32 to vector<1x2xi32>
    %623 = arith.cmpi eq, %4, %622 : vector<1x2xi32>
    %624 = vector.shape_cast %623 : vector<1x2xi1> to vector<1x2xi1>
    %625 = vector.broadcast %624 : vector<1x2xi1> to vector<8x2xi1>
    %626 = arith.select %625, %608, %539 : vector<8x2xi1>, vector<8x2xf32>
    %c7_i32_100 = arith.constant 7 : i32
    %627 = vector.broadcast %1 : vector<8x1xf32> to vector<8x2xf32>
    %628 = arith.addf %626, %627 : vector<8x2xf32>
    %629 = vector.extract_strided_slice %628 {offsets = [0, 0], sizes = [1, 2], strides = [1, 1]} : vector<8x2xf32> to vector<1x2xf32>
    %c0_i32_101 = arith.constant 0 : i32
    %630 = vector.broadcast %c0_i32_101 : i32 to vector<1x2xi32>
    %631 = vector.extract_strided_slice %628 {offsets = [1, 0], sizes = [1, 2], strides = [1, 1]} : vector<8x2xf32> to vector<1x2xf32>
    %632 = arith.cmpf ogt, %631, %629 : vector<1x2xf32>
    %633 = arith.select %632, %631, %629 : vector<1x2xi1>, vector<1x2xf32>
    %c1_i32_102 = arith.constant 1 : i32
    %634 = vector.broadcast %c1_i32_102 : i32 to vector<1x2xi32>
    %635 = arith.select %632, %634, %630 : vector<1x2xi1>, vector<1x2xi32>
    %636 = vector.extract_strided_slice %628 {offsets = [2, 0], sizes = [1, 2], strides = [1, 1]} : vector<8x2xf32> to vector<1x2xf32>
    %637 = arith.cmpf ogt, %636, %633 : vector<1x2xf32>
    %638 = arith.select %637, %636, %633 : vector<1x2xi1>, vector<1x2xf32>
    %c2_i32_103 = arith.constant 2 : i32
    %639 = vector.broadcast %c2_i32_103 : i32 to vector<1x2xi32>
    %640 = arith.select %637, %639, %635 : vector<1x2xi1>, vector<1x2xi32>
    %641 = vector.extract_strided_slice %628 {offsets = [3, 0], sizes = [1, 2], strides = [1, 1]} : vector<8x2xf32> to vector<1x2xf32>
    %642 = arith.cmpf ogt, %641, %638 : vector<1x2xf32>
    %643 = arith.select %642, %641, %638 : vector<1x2xi1>, vector<1x2xf32>
    %c3_i32_104 = arith.constant 3 : i32
    %644 = vector.broadcast %c3_i32_104 : i32 to vector<1x2xi32>
    %645 = arith.select %642, %644, %640 : vector<1x2xi1>, vector<1x2xi32>
    %646 = vector.extract_strided_slice %628 {offsets = [4, 0], sizes = [1, 2], strides = [1, 1]} : vector<8x2xf32> to vector<1x2xf32>
    %647 = arith.cmpf ogt, %646, %643 : vector<1x2xf32>
    %648 = arith.select %647, %646, %643 : vector<1x2xi1>, vector<1x2xf32>
    %c4_i32_105 = arith.constant 4 : i32
    %649 = vector.broadcast %c4_i32_105 : i32 to vector<1x2xi32>
    %650 = arith.select %647, %649, %645 : vector<1x2xi1>, vector<1x2xi32>
    %651 = vector.extract_strided_slice %628 {offsets = [5, 0], sizes = [1, 2], strides = [1, 1]} : vector<8x2xf32> to vector<1x2xf32>
    %652 = arith.cmpf ogt, %651, %648 : vector<1x2xf32>
    %653 = arith.select %652, %651, %648 : vector<1x2xi1>, vector<1x2xf32>
    %c5_i32_106 = arith.constant 5 : i32
    %654 = vector.broadcast %c5_i32_106 : i32 to vector<1x2xi32>
    %655 = arith.select %652, %654, %650 : vector<1x2xi1>, vector<1x2xi32>
    %656 = vector.extract_strided_slice %628 {offsets = [6, 0], sizes = [1, 2], strides = [1, 1]} : vector<8x2xf32> to vector<1x2xf32>
    %657 = arith.cmpf ogt, %656, %653 : vector<1x2xf32>
    %658 = arith.select %657, %656, %653 : vector<1x2xi1>, vector<1x2xf32>
    %c6_i32_107 = arith.constant 6 : i32
    %659 = vector.broadcast %c6_i32_107 : i32 to vector<1x2xi32>
    %660 = arith.select %657, %659, %655 : vector<1x2xi1>, vector<1x2xi32>
    %661 = vector.extract_strided_slice %628 {offsets = [7, 0], sizes = [1, 2], strides = [1, 1]} : vector<8x2xf32> to vector<1x2xf32>
    %662 = arith.cmpf ogt, %661, %658 : vector<1x2xf32>
    %c7_i32_108 = arith.constant 7 : i32
    %663 = vector.broadcast %c7_i32_108 : i32 to vector<1x2xi32>
    %664 = arith.select %662, %663, %660 : vector<1x2xi1>, vector<1x2xi32>
    %c7 = arith.constant 7 : index
    %c0_109 = arith.constant 0 : index
    %c0_110 = arith.constant 0 : index
    %665 = vector.load %arg5[%c7, %c0_109, %c0_110] : memref<8x1x2xi32, #tpu.memory_space<vmem>>, vector<1x1x2xi32>
    %666 = vector.shape_cast %665 : vector<1x1x2xi32> to vector<1x2xi32>
    %667 = vector.shape_cast %664 : vector<1x2xi32> to vector<1x1x2xi32>
    tpu.vector_store %arg5[%c7, %c0_109, %c0_110], %667 {strides = array<i32>} : memref<8x1x2xi32, #tpu.memory_space<vmem>>, vector<1x1x2xi32>,
    %c0_i32_111 = arith.constant 0 : i32
    %c6_i32_112 = arith.constant 6 : i32
    %668 = arith.subi %c6_i32_112, %c0_i32_111 : i32
    %669 = arith.index_cast %668 : i32 to index
    %c0_113 = arith.constant 0 : index
    %c0_114 = arith.constant 0 : index
    %670 = vector.load %arg6[%669, %c0_113, %c0_114] : memref<8x8x2xi32, #tpu.memory_space<vmem>>, vector<1x8x2xi32>
    %671 = vector.shape_cast %670 : vector<1x8x2xi32> to vector<8x2xi32>
    %c0_i32_115 = arith.constant 0 : i32
    %672 = vector.broadcast %c0_i32_115 : i32 to vector<1x2xi32>
    %673 = arith.cmpi eq, %664, %672 : vector<1x2xi32>
    %674 = vector.extract_strided_slice %671 {offsets = [0, 0], sizes = [1, 2], strides = [1, 1]} : vector<8x2xi32> to vector<1x2xi32>
    %c0_i32_116 = arith.constant 0 : i32
    %675 = vector.broadcast %c0_i32_116 : i32 to vector<1x2xi32>
    %676 = arith.select %673, %674, %675 : vector<1x2xi1>, vector<1x2xi32>
    %c1_i32_117 = arith.constant 1 : i32
    %677 = vector.broadcast %c1_i32_117 : i32 to vector<1x2xi32>
    %678 = arith.cmpi eq, %664, %677 : vector<1x2xi32>
    %679 = vector.extract_strided_slice %671 {offsets = [1, 0], sizes = [1, 2], strides = [1, 1]} : vector<8x2xi32> to vector<1x2xi32>
    %c0_i32_118 = arith.constant 0 : i32
    %680 = vector.broadcast %c0_i32_118 : i32 to vector<1x2xi32>
    %681 = arith.select %678, %679, %680 : vector<1x2xi1>, vector<1x2xi32>
    %682 = arith.addi %676, %681 : vector<1x2xi32>
    %c2_i32_119 = arith.constant 2 : i32
    %683 = vector.broadcast %c2_i32_119 : i32 to vector<1x2xi32>
    %684 = arith.cmpi eq, %664, %683 : vector<1x2xi32>
    %685 = vector.extract_strided_slice %671 {offsets = [2, 0], sizes = [1, 2], strides = [1, 1]} : vector<8x2xi32> to vector<1x2xi32>
    %c0_i32_120 = arith.constant 0 : i32
    %686 = vector.broadcast %c0_i32_120 : i32 to vector<1x2xi32>
    %687 = arith.select %684, %685, %686 : vector<1x2xi1>, vector<1x2xi32>
    %688 = arith.addi %682, %687 : vector<1x2xi32>
    %c3_i32_121 = arith.constant 3 : i32
    %689 = vector.broadcast %c3_i32_121 : i32 to vector<1x2xi32>
    %690 = arith.cmpi eq, %664, %689 : vector<1x2xi32>
    %691 = vector.extract_strided_slice %671 {offsets = [3, 0], sizes = [1, 2], strides = [1, 1]} : vector<8x2xi32> to vector<1x2xi32>
    %c0_i32_122 = arith.constant 0 : i32
    %692 = vector.broadcast %c0_i32_122 : i32 to vector<1x2xi32>
    %693 = arith.select %690, %691, %692 : vector<1x2xi1>, vector<1x2xi32>
    %694 = arith.addi %688, %693 : vector<1x2xi32>
    %c4_i32_123 = arith.constant 4 : i32
    %695 = vector.broadcast %c4_i32_123 : i32 to vector<1x2xi32>
    %696 = arith.cmpi eq, %664, %695 : vector<1x2xi32>
    %697 = vector.extract_strided_slice %671 {offsets = [4, 0], sizes = [1, 2], strides = [1, 1]} : vector<8x2xi32> to vector<1x2xi32>
    %c0_i32_124 = arith.constant 0 : i32
    %698 = vector.broadcast %c0_i32_124 : i32 to vector<1x2xi32>
    %699 = arith.select %696, %697, %698 : vector<1x2xi1>, vector<1x2xi32>
    %700 = arith.addi %694, %699 : vector<1x2xi32>
    %c5_i32_125 = arith.constant 5 : i32
    %701 = vector.broadcast %c5_i32_125 : i32 to vector<1x2xi32>
    %702 = arith.cmpi eq, %664, %701 : vector<1x2xi32>
    %703 = vector.extract_strided_slice %671 {offsets = [5, 0], sizes = [1, 2], strides = [1, 1]} : vector<8x2xi32> to vector<1x2xi32>
    %c0_i32_126 = arith.constant 0 : i32
    %704 = vector.broadcast %c0_i32_126 : i32 to vector<1x2xi32>
    %705 = arith.select %702, %703, %704 : vector<1x2xi1>, vector<1x2xi32>
    %706 = arith.addi %700, %705 : vector<1x2xi32>
    %c6_i32_127 = arith.constant 6 : i32
    %707 = vector.broadcast %c6_i32_127 : i32 to vector<1x2xi32>
    %708 = arith.cmpi eq, %664, %707 : vector<1x2xi32>
    %709 = vector.extract_strided_slice %671 {offsets = [6, 0], sizes = [1, 2], strides = [1, 1]} : vector<8x2xi32> to vector<1x2xi32>
    %c0_i32_128 = arith.constant 0 : i32
    %710 = vector.broadcast %c0_i32_128 : i32 to vector<1x2xi32>
    %711 = arith.select %708, %709, %710 : vector<1x2xi1>, vector<1x2xi32>
    %712 = arith.addi %706, %711 : vector<1x2xi32>
    %c7_i32_129 = arith.constant 7 : i32
    %713 = vector.broadcast %c7_i32_129 : i32 to vector<1x2xi32>
    %714 = arith.cmpi eq, %664, %713 : vector<1x2xi32>
    %715 = vector.extract_strided_slice %671 {offsets = [7, 0], sizes = [1, 2], strides = [1, 1]} : vector<8x2xi32> to vector<1x2xi32>
    %c0_i32_130 = arith.constant 0 : i32
    %716 = vector.broadcast %c0_i32_130 : i32 to vector<1x2xi32>
    %717 = arith.select %714, %715, %716 : vector<1x2xi1>, vector<1x2xi32>
    %718 = arith.addi %712, %717 : vector<1x2xi32>
    %719 = vector.broadcast %668 : i32 to vector<1x2xi32>
    %720 = arith.cmpi eq, %4, %719 : vector<1x2xi32>
    %721 = arith.select %720, %664, %718 : vector<1x2xi1>, vector<1x2xi32>
    %722 = arith.index_cast %668 : i32 to index
    %c0_131 = arith.constant 0 : index
    %c0_132 = arith.constant 0 : index
    %723 = vector.load %arg5[%722, %c0_131, %c0_132] : memref<8x1x2xi32, #tpu.memory_space<vmem>>, vector<1x1x2xi32>
    %724 = vector.shape_cast %723 : vector<1x1x2xi32> to vector<1x2xi32>
    %725 = vector.shape_cast %721 : vector<1x2xi32> to vector<1x1x2xi32>
    tpu.vector_store %arg5[%722, %c0_131, %c0_132], %725 {strides = array<i32>} : memref<8x1x2xi32, #tpu.memory_space<vmem>>, vector<1x1x2xi32>,
    %c1_i32_133 = arith.constant 1 : i32
    %c6_i32_134 = arith.constant 6 : i32
    %726 = arith.subi %c6_i32_134, %c1_i32_133 : i32
    %727 = arith.index_cast %726 : i32 to index
    %c0_135 = arith.constant 0 : index
    %c0_136 = arith.constant 0 : index
    %728 = vector.load %arg6[%727, %c0_135, %c0_136] : memref<8x8x2xi32, #tpu.memory_space<vmem>>, vector<1x8x2xi32>
    %729 = vector.shape_cast %728 : vector<1x8x2xi32> to vector<8x2xi32>
    %c0_i32_137 = arith.constant 0 : i32
    %730 = vector.broadcast %c0_i32_137 : i32 to vector<1x2xi32>
    %731 = arith.cmpi eq, %721, %730 : vector<1x2xi32>
    %732 = vector.extract_strided_slice %729 {offsets = [0, 0], sizes = [1, 2], strides = [1, 1]} : vector<8x2xi32> to vector<1x2xi32>
    %c0_i32_138 = arith.constant 0 : i32
    %733 = vector.broadcast %c0_i32_138 : i32 to vector<1x2xi32>
    %734 = arith.select %731, %732, %733 : vector<1x2xi1>, vector<1x2xi32>
    %c1_i32_139 = arith.constant 1 : i32
    %735 = vector.broadcast %c1_i32_139 : i32 to vector<1x2xi32>
    %736 = arith.cmpi eq, %721, %735 : vector<1x2xi32>
    %737 = vector.extract_strided_slice %729 {offsets = [1, 0], sizes = [1, 2], strides = [1, 1]} : vector<8x2xi32> to vector<1x2xi32>
    %c0_i32_140 = arith.constant 0 : i32
    %738 = vector.broadcast %c0_i32_140 : i32 to vector<1x2xi32>
    %739 = arith.select %736, %737, %738 : vector<1x2xi1>, vector<1x2xi32>
    %740 = arith.addi %734, %739 : vector<1x2xi32>
    %c2_i32_141 = arith.constant 2 : i32
    %741 = vector.broadcast %c2_i32_141 : i32 to vector<1x2xi32>
    %742 = arith.cmpi eq, %721, %741 : vector<1x2xi32>
    %743 = vector.extract_strided_slice %729 {offsets = [2, 0], sizes = [1, 2], strides = [1, 1]} : vector<8x2xi32> to vector<1x2xi32>
    %c0_i32_142 = arith.constant 0 : i32
    %744 = vector.broadcast %c0_i32_142 : i32 to vector<1x2xi32>
    %745 = arith.select %742, %743, %744 : vector<1x2xi1>, vector<1x2xi32>
    %746 = arith.addi %740, %745 : vector<1x2xi32>
    %c3_i32_143 = arith.constant 3 : i32
    %747 = vector.broadcast %c3_i32_143 : i32 to vector<1x2xi32>
    %748 = arith.cmpi eq, %721, %747 : vector<1x2xi32>
    %749 = vector.extract_strided_slice %729 {offsets = [3, 0], sizes = [1, 2], strides = [1, 1]} : vector<8x2xi32> to vector<1x2xi32>
    %c0_i32_144 = arith.constant 0 : i32
    %750 = vector.broadcast %c0_i32_144 : i32 to vector<1x2xi32>
    %751 = arith.select %748, %749, %750 : vector<1x2xi1>, vector<1x2xi32>
    %752 = arith.addi %746, %751 : vector<1x2xi32>
    %c4_i32_145 = arith.constant 4 : i32
    %753 = vector.broadcast %c4_i32_145 : i32 to vector<1x2xi32>
    %754 = arith.cmpi eq, %721, %753 : vector<1x2xi32>
    %755 = vector.extract_strided_slice %729 {offsets = [4, 0], sizes = [1, 2], strides = [1, 1]} : vector<8x2xi32> to vector<1x2xi32>
    %c0_i32_146 = arith.constant 0 : i32
    %756 = vector.broadcast %c0_i32_146 : i32 to vector<1x2xi32>
    %757 = arith.select %754, %755, %756 : vector<1x2xi1>, vector<1x2xi32>
    %758 = arith.addi %752, %757 : vector<1x2xi32>
    %c5_i32_147 = arith.constant 5 : i32
    %759 = vector.broadcast %c5_i32_147 : i32 to vector<1x2xi32>
    %760 = arith.cmpi eq, %721, %759 : vector<1x2xi32>
    %761 = vector.extract_strided_slice %729 {offsets = [5, 0], sizes = [1, 2], strides = [1, 1]} : vector<8x2xi32> to vector<1x2xi32>
    %c0_i32_148 = arith.constant 0 : i32
    %762 = vector.broadcast %c0_i32_148 : i32 to vector<1x2xi32>
    %763 = arith.select %760, %761, %762 : vector<1x2xi1>, vector<1x2xi32>
    %764 = arith.addi %758, %763 : vector<1x2xi32>
    %c6_i32_149 = arith.constant 6 : i32
    %765 = vector.broadcast %c6_i32_149 : i32 to vector<1x2xi32>
    %766 = arith.cmpi eq, %721, %765 : vector<1x2xi32>
    %767 = vector.extract_strided_slice %729 {offsets = [6, 0], sizes = [1, 2], strides = [1, 1]} : vector<8x2xi32> to vector<1x2xi32>
    %c0_i32_150 = arith.constant 0 : i32
    %768 = vector.broadcast %c0_i32_150 : i32 to vector<1x2xi32>
    %769 = arith.select %766, %767, %768 : vector<1x2xi1>, vector<1x2xi32>
    %770 = arith.addi %764, %769 : vector<1x2xi32>
    %c7_i32_151 = arith.constant 7 : i32
    %771 = vector.broadcast %c7_i32_151 : i32 to vector<1x2xi32>
    %772 = arith.cmpi eq, %721, %771 : vector<1x2xi32>
    %773 = vector.extract_strided_slice %729 {offsets = [7, 0], sizes = [1, 2], strides = [1, 1]} : vector<8x2xi32> to vector<1x2xi32>
    %c0_i32_152 = arith.constant 0 : i32
    %774 = vector.broadcast %c0_i32_152 : i32 to vector<1x2xi32>
    %775 = arith.select %772, %773, %774 : vector<1x2xi1>, vector<1x2xi32>
    %776 = arith.addi %770, %775 : vector<1x2xi32>
    %777 = vector.broadcast %726 : i32 to vector<1x2xi32>
    %778 = arith.cmpi eq, %4, %777 : vector<1x2xi32>
    %779 = arith.select %778, %664, %776 : vector<1x2xi1>, vector<1x2xi32>
    %780 = arith.index_cast %726 : i32 to index
    %c0_153 = arith.constant 0 : index
    %c0_154 = arith.constant 0 : index
    %781 = vector.load %arg5[%780, %c0_153, %c0_154] : memref<8x1x2xi32, #tpu.memory_space<vmem>>, vector<1x1x2xi32>
    %782 = vector.shape_cast %781 : vector<1x1x2xi32> to vector<1x2xi32>
    %783 = vector.shape_cast %779 : vector<1x2xi32> to vector<1x1x2xi32>
    tpu.vector_store %arg5[%780, %c0_153, %c0_154], %783 {strides = array<i32>} : memref<8x1x2xi32, #tpu.memory_space<vmem>>, vector<1x1x2xi32>,
    %c2_i32_155 = arith.constant 2 : i32
    %c6_i32_156 = arith.constant 6 : i32
    %784 = arith.subi %c6_i32_156, %c2_i32_155 : i32
    %785 = arith.index_cast %784 : i32 to index
    %c0_157 = arith.constant 0 : index
    %c0_158 = arith.constant 0 : index
    %786 = vector.load %arg6[%785, %c0_157, %c0_158] : memref<8x8x2xi32, #tpu.memory_space<vmem>>, vector<1x8x2xi32>
    %787 = vector.shape_cast %786 : vector<1x8x2xi32> to vector<8x2xi32>
    %c0_i32_159 = arith.constant 0 : i32
    %788 = vector.broadcast %c0_i32_159 : i32 to vector<1x2xi32>
    %789 = arith.cmpi eq, %779, %788 : vector<1x2xi32>
    %790 = vector.extract_strided_slice %787 {offsets = [0, 0], sizes = [1, 2], strides = [1, 1]} : vector<8x2xi32> to vector<1x2xi32>
    %c0_i32_160 = arith.constant 0 : i32
    %791 = vector.broadcast %c0_i32_160 : i32 to vector<1x2xi32>
    %792 = arith.select %789, %790, %791 : vector<1x2xi1>, vector<1x2xi32>
    %c1_i32_161 = arith.constant 1 : i32
    %793 = vector.broadcast %c1_i32_161 : i32 to vector<1x2xi32>
    %794 = arith.cmpi eq, %779, %793 : vector<1x2xi32>
    %795 = vector.extract_strided_slice %787 {offsets = [1, 0], sizes = [1, 2], strides = [1, 1]} : vector<8x2xi32> to vector<1x2xi32>
    %c0_i32_162 = arith.constant 0 : i32
    %796 = vector.broadcast %c0_i32_162 : i32 to vector<1x2xi32>
    %797 = arith.select %794, %795, %796 : vector<1x2xi1>, vector<1x2xi32>
    %798 = arith.addi %792, %797 : vector<1x2xi32>
    %c2_i32_163 = arith.constant 2 : i32
    %799 = vector.broadcast %c2_i32_163 : i32 to vector<1x2xi32>
    %800 = arith.cmpi eq, %779, %799 : vector<1x2xi32>
    %801 = vector.extract_strided_slice %787 {offsets = [2, 0], sizes = [1, 2], strides = [1, 1]} : vector<8x2xi32> to vector<1x2xi32>
    %c0_i32_164 = arith.constant 0 : i32
    %802 = vector.broadcast %c0_i32_164 : i32 to vector<1x2xi32>
    %803 = arith.select %800, %801, %802 : vector<1x2xi1>, vector<1x2xi32>
    %804 = arith.addi %798, %803 : vector<1x2xi32>
    %c3_i32_165 = arith.constant 3 : i32
    %805 = vector.broadcast %c3_i32_165 : i32 to vector<1x2xi32>
    %806 = arith.cmpi eq, %779, %805 : vector<1x2xi32>
    %807 = vector.extract_strided_slice %787 {offsets = [3, 0], sizes = [1, 2], strides = [1, 1]} : vector<8x2xi32> to vector<1x2xi32>
    %c0_i32_166 = arith.constant 0 : i32
    %808 = vector.broadcast %c0_i32_166 : i32 to vector<1x2xi32>
    %809 = arith.select %806, %807, %808 : vector<1x2xi1>, vector<1x2xi32>
    %810 = arith.addi %804, %809 : vector<1x2xi32>
    %c4_i32_167 = arith.constant 4 : i32
    %811 = vector.broadcast %c4_i32_167 : i32 to vector<1x2xi32>
    %812 = arith.cmpi eq, %779, %811 : vector<1x2xi32>
    %813 = vector.extract_strided_slice %787 {offsets = [4, 0], sizes = [1, 2], strides = [1, 1]} : vector<8x2xi32> to vector<1x2xi32>
    %c0_i32_168 = arith.constant 0 : i32
    %814 = vector.broadcast %c0_i32_168 : i32 to vector<1x2xi32>
    %815 = arith.select %812, %813, %814 : vector<1x2xi1>, vector<1x2xi32>
    %816 = arith.addi %810, %815 : vector<1x2xi32>
    %c5_i32_169 = arith.constant 5 : i32
    %817 = vector.broadcast %c5_i32_169 : i32 to vector<1x2xi32>
    %818 = arith.cmpi eq, %779, %817 : vector<1x2xi32>
    %819 = vector.extract_strided_slice %787 {offsets = [5, 0], sizes = [1, 2], strides = [1, 1]} : vector<8x2xi32> to vector<1x2xi32>
    %c0_i32_170 = arith.constant 0 : i32
    %820 = vector.broadcast %c0_i32_170 : i32 to vector<1x2xi32>
    %821 = arith.select %818, %819, %820 : vector<1x2xi1>, vector<1x2xi32>
    %822 = arith.addi %816, %821 : vector<1x2xi32>
    %c6_i32_171 = arith.constant 6 : i32
    %823 = vector.broadcast %c6_i32_171 : i32 to vector<1x2xi32>
    %824 = arith.cmpi eq, %779, %823 : vector<1x2xi32>
    %825 = vector.extract_strided_slice %787 {offsets = [6, 0], sizes = [1, 2], strides = [1, 1]} : vector<8x2xi32> to vector<1x2xi32>
    %c0_i32_172 = arith.constant 0 : i32
    %826 = vector.broadcast %c0_i32_172 : i32 to vector<1x2xi32>
    %827 = arith.select %824, %825, %826 : vector<1x2xi1>, vector<1x2xi32>
    %828 = arith.addi %822, %827 : vector<1x2xi32>
    %c7_i32_173 = arith.constant 7 : i32
    %829 = vector.broadcast %c7_i32_173 : i32 to vector<1x2xi32>
    %830 = arith.cmpi eq, %779, %829 : vector<1x2xi32>
    %831 = vector.extract_strided_slice %787 {offsets = [7, 0], sizes = [1, 2], strides = [1, 1]} : vector<8x2xi32> to vector<1x2xi32>
    %c0_i32_174 = arith.constant 0 : i32
    %832 = vector.broadcast %c0_i32_174 : i32 to vector<1x2xi32>
    %833 = arith.select %830, %831, %832 : vector<1x2xi1>, vector<1x2xi32>
    %834 = arith.addi %828, %833 : vector<1x2xi32>
    %835 = vector.broadcast %784 : i32 to vector<1x2xi32>
    %836 = arith.cmpi eq, %4, %835 : vector<1x2xi32>
    %837 = arith.select %836, %664, %834 : vector<1x2xi1>, vector<1x2xi32>
    %838 = arith.index_cast %784 : i32 to index
    %c0_175 = arith.constant 0 : index
    %c0_176 = arith.constant 0 : index
    %839 = vector.load %arg5[%838, %c0_175, %c0_176] : memref<8x1x2xi32, #tpu.memory_space<vmem>>, vector<1x1x2xi32>
    %840 = vector.shape_cast %839 : vector<1x1x2xi32> to vector<1x2xi32>
    %841 = vector.shape_cast %837 : vector<1x2xi32> to vector<1x1x2xi32>
    tpu.vector_store %arg5[%838, %c0_175, %c0_176], %841 {strides = array<i32>} : memref<8x1x2xi32, #tpu.memory_space<vmem>>, vector<1x1x2xi32>,
    %c3_i32_177 = arith.constant 3 : i32
    %c6_i32_178 = arith.constant 6 : i32
    %842 = arith.subi %c6_i32_178, %c3_i32_177 : i32
    %843 = arith.index_cast %842 : i32 to index
    %c0_179 = arith.constant 0 : index
    %c0_180 = arith.constant 0 : index
    %844 = vector.load %arg6[%843, %c0_179, %c0_180] : memref<8x8x2xi32, #tpu.memory_space<vmem>>, vector<1x8x2xi32>
    %845 = vector.shape_cast %844 : vector<1x8x2xi32> to vector<8x2xi32>
    %c0_i32_181 = arith.constant 0 : i32
    %846 = vector.broadcast %c0_i32_181 : i32 to vector<1x2xi32>
    %847 = arith.cmpi eq, %837, %846 : vector<1x2xi32>
    %848 = vector.extract_strided_slice %845 {offsets = [0, 0], sizes = [1, 2], strides = [1, 1]} : vector<8x2xi32> to vector<1x2xi32>
    %c0_i32_182 = arith.constant 0 : i32
    %849 = vector.broadcast %c0_i32_182 : i32 to vector<1x2xi32>
    %850 = arith.select %847, %848, %849 : vector<1x2xi1>, vector<1x2xi32>
    %c1_i32_183 = arith.constant 1 : i32
    %851 = vector.broadcast %c1_i32_183 : i32 to vector<1x2xi32>
    %852 = arith.cmpi eq, %837, %851 : vector<1x2xi32>
    %853 = vector.extract_strided_slice %845 {offsets = [1, 0], sizes = [1, 2], strides = [1, 1]} : vector<8x2xi32> to vector<1x2xi32>
    %c0_i32_184 = arith.constant 0 : i32
    %854 = vector.broadcast %c0_i32_184 : i32 to vector<1x2xi32>
    %855 = arith.select %852, %853, %854 : vector<1x2xi1>, vector<1x2xi32>
    %856 = arith.addi %850, %855 : vector<1x2xi32>
    %c2_i32_185 = arith.constant 2 : i32
    %857 = vector.broadcast %c2_i32_185 : i32 to vector<1x2xi32>
    %858 = arith.cmpi eq, %837, %857 : vector<1x2xi32>
    %859 = vector.extract_strided_slice %845 {offsets = [2, 0], sizes = [1, 2], strides = [1, 1]} : vector<8x2xi32> to vector<1x2xi32>
    %c0_i32_186 = arith.constant 0 : i32
    %860 = vector.broadcast %c0_i32_186 : i32 to vector<1x2xi32>
    %861 = arith.select %858, %859, %860 : vector<1x2xi1>, vector<1x2xi32>
    %862 = arith.addi %856, %861 : vector<1x2xi32>
    %c3_i32_187 = arith.constant 3 : i32
    %863 = vector.broadcast %c3_i32_187 : i32 to vector<1x2xi32>
    %864 = arith.cmpi eq, %837, %863 : vector<1x2xi32>
    %865 = vector.extract_strided_slice %845 {offsets = [3, 0], sizes = [1, 2], strides = [1, 1]} : vector<8x2xi32> to vector<1x2xi32>
    %c0_i32_188 = arith.constant 0 : i32
    %866 = vector.broadcast %c0_i32_188 : i32 to vector<1x2xi32>
    %867 = arith.select %864, %865, %866 : vector<1x2xi1>, vector<1x2xi32>
    %868 = arith.addi %862, %867 : vector<1x2xi32>
    %c4_i32_189 = arith.constant 4 : i32
    %869 = vector.broadcast %c4_i32_189 : i32 to vector<1x2xi32>
    %870 = arith.cmpi eq, %837, %869 : vector<1x2xi32>
    %871 = vector.extract_strided_slice %845 {offsets = [4, 0], sizes = [1, 2], strides = [1, 1]} : vector<8x2xi32> to vector<1x2xi32>
    %c0_i32_190 = arith.constant 0 : i32
    %872 = vector.broadcast %c0_i32_190 : i32 to vector<1x2xi32>
    %873 = arith.select %870, %871, %872 : vector<1x2xi1>, vector<1x2xi32>
    %874 = arith.addi %868, %873 : vector<1x2xi32>
    %c5_i32_191 = arith.constant 5 : i32
    %875 = vector.broadcast %c5_i32_191 : i32 to vector<1x2xi32>
    %876 = arith.cmpi eq, %837, %875 : vector<1x2xi32>
    %877 = vector.extract_strided_slice %845 {offsets = [5, 0], sizes = [1, 2], strides = [1, 1]} : vector<8x2xi32> to vector<1x2xi32>
    %c0_i32_192 = arith.constant 0 : i32
    %878 = vector.broadcast %c0_i32_192 : i32 to vector<1x2xi32>
    %879 = arith.select %876, %877, %878 : vector<1x2xi1>, vector<1x2xi32>
    %880 = arith.addi %874, %879 : vector<1x2xi32>
    %c6_i32_193 = arith.constant 6 : i32
    %881 = vector.broadcast %c6_i32_193 : i32 to vector<1x2xi32>
    %882 = arith.cmpi eq, %837, %881 : vector<1x2xi32>
    %883 = vector.extract_strided_slice %845 {offsets = [6, 0], sizes = [1, 2], strides = [1, 1]} : vector<8x2xi32> to vector<1x2xi32>
    %c0_i32_194 = arith.constant 0 : i32
    %884 = vector.broadcast %c0_i32_194 : i32 to vector<1x2xi32>
    %885 = arith.select %882, %883, %884 : vector<1x2xi1>, vector<1x2xi32>
    %886 = arith.addi %880, %885 : vector<1x2xi32>
    %c7_i32_195 = arith.constant 7 : i32
    %887 = vector.broadcast %c7_i32_195 : i32 to vector<1x2xi32>
    %888 = arith.cmpi eq, %837, %887 : vector<1x2xi32>
    %889 = vector.extract_strided_slice %845 {offsets = [7, 0], sizes = [1, 2], strides = [1, 1]} : vector<8x2xi32> to vector<1x2xi32>
    %c0_i32_196 = arith.constant 0 : i32
    %890 = vector.broadcast %c0_i32_196 : i32 to vector<1x2xi32>
    %891 = arith.select %888, %889, %890 : vector<1x2xi1>, vector<1x2xi32>
    %892 = arith.addi %886, %891 : vector<1x2xi32>
    %893 = vector.broadcast %842 : i32 to vector<1x2xi32>
    %894 = arith.cmpi eq, %4, %893 : vector<1x2xi32>
    %895 = arith.select %894, %664, %892 : vector<1x2xi1>, vector<1x2xi32>
    %896 = arith.index_cast %842 : i32 to index
    %c0_197 = arith.constant 0 : index
    %c0_198 = arith.constant 0 : index
    %897 = vector.load %arg5[%896, %c0_197, %c0_198] : memref<8x1x2xi32, #tpu.memory_space<vmem>>, vector<1x1x2xi32>
    %898 = vector.shape_cast %897 : vector<1x1x2xi32> to vector<1x2xi32>
    %899 = vector.shape_cast %895 : vector<1x2xi32> to vector<1x1x2xi32>
    tpu.vector_store %arg5[%896, %c0_197, %c0_198], %899 {strides = array<i32>} : memref<8x1x2xi32, #tpu.memory_space<vmem>>, vector<1x1x2xi32>,
    %c4_i32_199 = arith.constant 4 : i32
    %c6_i32_200 = arith.constant 6 : i32
    %900 = arith.subi %c6_i32_200, %c4_i32_199 : i32
    %901 = arith.index_cast %900 : i32 to index
    %c0_201 = arith.constant 0 : index
    %c0_202 = arith.constant 0 : index
    %902 = vector.load %arg6[%901, %c0_201, %c0_202] : memref<8x8x2xi32, #tpu.memory_space<vmem>>, vector<1x8x2xi32>
    %903 = vector.shape_cast %902 : vector<1x8x2xi32> to vector<8x2xi32>
    %c0_i32_203 = arith.constant 0 : i32
    %904 = vector.broadcast %c0_i32_203 : i32 to vector<1x2xi32>
    %905 = arith.cmpi eq, %895, %904 : vector<1x2xi32>
    %906 = vector.extract_strided_slice %903 {offsets = [0, 0], sizes = [1, 2], strides = [1, 1]} : vector<8x2xi32> to vector<1x2xi32>
    %c0_i32_204 = arith.constant 0 : i32
    %907 = vector.broadcast %c0_i32_204 : i32 to vector<1x2xi32>
    %908 = arith.select %905, %906, %907 : vector<1x2xi1>, vector<1x2xi32>
    %c1_i32_205 = arith.constant 1 : i32
    %909 = vector.broadcast %c1_i32_205 : i32 to vector<1x2xi32>
    %910 = arith.cmpi eq, %895, %909 : vector<1x2xi32>
    %911 = vector.extract_strided_slice %903 {offsets = [1, 0], sizes = [1, 2], strides = [1, 1]} : vector<8x2xi32> to vector<1x2xi32>
    %c0_i32_206 = arith.constant 0 : i32
    %912 = vector.broadcast %c0_i32_206 : i32 to vector<1x2xi32>
    %913 = arith.select %910, %911, %912 : vector<1x2xi1>, vector<1x2xi32>
    %914 = arith.addi %908, %913 : vector<1x2xi32>
    %c2_i32_207 = arith.constant 2 : i32
    %915 = vector.broadcast %c2_i32_207 : i32 to vector<1x2xi32>
    %916 = arith.cmpi eq, %895, %915 : vector<1x2xi32>
    %917 = vector.extract_strided_slice %903 {offsets = [2, 0], sizes = [1, 2], strides = [1, 1]} : vector<8x2xi32> to vector<1x2xi32>
    %c0_i32_208 = arith.constant 0 : i32
    %918 = vector.broadcast %c0_i32_208 : i32 to vector<1x2xi32>
    %919 = arith.select %916, %917, %918 : vector<1x2xi1>, vector<1x2xi32>
    %920 = arith.addi %914, %919 : vector<1x2xi32>
    %c3_i32_209 = arith.constant 3 : i32
    %921 = vector.broadcast %c3_i32_209 : i32 to vector<1x2xi32>
    %922 = arith.cmpi eq, %895, %921 : vector<1x2xi32>
    %923 = vector.extract_strided_slice %903 {offsets = [3, 0], sizes = [1, 2], strides = [1, 1]} : vector<8x2xi32> to vector<1x2xi32>
    %c0_i32_210 = arith.constant 0 : i32
    %924 = vector.broadcast %c0_i32_210 : i32 to vector<1x2xi32>
    %925 = arith.select %922, %923, %924 : vector<1x2xi1>, vector<1x2xi32>
    %926 = arith.addi %920, %925 : vector<1x2xi32>
    %c4_i32_211 = arith.constant 4 : i32
    %927 = vector.broadcast %c4_i32_211 : i32 to vector<1x2xi32>
    %928 = arith.cmpi eq, %895, %927 : vector<1x2xi32>
    %929 = vector.extract_strided_slice %903 {offsets = [4, 0], sizes = [1, 2], strides = [1, 1]} : vector<8x2xi32> to vector<1x2xi32>
    %c0_i32_212 = arith.constant 0 : i32
    %930 = vector.broadcast %c0_i32_212 : i32 to vector<1x2xi32>
    %931 = arith.select %928, %929, %930 : vector<1x2xi1>, vector<1x2xi32>
    %932 = arith.addi %926, %931 : vector<1x2xi32>
    %c5_i32_213 = arith.constant 5 : i32
    %933 = vector.broadcast %c5_i32_213 : i32 to vector<1x2xi32>
    %934 = arith.cmpi eq, %895, %933 : vector<1x2xi32>
    %935 = vector.extract_strided_slice %903 {offsets = [5, 0], sizes = [1, 2], strides = [1, 1]} : vector<8x2xi32> to vector<1x2xi32>
    %c0_i32_214 = arith.constant 0 : i32
    %936 = vector.broadcast %c0_i32_214 : i32 to vector<1x2xi32>
    %937 = arith.select %934, %935, %936 : vector<1x2xi1>, vector<1x2xi32>
    %938 = arith.addi %932, %937 : vector<1x2xi32>
    %c6_i32_215 = arith.constant 6 : i32
    %939 = vector.broadcast %c6_i32_215 : i32 to vector<1x2xi32>
    %940 = arith.cmpi eq, %895, %939 : vector<1x2xi32>
    %941 = vector.extract_strided_slice %903 {offsets = [6, 0], sizes = [1, 2], strides = [1, 1]} : vector<8x2xi32> to vector<1x2xi32>
    %c0_i32_216 = arith.constant 0 : i32
    %942 = vector.broadcast %c0_i32_216 : i32 to vector<1x2xi32>
    %943 = arith.select %940, %941, %942 : vector<1x2xi1>, vector<1x2xi32>
    %944 = arith.addi %938, %943 : vector<1x2xi32>
    %c7_i32_217 = arith.constant 7 : i32
    %945 = vector.broadcast %c7_i32_217 : i32 to vector<1x2xi32>
    %946 = arith.cmpi eq, %895, %945 : vector<1x2xi32>
    %947 = vector.extract_strided_slice %903 {offsets = [7, 0], sizes = [1, 2], strides = [1, 1]} : vector<8x2xi32> to vector<1x2xi32>
    %c0_i32_218 = arith.constant 0 : i32
    %948 = vector.broadcast %c0_i32_218 : i32 to vector<1x2xi32>
    %949 = arith.select %946, %947, %948 : vector<1x2xi1>, vector<1x2xi32>
    %950 = arith.addi %944, %949 : vector<1x2xi32>
    %951 = vector.broadcast %900 : i32 to vector<1x2xi32>
    %952 = arith.cmpi eq, %4, %951 : vector<1x2xi32>
    %953 = arith.select %952, %664, %950 : vector<1x2xi1>, vector<1x2xi32>
    %954 = arith.index_cast %900 : i32 to index
    %c0_219 = arith.constant 0 : index
    %c0_220 = arith.constant 0 : index
    %955 = vector.load %arg5[%954, %c0_219, %c0_220] : memref<8x1x2xi32, #tpu.memory_space<vmem>>, vector<1x1x2xi32>
    %956 = vector.shape_cast %955 : vector<1x1x2xi32> to vector<1x2xi32>
    %957 = vector.shape_cast %953 : vector<1x2xi32> to vector<1x1x2xi32>
    tpu.vector_store %arg5[%954, %c0_219, %c0_220], %957 {strides = array<i32>} : memref<8x1x2xi32, #tpu.memory_space<vmem>>, vector<1x1x2xi32>,
    %c5_i32_221 = arith.constant 5 : i32
    %c6_i32_222 = arith.constant 6 : i32
    %958 = arith.subi %c6_i32_222, %c5_i32_221 : i32
    %959 = arith.index_cast %958 : i32 to index
    %c0_223 = arith.constant 0 : index
    %c0_224 = arith.constant 0 : index
    %960 = vector.load %arg6[%959, %c0_223, %c0_224] : memref<8x8x2xi32, #tpu.memory_space<vmem>>, vector<1x8x2xi32>
    %961 = vector.shape_cast %960 : vector<1x8x2xi32> to vector<8x2xi32>
    %c0_i32_225 = arith.constant 0 : i32
    %962 = vector.broadcast %c0_i32_225 : i32 to vector<1x2xi32>
    %963 = arith.cmpi eq, %953, %962 : vector<1x2xi32>
    %964 = vector.extract_strided_slice %961 {offsets = [0, 0], sizes = [1, 2], strides = [1, 1]} : vector<8x2xi32> to vector<1x2xi32>
    %c0_i32_226 = arith.constant 0 : i32
    %965 = vector.broadcast %c0_i32_226 : i32 to vector<1x2xi32>
    %966 = arith.select %963, %964, %965 : vector<1x2xi1>, vector<1x2xi32>
    %c1_i32_227 = arith.constant 1 : i32
    %967 = vector.broadcast %c1_i32_227 : i32 to vector<1x2xi32>
    %968 = arith.cmpi eq, %953, %967 : vector<1x2xi32>
    %969 = vector.extract_strided_slice %961 {offsets = [1, 0], sizes = [1, 2], strides = [1, 1]} : vector<8x2xi32> to vector<1x2xi32>
    %c0_i32_228 = arith.constant 0 : i32
    %970 = vector.broadcast %c0_i32_228 : i32 to vector<1x2xi32>
    %971 = arith.select %968, %969, %970 : vector<1x2xi1>, vector<1x2xi32>
    %972 = arith.addi %966, %971 : vector<1x2xi32>
    %c2_i32_229 = arith.constant 2 : i32
    %973 = vector.broadcast %c2_i32_229 : i32 to vector<1x2xi32>
    %974 = arith.cmpi eq, %953, %973 : vector<1x2xi32>
    %975 = vector.extract_strided_slice %961 {offsets = [2, 0], sizes = [1, 2], strides = [1, 1]} : vector<8x2xi32> to vector<1x2xi32>
    %c0_i32_230 = arith.constant 0 : i32
    %976 = vector.broadcast %c0_i32_230 : i32 to vector<1x2xi32>
    %977 = arith.select %974, %975, %976 : vector<1x2xi1>, vector<1x2xi32>
    %978 = arith.addi %972, %977 : vector<1x2xi32>
    %c3_i32_231 = arith.constant 3 : i32
    %979 = vector.broadcast %c3_i32_231 : i32 to vector<1x2xi32>
    %980 = arith.cmpi eq, %953, %979 : vector<1x2xi32>
    %981 = vector.extract_strided_slice %961 {offsets = [3, 0], sizes = [1, 2], strides = [1, 1]} : vector<8x2xi32> to vector<1x2xi32>
    %c0_i32_232 = arith.constant 0 : i32
    %982 = vector.broadcast %c0_i32_232 : i32 to vector<1x2xi32>
    %983 = arith.select %980, %981, %982 : vector<1x2xi1>, vector<1x2xi32>
    %984 = arith.addi %978, %983 : vector<1x2xi32>
    %c4_i32_233 = arith.constant 4 : i32
    %985 = vector.broadcast %c4_i32_233 : i32 to vector<1x2xi32>
    %986 = arith.cmpi eq, %953, %985 : vector<1x2xi32>
    %987 = vector.extract_strided_slice %961 {offsets = [4, 0], sizes = [1, 2], strides = [1, 1]} : vector<8x2xi32> to vector<1x2xi32>
    %c0_i32_234 = arith.constant 0 : i32
    %988 = vector.broadcast %c0_i32_234 : i32 to vector<1x2xi32>
    %989 = arith.select %986, %987, %988 : vector<1x2xi1>, vector<1x2xi32>
    %990 = arith.addi %984, %989 : vector<1x2xi32>
    %c5_i32_235 = arith.constant 5 : i32
    %991 = vector.broadcast %c5_i32_235 : i32 to vector<1x2xi32>
    %992 = arith.cmpi eq, %953, %991 : vector<1x2xi32>
    %993 = vector.extract_strided_slice %961 {offsets = [5, 0], sizes = [1, 2], strides = [1, 1]} : vector<8x2xi32> to vector<1x2xi32>
    %c0_i32_236 = arith.constant 0 : i32
    %994 = vector.broadcast %c0_i32_236 : i32 to vector<1x2xi32>
    %995 = arith.select %992, %993, %994 : vector<1x2xi1>, vector<1x2xi32>
    %996 = arith.addi %990, %995 : vector<1x2xi32>
    %c6_i32_237 = arith.constant 6 : i32
    %997 = vector.broadcast %c6_i32_237 : i32 to vector<1x2xi32>
    %998 = arith.cmpi eq, %953, %997 : vector<1x2xi32>
    %999 = vector.extract_strided_slice %961 {offsets = [6, 0], sizes = [1, 2], strides = [1, 1]} : vector<8x2xi32> to vector<1x2xi32>
    %c0_i32_238 = arith.constant 0 : i32
    %1000 = vector.broadcast %c0_i32_238 : i32 to vector<1x2xi32>
    %1001 = arith.select %998, %999, %1000 : vector<1x2xi1>, vector<1x2xi32>
    %1002 = arith.addi %996, %1001 : vector<1x2xi32>
    %c7_i32_239 = arith.constant 7 : i32
    %1003 = vector.broadcast %c7_i32_239 : i32 to vector<1x2xi32>
    %1004 = arith.cmpi eq, %953, %1003 : vector<1x2xi32>
    %1005 = vector.extract_strided_slice %961 {offsets = [7, 0], sizes = [1, 2], strides = [1, 1]} : vector<8x2xi32> to vector<1x2xi32>
    %c0_i32_240 = arith.constant 0 : i32
    %1006 = vector.broadcast %c0_i32_240 : i32 to vector<1x2xi32>
    %1007 = arith.select %1004, %1005, %1006 : vector<1x2xi1>, vector<1x2xi32>
    %1008 = arith.addi %1002, %1007 : vector<1x2xi32>
    %1009 = vector.broadcast %958 : i32 to vector<1x2xi32>
    %1010 = arith.cmpi eq, %4, %1009 : vector<1x2xi32>
    %1011 = arith.select %1010, %664, %1008 : vector<1x2xi1>, vector<1x2xi32>
    %1012 = arith.index_cast %958 : i32 to index
    %c0_241 = arith.constant 0 : index
    %c0_242 = arith.constant 0 : index
    %1013 = vector.load %arg5[%1012, %c0_241, %c0_242] : memref<8x1x2xi32, #tpu.memory_space<vmem>>, vector<1x1x2xi32>
    %1014 = vector.shape_cast %1013 : vector<1x1x2xi32> to vector<1x2xi32>
    %1015 = vector.shape_cast %1011 : vector<1x2xi32> to vector<1x1x2xi32>
    tpu.vector_store %arg5[%1012, %c0_241, %c0_242], %1015 {strides = array<i32>} : memref<8x1x2xi32, #tpu.memory_space<vmem>>, vector<1x1x2xi32>,
    %c6_i32_243 = arith.constant 6 : i32
    %c6_i32_244 = arith.constant 6 : i32
    %1016 = arith.subi %c6_i32_244, %c6_i32_243 : i32
    %1017 = arith.index_cast %1016 : i32 to index
    %c0_245 = arith.constant 0 : index
    %c0_246 = arith.constant 0 : index
    %1018 = vector.load %arg6[%1017, %c0_245, %c0_246] : memref<8x8x2xi32, #tpu.memory_space<vmem>>, vector<1x8x2xi32>
    %1019 = vector.shape_cast %1018 : vector<1x8x2xi32> to vector<8x2xi32>
    %c0_i32_247 = arith.constant 0 : i32
    %1020 = vector.broadcast %c0_i32_247 : i32 to vector<1x2xi32>
    %1021 = arith.cmpi eq, %1011, %1020 : vector<1x2xi32>
    %1022 = vector.extract_strided_slice %1019 {offsets = [0, 0], sizes = [1, 2], strides = [1, 1]} : vector<8x2xi32> to vector<1x2xi32>
    %c0_i32_248 = arith.constant 0 : i32
    %1023 = vector.broadcast %c0_i32_248 : i32 to vector<1x2xi32>
    %1024 = arith.select %1021, %1022, %1023 : vector<1x2xi1>, vector<1x2xi32>
    %c1_i32_249 = arith.constant 1 : i32
    %1025 = vector.broadcast %c1_i32_249 : i32 to vector<1x2xi32>
    %1026 = arith.cmpi eq, %1011, %1025 : vector<1x2xi32>
    %1027 = vector.extract_strided_slice %1019 {offsets = [1, 0], sizes = [1, 2], strides = [1, 1]} : vector<8x2xi32> to vector<1x2xi32>
    %c0_i32_250 = arith.constant 0 : i32
    %1028 = vector.broadcast %c0_i32_250 : i32 to vector<1x2xi32>
    %1029 = arith.select %1026, %1027, %1028 : vector<1x2xi1>, vector<1x2xi32>
    %1030 = arith.addi %1024, %1029 : vector<1x2xi32>
    %c2_i32_251 = arith.constant 2 : i32
    %1031 = vector.broadcast %c2_i32_251 : i32 to vector<1x2xi32>
    %1032 = arith.cmpi eq, %1011, %1031 : vector<1x2xi32>
    %1033 = vector.extract_strided_slice %1019 {offsets = [2, 0], sizes = [1, 2], strides = [1, 1]} : vector<8x2xi32> to vector<1x2xi32>
    %c0_i32_252 = arith.constant 0 : i32
    %1034 = vector.broadcast %c0_i32_252 : i32 to vector<1x2xi32>
    %1035 = arith.select %1032, %1033, %1034 : vector<1x2xi1>, vector<1x2xi32>
    %1036 = arith.addi %1030, %1035 : vector<1x2xi32>
    %c3_i32_253 = arith.constant 3 : i32
    %1037 = vector.broadcast %c3_i32_253 : i32 to vector<1x2xi32>
    %1038 = arith.cmpi eq, %1011, %1037 : vector<1x2xi32>
    %1039 = vector.extract_strided_slice %1019 {offsets = [3, 0], sizes = [1, 2], strides = [1, 1]} : vector<8x2xi32> to vector<1x2xi32>
    %c0_i32_254 = arith.constant 0 : i32
    %1040 = vector.broadcast %c0_i32_254 : i32 to vector<1x2xi32>
    %1041 = arith.select %1038, %1039, %1040 : vector<1x2xi1>, vector<1x2xi32>
    %1042 = arith.addi %1036, %1041 : vector<1x2xi32>
    %c4_i32_255 = arith.constant 4 : i32
    %1043 = vector.broadcast %c4_i32_255 : i32 to vector<1x2xi32>
    %1044 = arith.cmpi eq, %1011, %1043 : vector<1x2xi32>
    %1045 = vector.extract_strided_slice %1019 {offsets = [4, 0], sizes = [1, 2], strides = [1, 1]} : vector<8x2xi32> to vector<1x2xi32>
    %c0_i32_256 = arith.constant 0 : i32
    %1046 = vector.broadcast %c0_i32_256 : i32 to vector<1x2xi32>
    %1047 = arith.select %1044, %1045, %1046 : vector<1x2xi1>, vector<1x2xi32>
    %1048 = arith.addi %1042, %1047 : vector<1x2xi32>
    %c5_i32_257 = arith.constant 5 : i32
    %1049 = vector.broadcast %c5_i32_257 : i32 to vector<1x2xi32>
    %1050 = arith.cmpi eq, %1011, %1049 : vector<1x2xi32>
    %1051 = vector.extract_strided_slice %1019 {offsets = [5, 0], sizes = [1, 2], strides = [1, 1]} : vector<8x2xi32> to vector<1x2xi32>
    %c0_i32_258 = arith.constant 0 : i32
    %1052 = vector.broadcast %c0_i32_258 : i32 to vector<1x2xi32>
    %1053 = arith.select %1050, %1051, %1052 : vector<1x2xi1>, vector<1x2xi32>
    %1054 = arith.addi %1048, %1053 : vector<1x2xi32>
    %c6_i32_259 = arith.constant 6 : i32
    %1055 = vector.broadcast %c6_i32_259 : i32 to vector<1x2xi32>
    %1056 = arith.cmpi eq, %1011, %1055 : vector<1x2xi32>
    %1057 = vector.extract_strided_slice %1019 {offsets = [6, 0], sizes = [1, 2], strides = [1, 1]} : vector<8x2xi32> to vector<1x2xi32>
    %c0_i32_260 = arith.constant 0 : i32
    %1058 = vector.broadcast %c0_i32_260 : i32 to vector<1x2xi32>
    %1059 = arith.select %1056, %1057, %1058 : vector<1x2xi1>, vector<1x2xi32>
    %1060 = arith.addi %1054, %1059 : vector<1x2xi32>
    %c7_i32_261 = arith.constant 7 : i32
    %1061 = vector.broadcast %c7_i32_261 : i32 to vector<1x2xi32>
    %1062 = arith.cmpi eq, %1011, %1061 : vector<1x2xi32>
    %1063 = vector.extract_strided_slice %1019 {offsets = [7, 0], sizes = [1, 2], strides = [1, 1]} : vector<8x2xi32> to vector<1x2xi32>
    %c0_i32_262 = arith.constant 0 : i32
    %1064 = vector.broadcast %c0_i32_262 : i32 to vector<1x2xi32>
    %1065 = arith.select %1062, %1063, %1064 : vector<1x2xi1>, vector<1x2xi32>
    %1066 = arith.addi %1060, %1065 : vector<1x2xi32>
    %1067 = vector.broadcast %1016 : i32 to vector<1x2xi32>
    %1068 = arith.cmpi eq, %4, %1067 : vector<1x2xi32>
    %1069 = arith.select %1068, %664, %1066 : vector<1x2xi1>, vector<1x2xi32>
    %1070 = arith.index_cast %1016 : i32 to index
    %c0_263 = arith.constant 0 : index
    %c0_264 = arith.constant 0 : index
    %1071 = vector.load %arg5[%1070, %c0_263, %c0_264] : memref<8x1x2xi32, #tpu.memory_space<vmem>>, vector<1x1x2xi32>
    %1072 = vector.shape_cast %1071 : vector<1x1x2xi32> to vector<1x2xi32>
    %1073 = vector.shape_cast %1069 : vector<1x2xi32> to vector<1x1x2xi32>
    tpu.vector_store %arg5[%1070, %c0_263, %c0_264], %1073 {strides = array<i32>} : memref<8x1x2xi32, #tpu.memory_space<vmem>>, vector<1x1x2xi32>,
    %c7_i32_265 = arith.constant 7 : i32
    return
  }
  func.func @transform_0(%arg0: i32) -> (i32, i32, i32) {
    %c0_i32 = arith.constant 0 : i32
    %c0_i32_0 = arith.constant 0 : i32
    %c0_i32_1 = arith.constant 0 : i32
    return %c0_i32, %c0_i32_0, %arg0 : i32, i32, i32
  }
  func.func @transform_1(%arg0: i32) -> (i32, i32) {
    %c0_i32 = arith.constant 0 : i32
    %c0_i32_0 = arith.constant 0 : i32
    %c0_i32_1 = arith.constant 0 : i32
    return %c0_i32, %c0_i32_0 : i32, i32
  }
  func.func @transform_2(%arg0: i32) -> (i32, i32) {
    %c0_i32 = arith.constant 0 : i32
    %c0_i32_0 = arith.constant 0 : i32
    %c0_i32_1 = arith.constant 0 : i32
    return %c0_i32, %c0_i32_0 : i32, i32
  }
  func.func @transform_3(%arg0: i32) -> (i32, i32) {
    %c0_i32 = arith.constant 0 : i32
    %c0_i32_0 = arith.constant 0 : i32
    return %c0_i32, %arg0 : i32, i32
  }
  func.func @transform_4(%arg0: i32) -> (i32, i32, i32) {
    %c0_i32 = arith.constant 0 : i32
    %c0_i32_0 = arith.constant 0 : i32
    %c0_i32_1 = arith.constant 0 : i32
    return %c0_i32, %c0_i32_0, %arg0 : i32, i32, i32
  }
}

</mosaic_0001>

<bundles_post_ra>
// kernel: tpu_custom_call.1
= control target key start
LH: loop header
LB: loop body
LE: loop exit
PB: predicated region body
PF: predicated region fallthrough
CT: control target
= control target key end

     0   :  { %v1303_v0 = vmov 1   ;;  %v1304_v1 = vmov 6   ;;  %v1305_v3 = vmov 2   ;;  %v1880_v4 = vmov 0   ;;  %s1874_s1 = inlined_call_operand.vmem [shape: f32[8,8], index: 1, kind: input, shape index: {}]   ;;  %s1875_s2 = inlined_call_operand.vmem [shape: f32[8,1], index: 2, kind: input, shape index: {}]   ;;  %s1876_s0 = inlined_call_operand.vmem [shape: f32[8,8,2], index: 0, kind: input, shape index: {}]   ;;  %s1877_s3 = inlined_call_operand.vmem [shape: s32[1,2], index: 3, kind: input, shape index: {}]   ;;  %s1878_s4 = inlined_call_operand.vmem [shape: s32[8,1,2], index: 4, kind: output, shape index: {}]  }
   0x1   :  { %1290 = vset.pattern.permute.xlu1 %v1303_v0  ;;  %1288 = vset.pattern.permute.xlu0 %v1304_v1  ;;  %v17_v2 = vld [vmem:[%s1874_s1] sm:$0xff]  ;;  %v1307_v5 = vmov 3   ;;  %v1308_v6 = vmov 4   ;;  %v1309_v8 = vmov 5   ;;  %v1310_v9 = vmov 7   ;;  %v1350_v12 = vld [vmem:[%s1876_s0 + $0x28] sm:$0xff] }
   0x2   :  { %41 = vperm.xlu1 %1290, %v17_v2   ;;  %24 = vperm.xlu0 %1288, %v17_v2   ;;  %v18_v7 = vld [vmem:[%s1875_s2] sm:$0xff]  ;;  %v35_v10 = vlaneseq  ;;  %v1355_v13 = vld [vmem:[%s1876_s0 + $0x30] sm:$0xff]  ;;  %v1360_v14 = vld [vmem:[%s1876_s0 + $0x38] sm:$0xff]  ;;  %vm135_vm9 = vcmask 15360  }
   0x3   :  { %v21_v15 = vld [vmem:[%s1876_s0] sm:$0xff]  ;;  %v1396_v25 = vld [vmem:[%s1876_s0 + $0x8] sm:$0xff] }
   0x4   :  { %v1345_v11 = vshrl.u32 %v35_v10, 7  ;;  %v1440_v40 = vld [vmem:[%s1877_s3] sm:$0x1] }
   0x5   :  { %v1466_v50 = vadd.s32 4294967295, %v1440_v40  ;;  %vm127_vm1 = vcmp.gt.s32.totalorder %v1440_v40, 1  ;;  %vm216_vm12 = vcmp.gt.s32.totalorder %v1440_v40, 2 }
   0x6   :  { %1291 = vset.pattern.permute.xlu1 %v1305_v3  ;;  %1289 = vset.pattern.permute.xlu0 %v1880_v4  ;;  %1882 = vst [vmem:[#allocation3_spill] sm:$0xff] %v1345_v11  ;;  %v1370_v18 = vsub.s32 2, %v1345_v11  ;;  %v1373_v19 = vsub.s32 0, %v1345_v11  ;;  %v1376_v20 = vsub.s32 1, %v1345_v11  ;;  %v1421_v35 = vsub.s32 3, %v1345_v11 }
   0x7   :  { %54 = vperm.xlu1 %1291, %v17_v2   ;;  %31 = vperm.xlu0 %1289, %v17_v2   ;;  %v1443_v41 = vsub.s32 4, %v1345_v11  ;;  %v1446_v42 = vsub.s32 6, %v1345_v11  ;;  %v1463_v49 = vsub.s32 5, %v1345_v11  ;;  %v1483_v58 = vsub.s32 7, %v1345_v11 }
   0x8   :  { %vm137_vm4 = vcmp.eq.s32.totalorder %v1466_v50, 1 }
   0xb   :  { %1292 = vset.pattern.permute.xlu1 %v1307_v5  ;;  %1293 = vset.pattern.permute.xlu0 %v1308_v6  ;;  %v128_v5 = vsel %vm127_vm1, 1, %v1880_v4 }
   0xc   :  { %67 = vperm.xlu1 %1292, %v17_v2   ;;  %80 = vperm.xlu0 %1293, %v17_v2  }
  0x10   :  { %1294 = vset.pattern.permute.xlu1 %v1309_v8  ;;  %1296 = vset.pattern.permute.xlu0 %v1880_v4 }
  0x11   :  { %93 = vperm.xlu1 %1294, %v17_v2   ;;  %681 = vperm.xlu0 %1296, %v18_v7  }
  0x15   :  { %1295 = vset.pattern.permute.xlu1 %v1310_v9 }
  0x16   :  { %115 = vperm.xlu1 %1295, %v17_v2  }
  0x81   :  { %v1365_v16 = vpop.permute.xlu1 %41  ;;  %v1367_v17 = vpop.permute.xlu0 %24 }
  0x82   :  { %v1380_v21 = vadd.f32 %v1350_v12, %v1365_v16  ;;  %v1384_v22 = vadd.f32 %v1355_v13, %v1365_v16  ;;  %v1388_v23 = vadd.f32 %v1360_v14, %v1365_v16  ;;  %v1391_v24 = vadd.f32 %v1367_v17, %v21_v15 }
  0x83   :  { %v1400_v26 = vadd.f32 %v1350_v12, %v1367_v17  ;;  %v1404_v27 = vadd.f32 %v1355_v13, %v1367_v17  ;;  %v44_v32 = vadd.f32 %v1396_v25, %v1365_v16  ;;  %v1470_v51 = vadd.f32 %v1360_v14, %v1367_v17 }
  0x84   :  { %v38_v30 = vrot.slane %v1391_v24, %v1373_v19  ;;  %v48_v31 = vrot.slane %v1391_v24, %v1376_v20  ;;  %v61_v34 = vrot.slane %v1391_v24, %v1370_v18  ;;  %v74_v54 = vrot.slane %v1391_v24, %v1421_v35 }
  0x85   :  { %v87_v1 = vrot.slane %v1391_v24, %v1443_v41  ;;  %v105_v6 = vadd.f32 %v1396_v25, %v1367_v17 }
  0x86   :  { %v1406_v28 = vpop.permute.xlu1 %54  ;;  %v1408_v29 = vpop.permute.xlu0 %31  ;;  %v49_v44 = vadd.f32 %v48_v31, %v44_v32  ;;  %v109_v31 = vrot.slane %v1391_v24, %v1446_v42 }
  0x87   :  { %v57_v33 = vadd.f32 %v1396_v25, %v1406_v28  ;;  %v1425_v36 = vadd.f32 %v1350_v12, %v1406_v28  ;;  %v1429_v37 = vadd.f32 %v1355_v13, %v1406_v28  ;;  %v1433_v38 = vadd.f32 %v1360_v14, %v1406_v28 }
  0x88   :  { %v34_v39 = vadd.f32 %v1396_v25, %v1408_v29  ;;  %v1450_v45 = vadd.f32 %v1350_v12, %v1408_v29  ;;  %v1454_v46 = vadd.f32 %v1355_v13, %v1408_v29  ;;  %v1458_v47 = vadd.f32 %v1360_v14, %v1408_v29 }
  0x89   :  { %v62_v52 = vadd.f32 %v61_v34, %v57_v33 }
  0x8a   :  { %v39_v43 = vadd.f32 %v38_v30, %v34_v39  ;;  %v100_v30 = vrot.slane %v1391_v24, %v1463_v49 }
  0x8b   :  { %v1460_v48 = vpop.permute.xlu1 %67  ;;  %v1476_v55 = vpop.permute.xlu0 %80 }
  0x8c   :  { %vm50_vm0 = vcmp.gt.f32.partialorder %v49_v44, %v39_v43  ;;  %v70_v53 = vadd.f32 %v1396_v25, %v1460_v48  ;;  %v1480_v57 = vadd.f32 %v1350_v12, %v1460_v48  ;;  %v1488_v60 = vadd.f32 %v1355_v13, %v1460_v48 }
  0x8d   :  { %v51_v56 = vsel %vm50_vm0, %v49_v44, %v39_v43  ;;  %v1492_v61 = vadd.f32 %v1360_v14, %v1460_v48  ;;  %v52_v62 = vsel %vm50_vm0, 1, %v1880_v4  ;;  %v83_v0 = vadd.f32 %v1396_v25, %v1476_v55 }
  0x8e   :  { %vm63_vm2 = vcmp.gt.f32.partialorder %v62_v52, %v51_v56  ;;  %v75_v59 = vadd.f32 %v74_v54, %v70_v53  ;;  %v1502_v2 = vadd.f32 %v1350_v12, %v1476_v55  ;;  %v1512_v9 = vadd.f32 %v1355_v13, %v1476_v55 }
  0x8f   :  { %v64_v63 = vsel %vm63_vm2, %v62_v52, %v51_v56  ;;  %v88_v8 = vadd.f32 %v87_v1, %v83_v0  ;;  %v65_v10 = vsel %vm63_vm2, 2, %v52_v62  ;;  %v1531_v44 = vadd.f32 %v1360_v14, %v1476_v55 }
  0x90   :  { %vm76_vm3 = vcmp.gt.f32.partialorder %v75_v59, %v64_v63  ;;  %v1504_v3 = vpop.permute.xlu1 %93  ;;  %v132_v52 = vrot.slane %v128_v5, %v1373_v19  ;;  %v122_v54 = vrot.slane %v1391_v24, %v1483_v58  ;;  %v138_v56 = vsel %vm137_vm4, 1, %v1880_v4 }
  0x91   :  { %v77_v7 = vsel %vm76_vm3, %v75_v59, %v64_v63  ;;  %v96_v15 = vadd.f32 %v1396_v25, %v1504_v3  ;;  %v78_v32 = vsel %vm76_vm3, 3, %v65_v10  ;;  %v1523_v33 = vadd.f32 %v1350_v12, %v1504_v3 }
  0x92   :  { %vm89_vm5 = vcmp.gt.f32.partialorder %v88_v8, %v77_v7  ;;  %v1527_v34 = vadd.f32 %v1355_v13, %v1504_v3  ;;  %v1543_v59 = vadd.f32 %v1360_v14, %v1504_v3  ;;  %v110_v63 = vadd.f32 %v109_v31, %v105_v6 }
  0x93   :  { %v90_v39 = vsel %vm89_vm5, %v88_v8, %v77_v7  ;;  %v101_v43 = vadd.f32 %v100_v30, %v96_v15  ;;  %v91_v62 = vsel %vm89_vm5, 4, %v78_v32  ;;  %v1266_v8 = vld [vmem:[%s1876_s0 + $0x10] sm:$0xff]  ;;  %vm133_vm8 = vcmp.eq.s32.totalorder %v132_v52, 1 }
  0x94   :  { %v142_v30 = vrot.slane %v138_v56, %v1373_v19  ;;  %v153_v31 = vadd.f32 %v1266_v8, %v1365_v16  ;;  %v147_v32 = vadd.f32 %v1266_v8, %v1408_v29  ;;  %vm226_vm0 = vcmp.eq.s32.totalorder %v1466_v50, 2 }
  0x95   :  { %v1534_v53 = vpop.permute.xlu1 %115  ;;  %vm102_vm6 = vcmp.gt.f32.partialorder %v101_v43, %v90_v39 }
  0x96   :  { %v118_v0 = vadd.f32 %v1396_v25, %v1534_v53  ;;  %v103_v1 = vsel %vm102_vm6, %v101_v43, %v90_v39  ;;  %v104_v5 = vsel %vm102_vm6, 5, %v91_v62  ;;  %v1549_v7 = vadd.f32 %v1350_v12, %v1534_v53 }
  0x97   :  { %vm111_vm7 = vcmp.gt.f32.partialorder %v110_v63, %v103_v1  ;;  %v1556_v15 = vadd.f32 %v1355_v13, %v1534_v53  ;;  %v1560_v6 = vadd.f32 %v1360_v14, %v1534_v53  ;;  %vm1574_vm11 = vcmp.eq.s32.totalorder %v142_v30, 1 }
  0x98   :  { %v123_v10 = vadd.f32 %v122_v54, %v118_v0  ;;  %v112_v25 = vsel %vm111_vm7, %v110_v63, %v103_v1  ;;  %v113_v12 = vsel %vm111_vm7, 6, %v104_v5  ;;  %v162_v62 = vadd.f32 %v1266_v8, %v1406_v28 }
  0x99   :  { %v171_v5 = vadd.f32 %v1266_v8, %v1460_v48 }
  0x9a   :  { %vm124_vm10 = vcmp.gt.f32.partialorder %v123_v10, %v112_v25 }
  0x9b   :  { %v1565_v39 = vsel %vm124_vm10, %v123_v10, %v112_v25  ;;  %v126_v43 = vsel %vm124_vm10, 7, %v113_v12 }
  0x9c   :  { %v134_v13 = vsel %vm133_vm8, %v126_v43, 0  ;;  %v151_v54 = vrot.slane %v1565_v39, %v1373_v19  ;;  %v157_v14 = vrot.slane %v1565_v39, %v1376_v20  ;;  %v166_v52 = vrot.slane %v1565_v39, %v1370_v18 }
  0x9d   :  { %136 = vst.msk [vmem:[#allocation2] sm:$0xff] %vm135_vm9, %v134_v13  ;;  %v175_v1 = vrot.slane %v1565_v39, %v1421_v35  ;;  %v184_v25 = vrot.slane %v1565_v39, %v1443_v41  ;;  %v144_v30 = vsel %vm1574_vm11, %v1565_v39, %v1391_v24  ;;  %v193_v13 = vrot.slane %v1565_v39, %v1463_v49 }
  0x9e   :  { %v152_v63 = vadd.f32 %v151_v54, %v147_v32  ;;  %v158_v0 = vadd.f32 %v157_v14, %v153_v31  ;;  %v167_v10 = vadd.f32 %v166_v52, %v162_v62  ;;  %v180_v32 = vadd.f32 %v1266_v8, %v1476_v55 }
  0x9f   :  { %v176_v43 = vadd.f32 %v175_v1, %v171_v5  ;;  %v217_v54 = vsel %vm216_vm12, 1, %v1880_v4  ;;  %v189_v62 = vadd.f32 %v1266_v8, %v1504_v3  ;;  %v202_v24 = vrot.slane %v1565_v39, %v1446_v42 }
  0xa0   :  { %vm159_vm13 = vcmp.gt.f32.partialorder %v158_v0, %v152_v63  ;;  %v185_v11 = vadd.f32 %v184_v25, %v180_v32  ;;  %v211_v5 = vrot.slane %v1565_v39, %v1483_v58  ;;  %v207_v32 = vadd.f32 %v1266_v8, %v1534_v53 }
  0xa1   :  { %v160_v12 = vsel %vm159_vm13, %v158_v0, %v152_v63  ;;  %v161_v31 = vsel %vm159_vm13, 1, %v1880_v4  ;;  %v198_v0 = vadd.f32 %v1266_v8, %v1367_v17  ;;  %v194_v1 = vadd.f32 %v193_v13, %v189_v62  ;;  %v1267_v13 = vld [vmem:[%s1876_s0 + $0x18] sm:$0xff] }
  0xa2   :  { %vm168_vm14 = vcmp.gt.f32.partialorder %v167_v10, %v160_v12  ;;  %v212_v39 = vadd.f32 %v211_v5, %v207_v32  ;;  %v242_v8 = vadd.f32 %v1267_v13, %v1365_v16  ;;  %v251_v5 = vadd.f32 %v1267_v13, %v1406_v28 }
  0xa3   :  { %v169_v14 = vsel %vm168_vm14, %v167_v10, %v160_v12  ;;  %v170_v52 = vsel %vm168_vm14, 2, %v161_v31  ;;  %v221_v10 = vrot.slane %v217_v54, %v1373_v19  ;;  %v203_v25 = vadd.f32 %v202_v24, %v198_v0 }
  0xa4   :  { %vm177_vm15 = vcmp.gt.f32.partialorder %v176_v43, %v169_v14  ;;  %v236_v24 = vadd.f32 %v1267_v13, %v1408_v29  ;;  %vm305_vm8 = vcmp.gt.s32.totalorder %v1440_v40, 3  ;;  %vm315_vm13 = vcmp.eq.s32.totalorder %v1466_v50, 3 }
  0xa5   :  { %v178_v56 = vsel %vm177_vm15, %v176_v43, %v169_v14  ;;  %v179_v63 = vsel %vm177_vm15, 3, %v170_v52  ;;  %v227_v43 = vsel %vm226_vm0, 1, %v1880_v4  ;;  %vm222_vm5 = vcmp.eq.s32.totalorder %v221_v10, 1 }
  0xa6   :  { %vm186_vm1 = vcmp.gt.f32.partialorder %v185_v11, %v178_v56  ;;  %v231_v62 = vrot.slane %v227_v43, %v1373_v19  ;;  %v260_v43 = vadd.f32 %v1267_v13, %v1460_v48 }
  0xa7   :  { %v187_v12 = vsel %vm186_vm1, %v185_v11, %v178_v56  ;;  %v188_v31 = vsel %vm186_vm1, 4, %v179_v63 }
  0xa8   :  { %vm195_vm2 = vcmp.gt.f32.partialorder %v194_v1, %v187_v12  ;;  %vm232_vm7 = vcmp.eq.s32.totalorder %v231_v62, 1  ;;  %v269_v62 = vadd.f32 %v1267_v13, %v1476_v55 }
  0xa9   :  { %v196_v14 = vsel %vm195_vm2, %v194_v1, %v187_v12  ;;  %v197_v52 = vsel %vm195_vm2, 5, %v188_v31 }
  0xaa   :  { %vm204_vm3 = vcmp.gt.f32.partialorder %v203_v25, %v196_v14 }
  0xab   :  { %v205_v54 = vsel %vm204_vm3, %v203_v25, %v196_v14  ;;  %v206_v11 = vsel %vm204_vm3, 6, %v197_v52 }
  0xac   :  { %vm213_vm6 = vcmp.gt.f32.partialorder %v212_v39, %v205_v54 }
  0xad   :  { %v214_v56 = vsel %vm213_vm6, %v212_v39, %v205_v54  ;;  %v215_v63 = vsel %vm213_vm6, 7, %v206_v11  ;;  %vm394_vm6 = vcmp.gt.s32.totalorder %v1440_v40, 4 }
  0xae   :  { %v223_v0 = vsel %vm222_vm5, %v215_v63, 0  ;;  %v240_v1 = vrot.slane %v214_v56, %v1373_v19  ;;  %v246_v12 = vrot.slane %v214_v56, %v1376_v20  ;;  %v255_v31 = vrot.slane %v214_v56, %v1370_v18 }
  0xaf   :  { %225 = vst.msk [vmem:[#allocation2 + $0x8] sm:$0xff] %vm135_vm9, %v223_v0  ;;  %v264_v32 = vrot.slane %v214_v56, %v1421_v35  ;;  %v273_v52 = vrot.slane %v214_v56, %v1443_v41  ;;  %v1621_v39 = vsel %vm232_vm7, %v214_v56, %v144_v30  ;;  %v306_v63 = vsel %vm305_vm8, 1, %v1880_v4 }
  0xb0   :  { %v241_v10 = vadd.f32 %v240_v1, %v236_v24  ;;  %v247_v25 = vadd.f32 %v246_v12, %v242_v8  ;;  %v256_v14 = vadd.f32 %v255_v31, %v251_v5  ;;  %v282_v8 = vrot.slane %v214_v56, %v1463_v49 }
  0xb1   :  { %v265_v24 = vadd.f32 %v264_v32, %v260_v43  ;;  %v278_v12 = vadd.f32 %v1267_v13, %v1504_v3  ;;  %v274_v31 = vadd.f32 %v273_v52, %v269_v62  ;;  %v291_v30 = vrot.slane %v214_v56, %v1446_v42 }
  0xb2   :  { %vm248_vm10 = vcmp.gt.f32.partialorder %v247_v25, %v241_v10  ;;  %v300_v43 = vrot.slane %v214_v56, %v1483_v58  ;;  %v296_v52 = vadd.f32 %v1267_v13, %v1534_v53  ;;  %v1885_v62 = vmov 0  }
  0xb3   :  { %v249_v54 = vsel %vm248_vm10, %v247_v25, %v241_v10  ;;  %v250_v11 = vsel %vm248_vm10, 1, %v1880_v4  ;;  %v287_v25 = vadd.f32 %v1267_v13, %v1367_v17  ;;  %v283_v32 = vadd.f32 %v282_v8, %v278_v12  ;;  %v1268_v8 = vld [vmem:[%s1876_s0 + $0x20] sm:$0xff] }
  0xb4   :  { %vm257_vm11 = vcmp.gt.f32.partialorder %v256_v14, %v249_v54  ;;  %v310_v4 = vrot.slane %v306_v63, %v1373_v19  ;;  %v301_v56 = vadd.f32 %v300_v43, %v296_v52  ;;  %v331_v13 = vadd.f32 %v1268_v8, %v1365_v16 }
  0xb5   :  { %v258_v0 = vsel %vm257_vm11, %v256_v14, %v249_v54  ;;  %v259_v1 = vsel %vm257_vm11, 2, %v250_v11  ;;  %v292_v11 = vadd.f32 %v291_v30, %v287_v25  ;;  %v325_v30 = vadd.f32 %v1268_v8, %v1408_v29 }
  0xb6   :  { %vm266_vm12 = vcmp.gt.f32.partialorder %v265_v24, %v258_v0  ;;  %vm311_vm2 = vcmp.eq.s32.totalorder %v310_v4, 1  ;;  %v340_v16 = vadd.f32 %v1268_v8, %v1406_v28  ;;  %v349_v52 = vadd.f32 %v1268_v8, %v1460_v48 }
  0xb7   :  { %v267_v5 = vsel %vm266_vm12, %v265_v24, %v258_v0  ;;  %v268_v10 = vsel %vm266_vm12, 3, %v259_v1  ;;  %v316_v24 = vsel %vm315_vm13, 1, %v1885_v62  ;;  %vm404_vm8 = vcmp.eq.s32.totalorder %v1466_v50, 4 }
  0xb8   :  { %vm275_vm14 = vcmp.gt.f32.partialorder %v274_v31, %v267_v5 }
  0xb9   :  { %v276_v14 = vsel %vm275_vm14, %v274_v31, %v267_v5  ;;  %v277_v54 = vsel %vm275_vm14, 4, %v268_v10  ;;  %v320_v31 = vrot.slane %v316_v24, %v1373_v19 }
  0xba   :  { %vm284_vm15 = vcmp.gt.f32.partialorder %v283_v32, %v276_v14 }
  0xbb   :  { %v285_v0 = vsel %vm284_vm15, %v283_v32, %v276_v14  ;;  %v286_v1 = vsel %vm284_vm15, 5, %v277_v54  ;;  %vm1652_vm5 = vcmp.eq.s32.totalorder %v320_v31, 1  ;;  %v395_v31 = vsel %vm394_vm6, 1, %v1885_v62 }
  0xbc   :  { %vm293_vm1 = vcmp.gt.f32.partialorder %v292_v11, %v285_v0  ;;  %vm483_vm6 = vcmp.gt.s32.totalorder %v1440_v40, 5 }
  0xbd   :  { %v294_v63 = vsel %vm293_vm1, %v292_v11, %v285_v0  ;;  %v295_v12 = vsel %vm293_vm1, 6, %v286_v1 }
  0xbe   :  { %vm302_vm3 = vcmp.gt.f32.partialorder %v301_v56, %v294_v63 }
  0xbf   :  { %v1643_v5 = vsel %vm302_vm3, %v301_v56, %v294_v63  ;;  %v304_v10 = vsel %vm302_vm3, 7, %v295_v12  ;;  %v358_v63 = vadd.f32 %v1268_v8, %v1476_v55  ;;  %v405_v55 = vsel %vm404_vm8, 1, %v1885_v62 }
  0xc0   :  { %v312_v25 = vsel %vm311_vm2, %v304_v10, 0  ;;  %v329_v32 = vrot.slane %v1643_v5, %v1373_v19  ;;  %v335_v43 = vrot.slane %v1643_v5, %v1376_v20  ;;  %v344_v4 = vrot.slane %v1643_v5, %v1370_v18 }
  0xc1   :  { %314 = vst.msk [vmem:[#allocation2 + $0x10] sm:$0xff] %vm135_vm9, %v312_v25  ;;  %v353_v11 = vrot.slane %v1643_v5, %v1421_v35  ;;  %v362_v0 = vrot.slane %v1643_v5, %v1443_v41  ;;  %v322_v1 = vsel %vm1652_vm5, %v1643_v5, %v1621_v39  ;;  %v371_v12 = vrot.slane %v1643_v5, %v1463_v49 }
  0xc2   :  { %v330_v29 = vadd.f32 %v329_v32, %v325_v30  ;;  %v336_v54 = vadd.f32 %v335_v43, %v331_v13  ;;  %v345_v24 = vadd.f32 %v344_v4, %v340_v16  ;;  %v367_v10 = vadd.f32 %v1268_v8, %v1504_v3 }
  0xc3   :  { %v354_v48 = vadd.f32 %v353_v11, %v349_v52  ;;  %v363_v39 = vadd.f32 %v362_v0, %v358_v63  ;;  %v380_v25 = vrot.slane %v1643_v5, %v1446_v42  ;;  %v376_v4 = vadd.f32 %v1268_v8, %v1367_v17 }
  0xc4   :  { %vm337_vm7 = vcmp.gt.f32.partialorder %v336_v54, %v330_v29  ;;  %v372_v14 = vadd.f32 %v371_v12, %v367_v10  ;;  %v389_v16 = vrot.slane %v1643_v5, %v1483_v58  ;;  %v399_v3 = vrot.slane %v395_v31, %v1373_v19 }
  0xc5   :  { %v338_v28 = vsel %vm337_vm7, %v336_v54, %v330_v29  ;;  %v339_v56 = vsel %vm337_vm7, 1, %v1885_v62  ;;  %v381_v11 = vadd.f32 %v380_v25, %v376_v4  ;;  %v385_v52 = vadd.f32 %v1268_v8, %v1534_v53 }
  0xc6   :  { %vm346_vm10 = vcmp.gt.f32.partialorder %v345_v24, %v338_v28  ;;  %vm400_vm1 = vcmp.eq.s32.totalorder %v399_v3, 1 }
  0xc7   :  { %v347_v13 = vsel %vm346_vm10, %v345_v24, %v338_v28  ;;  %v348_v30 = vsel %vm346_vm10, 2, %v339_v56  ;;  %v409_v28 = vrot.slane %v405_v55, %v1373_v19  ;;  %v390_v56 = vadd.f32 %v389_v16, %v385_v52 }
  0xc8   :  { %vm355_vm11 = vcmp.gt.f32.partialorder %v354_v48, %v347_v13  ;;  %vm493_vm10 = vcmp.eq.s32.totalorder %v1466_v50, 5 }
  0xc9   :  { %v356_v32 = vsel %vm355_vm11, %v354_v48, %v347_v13  ;;  %v357_v43 = vsel %vm355_vm11, 3, %v348_v30  ;;  %vm1685_vm3 = vcmp.eq.s32.totalorder %v409_v28, 1 }
  0xca   :  { %vm364_vm12 = vcmp.gt.f32.partialorder %v363_v39, %v356_v32 }
  0xcb   :  { %v365_v29 = vsel %vm364_vm12, %v363_v39, %v356_v32  ;;  %v366_v54 = vsel %vm364_vm12, 4, %v357_v43 }
  0xcc   :  { %vm373_vm14 = vcmp.gt.f32.partialorder %v372_v14, %v365_v29 }
  0xcd   :  { %v374_v24 = vsel %vm373_vm14, %v372_v14, %v365_v29  ;;  %v375_v0 = vsel %vm373_vm14, 5, %v366_v54 }
  0xce   :  { %vm382_vm15 = vcmp.gt.f32.partialorder %v381_v11, %v374_v24 }
  0xcf   :  { %v383_v17 = vsel %vm382_vm15, %v381_v11, %v374_v24  ;;  %v384_v63 = vsel %vm382_vm15, 6, %v375_v0 }
  0xd0   :  { %vm391_vm2 = vcmp.gt.f32.partialorder %v390_v56, %v383_v17 }
  0xd1   :  { %v392_v48 = vsel %vm391_vm2, %v390_v56, %v383_v17  ;;  %v393_v5 = vsel %vm391_vm2, 7, %v384_v63 }
  0xd2   :  { %v401_v31 = vsel %vm400_vm1, %v393_v5, 0  ;;  %v418_v13 = vrot.slane %v392_v48, %v1373_v19  ;;  %v424_v53 = vrot.slane %v392_v48, %v1376_v20  ;;  %v433_v8 = vrot.slane %v392_v48, %v1370_v18 }
  0xd3   :  { %403 = vst.msk [vmem:[#allocation2 + $0x18] sm:$0xff] %vm135_vm9, %v401_v31  ;;  %v442_v30 = vrot.slane %v392_v48, %v1421_v35  ;;  %v451_v10 = vrot.slane %v392_v48, %v1443_v41  ;;  %v460_v39 = vrot.slane %v392_v48, %v1463_v49  ;;  %v469_v25 = vrot.slane %v392_v48, %v1446_v42 }
  0xd4   :  { %v419_v32 = vadd.f32 %v418_v13, %v1450_v45  ;;  %v425_v43 = vadd.f32 %v424_v53, %v1380_v21  ;;  %v434_v55 = vadd.f32 %v433_v8, %v1425_v36  ;;  %v478_v4 = vrot.slane %v392_v48, %v1483_v58 }
  0xd5   :  { %v443_v14 = vadd.f32 %v442_v30, %v1480_v57  ;;  %v452_v16 = vadd.f32 %v451_v10, %v1502_v2  ;;  %v461_v3 = vadd.f32 %v460_v39, %v1523_v33  ;;  %v470_v29 = vadd.f32 %v469_v25, %v1400_v26 }
  0xd6   :  { %vm426_vm5 = vcmp.gt.f32.partialorder %v425_v43, %v419_v32  ;;  %v479_v54 = vadd.f32 %v478_v4, %v1549_v7  ;;  %v1708_v45 = vsel %vm1685_vm3, %v392_v48, %v322_v1  ;;  %v484_v2 = vsel %vm483_vm6, 1, %v1885_v62 }
  0xd7   :  { %v427_v21 = vsel %vm426_vm5, %v425_v43, %v419_v32  ;;  %v428_v36 = vsel %vm426_vm5, 1, %v1885_v62  ;;  %v494_v7 = vsel %vm493_vm10, 1, %v1885_v62  ;;  %v488_v1 = vrot.slane %v484_v2, %v1373_v19 }
  0xd8   :  { %vm435_vm7 = vcmp.gt.f32.partialorder %v434_v55, %v427_v21  ;;  %v498_v56 = vrot.slane %v494_v7, %v1373_v19  ;;  %vm572_vm6 = vcmp.gt.s32.totalorder %v1440_v40, 6 }
  0xd9   :  { %v436_v57 = vsel %vm435_vm7, %v434_v55, %v427_v21  ;;  %v437_v11 = vsel %vm435_vm7, 2, %v428_v36  ;;  %vm489_vm1 = vcmp.eq.s32.totalorder %v488_v1, 1  ;;  %vm582_vm7 = vcmp.eq.s32.totalorder %v1466_v50, 6 }
  0xda   :  { %vm444_vm11 = vcmp.gt.f32.partialorder %v443_v14, %v436_v57  ;;  %vm1719_vm3 = vcmp.eq.s32.totalorder %v498_v56, 1 }
  0xdb   :  { %v445_v26 = vsel %vm444_vm11, %v443_v14, %v436_v57  ;;  %v446_v33 = vsel %vm444_vm11, 3, %v437_v11 }
  0xdc   :  { %vm453_vm12 = vcmp.gt.f32.partialorder %v452_v16, %v445_v26 }
  0xdd   :  { %v454_v52 = vsel %vm453_vm12, %v452_v16, %v445_v26  ;;  %v455_v24 = vsel %vm453_vm12, 4, %v446_v33 }
  0xde   :  { %vm462_vm14 = vcmp.gt.f32.partialorder %v461_v3, %v454_v52 }
  0xdf   :  { %v463_v0 = vsel %vm462_vm14, %v461_v3, %v454_v52  ;;  %v464_v28 = vsel %vm462_vm14, 5, %v455_v24 }
  0xe0   :  { %vm471_vm15 = vcmp.gt.f32.partialorder %v470_v29, %v463_v0 }
  0xe1   :  { %v472_v17 = vsel %vm471_vm15, %v470_v29, %v463_v0  ;;  %v473_v63 = vsel %vm471_vm15, 6, %v464_v28 }
  0xe2   :  { %vm480_vm2 = vcmp.gt.f32.partialorder %v479_v54, %v472_v17 }
  0xe3   :  { %v481_v48 = vsel %vm480_vm2, %v479_v54, %v472_v17  ;;  %v482_v5 = vsel %vm480_vm2, 7, %v473_v63 }
  0xe4   :  { %v490_v31 = vsel %vm489_vm1, %v482_v5, 0  ;;  %v507_v13 = vrot.slane %v481_v48, %v1373_v19  ;;  %v513_v53 = vrot.slane %v481_v48, %v1376_v20  ;;  %v522_v8 = vrot.slane %v481_v48, %v1370_v18 }
  0xe5   :  { %492 = vst.msk [vmem:[#allocation2 + $0x20] sm:$0xff] %vm135_vm9, %v490_v31  ;;  %v531_v30 = vrot.slane %v481_v48, %v1421_v35  ;;  %v540_v10 = vrot.slane %v481_v48, %v1443_v41  ;;  %v549_v39 = vrot.slane %v481_v48, %v1463_v49  ;;  %v558_v25 = vrot.slane %v481_v48, %v1446_v42 }
  0xe6   :  { %v508_v32 = vadd.f32 %v507_v13, %v1454_v46  ;;  %v514_v43 = vadd.f32 %v513_v53, %v1384_v22  ;;  %v523_v55 = vadd.f32 %v522_v8, %v1429_v37  ;;  %v567_v4 = vrot.slane %v481_v48, %v1483_v58 }
  0xe7   :  { %v532_v14 = vadd.f32 %v531_v30, %v1488_v60  ;;  %v541_v16 = vadd.f32 %v540_v10, %v1512_v9  ;;  %v550_v3 = vadd.f32 %v549_v39, %v1527_v34  ;;  %v559_v29 = vadd.f32 %v558_v25, %v1404_v27 }
  0xe8   :  { %vm515_vm5 = vcmp.gt.f32.partialorder %v514_v43, %v508_v32  ;;  %v568_v54 = vadd.f32 %v567_v4, %v1556_v15  ;;  %v500_v46 = vsel %vm1719_vm3, %v481_v48, %v1708_v45  ;;  %v573_v34 = vsel %vm572_vm6, 1, %v1885_v62 }
  0xe9   :  { %v516_v22 = vsel %vm515_vm5, %v514_v43, %v508_v32  ;;  %v517_v37 = vsel %vm515_vm5, 1, %v1885_v62  ;;  %v583_v27 = vsel %vm582_vm7, 1, %v1885_v62  ;;  %v577_v45 = vrot.slane %v573_v34, %v1373_v19  ;;  %v682_v43 = vpop.permute.xlu0 %681 }
  0xea   :  { %vm524_vm11 = vcmp.gt.f32.partialorder %v523_v55, %v516_v22  ;;  %v587_v11 = vrot.slane %v583_v27, %v1373_v19 }
  0xeb   :  { %v525_v60 = vsel %vm524_vm11, %v523_v55, %v516_v22  ;;  %v526_v9 = vsel %vm524_vm11, 2, %v517_v37  ;;  %vm578_vm2 = vcmp.eq.s32.totalorder %v577_v45, 1  ;;  %vm661_vm11 = vcmp.gt.s32.totalorder %v1440_v40, 7 }
  0xec   :  { %vm533_vm12 = vcmp.gt.f32.partialorder %v532_v14, %v525_v60  ;;  %vm588_vm3 = vcmp.eq.s32.totalorder %v587_v11, 1 }
  0xed   :  { %v534_v15 = vsel %vm533_vm12, %v532_v14, %v525_v60  ;;  %v535_v21 = vsel %vm533_vm12, 3, %v526_v9  ;;  %vm671_vm12 = vcmp.eq.s32.totalorder %v1466_v50, 7 }
  0xee   :  { %vm542_vm14 = vcmp.gt.f32.partialorder %v541_v16, %v534_v15 }
  0xef   :  { %v543_v36 = vsel %vm542_vm14, %v541_v16, %v534_v15  ;;  %v544_v57 = vsel %vm542_vm14, 4, %v535_v21 }
  0xf0   :  { %vm551_vm15 = vcmp.gt.f32.partialorder %v550_v3, %v543_v36 }
  0xf1   :  { %v552_v2 = vsel %vm551_vm15, %v550_v3, %v543_v36  ;;  %v553_v26 = vsel %vm551_vm15, 5, %v544_v57 }
  0xf2   :  { %vm560_vm1 = vcmp.gt.f32.partialorder %v559_v29, %v552_v2 }
  0xf3   :  { %v561_v33 = vsel %vm560_vm1, %v559_v29, %v552_v2  ;;  %v562_v7 = vsel %vm560_vm1, 6, %v553_v26 }
  0xf4   :  { %vm569_vm5 = vcmp.gt.f32.partialorder %v568_v54, %v561_v33 }
  0xf5   :  { %v570_v1 = vsel %vm569_vm5, %v568_v54, %v561_v33  ;;  %v571_v52 = vsel %vm569_vm5, 7, %v562_v7 }
  0xf6   :  { %v579_v24 = vsel %vm578_vm2, %v571_v52, 0  ;;  %v589_v0 = vsel %vm588_vm3, %v570_v1, %v500_v46  ;;  %v596_v28 = vrot.slane %v570_v1, %v1373_v19  ;;  %v602_v56 = vrot.slane %v570_v1, %v1376_v20 }
  0xf7   :  { %581 = vst.msk [vmem:[#allocation2 + $0x28] sm:$0xff] %vm135_vm9, %v579_v24  ;;  %v611_v17 = vrot.slane %v570_v1, %v1370_v18  ;;  %v620_v63 = vrot.slane %v570_v1, %v1421_v35  ;;  %v629_v48 = vrot.slane %v570_v1, %v1443_v41  ;;  %v638_v5 = vrot.slane %v570_v1, %v1463_v49 }
  0xf8   :  { %v597_v12 = vadd.f32 %v596_v28, %v1458_v47  ;;  %v603_v31 = vadd.f32 %v602_v56, %v1388_v23  ;;  %v647_v13 = vrot.slane %v570_v1, %v1446_v42  ;;  %v656_v53 = vrot.slane %v570_v1, %v1483_v58 }
  0xf9   :  { %v612_v20 = vadd.f32 %v611_v17, %v1433_v38  ;;  %v621_v8 = vadd.f32 %v620_v63, %v1492_v61  ;;  %v630_v18 = vadd.f32 %v629_v48, %v1531_v44  ;;  %v639_v35 = vadd.f32 %v638_v5, %v1543_v59 }
  0xfa   :  { %vm604_vm6 = vcmp.gt.f32.partialorder %v603_v31, %v597_v12  ;;  %v648_v41 = vadd.f32 %v647_v13, %v1470_v51  ;;  %v657_v49 = vadd.f32 %v656_v53, %v1560_v6  ;;  %v662_v58 = vsel %vm661_vm11, 1, %v1885_v62 }
  0xfb   :  { %v605_v23 = vsel %vm604_vm6, %v603_v31, %v597_v12  ;;  %v606_v42 = vsel %vm604_vm6, 1, %v1885_v62  ;;  %v672_v61 = vsel %vm671_vm12, 1, %v1885_v62  ;;  %v666_v51 = vrot.slane %v662_v58, %v1373_v19 }
  0xfc   :  { %vm613_vm14 = vcmp.gt.f32.partialorder %v612_v20, %v605_v23  ;;  %v676_v40 = vrot.slane %v672_v61, %v1373_v19  ;;  %v1311_v31 = vmov 1966171168  }
  0xfd   :  { %v614_v38 = vsel %vm613_vm14, %v612_v20, %v605_v23  ;;  %v615_v47 = vsel %vm613_vm14, 2, %v606_v42  ;;  %vm667_vm5 = vcmp.eq.s32.totalorder %v666_v51, 1  ;;  %v768_v13 = vunpack.c.l.s4 %v1311_v31 }
  0xfe   :  { %vm622_vm15 = vcmp.gt.f32.partialorder %v621_v8, %v614_v38  ;;  %vm677_vm6 = vcmp.eq.s32.totalorder %v676_v40, 1 }
  0xff   :  { %v623_v44 = vsel %vm622_vm15, %v621_v8, %v614_v38  ;;  %v624_v59 = vsel %vm622_vm15, 3, %v615_v47 }
 0x100   :  { %vm631_vm1 = vcmp.gt.f32.partialorder %v630_v18, %v623_v44 }
 0x101   :  { %v632_v6 = vsel %vm631_vm1, %v630_v18, %v623_v44  ;;  %v633_v30 = vsel %vm631_vm1, 4, %v624_v59  ;;  %v1892_v59 = vld [vmem:[#allocation3_spill] sm:$0xff] }
 0x102   :  { %vm640_vm2 = vcmp.gt.f32.partialorder %v639_v35, %v632_v6 }
 0x103   :  { %v641_v10 = vsel %vm640_vm2, %v639_v35, %v632_v6  ;;  %v642_v39 = vsel %vm640_vm2, 5, %v633_v30 }
 0x104   :  { %vm649_vm3 = vcmp.gt.f32.partialorder %v648_v41, %v641_v10 }
 0x105   :  { %v650_v25 = vsel %vm649_vm3, %v648_v41, %v641_v10  ;;  %v651_v32 = vsel %vm649_vm3, 6, %v642_v39  ;;  %vm733_vm3 = vcmask 15367  }
 0x106   :  { %vm658_vm11 = vcmp.gt.f32.partialorder %v657_v49, %v650_v25 }
 0x107   :  { %v659_v55 = vsel %vm658_vm11, %v657_v49, %v650_v25  ;;  %v660_v4 = vsel %vm658_vm11, 7, %v651_v32  ;;  %v769_v49 = vunpack.c.0.s8 %v768_v13  ;;  %v804_v32 = vld [vmem:[#allocation2 + $0x28] sm:$0xff] }
 0x108   :  { %v668_v14 = vsel %vm667_vm5, %v660_v4, 0  ;;  %v678_v16 = vsel %vm677_vm6, %v659_v55, %v589_v0 }
 0x109   :  { %670 = vst.msk [vmem:[#allocation2 + $0x30] sm:$0xff] %vm135_vm9, %v668_v14  ;;  %v684_v3 = vadd.f32 %v682_v43, %v678_v16  ;;  %v1782_v51 = vsub.s32 %v769_v49, %v1892_v59 }
 0x10b   :  { %v686_v19 = vrot.slane %v684_v3, 7  ;;  %v814_v14 = vrot.slane %v804_v32, %v1782_v51 }
 0x10d   :  { %vm688_vm12 = vcmp.gt.f32.partialorder %v684_v3, %v686_v19 }
 0x10e   :  { %v689_v29 = vsel %vm688_vm12, %v684_v3, %v686_v19  ;;  %v690_v54 = vsel %vm688_vm12, 1, %v1885_v62 }
 0x10f   :  { %v692_v46 = vrot.slane %v689_v29, 7  ;;  %v696_v22 = vrot.slane %v690_v54, 7  ;;  %v815_v29 = vcombine.high %v814_v14, %v814_v14  ;;  %v841_v54 = vcombine.high %v804_v32, %v804_v32 }
 0x110   :  { %v735_v28 = vld [vmem:[#allocation2 + $0x30] sm:$0xff] }
 0x111   :  { %vm694_vm14 = vcmp.gt.f32.partialorder %v684_v3, %v692_v46  ;;  %v737_v17 = vrot.slane %v735_v28, 1  ;;  %v740_v63 = vrot.slane %v735_v28, 2  ;;  %v744_v12 = vrot.slane %v735_v28, 3 }
 0x112   :  { %v695_v37 = vsel %vm694_vm14, %v684_v3, %v692_v46  ;;  %v697_v60 = vsel %vm694_vm14, 2, %v696_v22  ;;  %v748_v8 = vrot.slane %v735_v28, 4  ;;  %v752_v41 = vrot.slane %v735_v28, 5 }
 0x113   :  { %v699_v9 = vrot.slane %v695_v37, 7  ;;  %v703_v34 = vrot.slane %v697_v60, 7  ;;  %v756_v38 = vrot.slane %v735_v28, 6  ;;  %v760_v44 = vrot.slane %v735_v28, 7 }
 0x114   :  { %v822_v37 = vrot.slane %v814_v14, %v1782_v51 }
 0x115   :  { %vm701_vm15 = vcmp.gt.f32.partialorder %v684_v3, %v699_v9 }
 0x116   :  { %v702_v27 = vsel %vm701_vm15, %v684_v3, %v699_v9  ;;  %v704_v15 = vsel %vm701_vm15, 3, %v703_v34  ;;  %v829_v9 = vrot.slane %v815_v29, %v1782_v51  ;;  %v848_v34 = vrot.slane %v841_v54, %v1782_v51 }
 0x117   :  { %v706_v21 = vrot.slane %v702_v27, 7  ;;  %v710_v45 = vrot.slane %v704_v15, 7 }
 0x119   :  { %vm708_vm1 = vcmp.gt.f32.partialorder %v684_v3, %v706_v21 }
 0x11a   :  { %v709_v36 = vsel %vm708_vm1, %v684_v3, %v706_v21  ;;  %v711_v57 = vsel %vm708_vm1, 4, %v710_v45  ;;  %v833_v21 = vcombine.high %v822_v37, %v822_v37 }
 0x11b   :  { %v713_v11 = vrot.slane %v709_v36, 7  ;;  %v717_v2 = vrot.slane %v711_v57, 7  ;;  %v837_v57 = vcombine.high %v829_v9, %v829_v9 }
 0x11d   :  { %vm715_vm9 = vcmp.gt.f32.partialorder %v684_v3, %v713_v11 }
 0x11e   :  { %v716_v26 = vsel %vm715_vm9, %v684_v3, %v713_v11  ;;  %v718_v62 = vsel %vm715_vm9, 5, %v717_v2  ;;  %v859_v11 = vcombine.high %v848_v34, %v848_v34 }
 0x11f   :  { %v720_v33 = vrot.slane %v716_v26, 7  ;;  %v724_v7 = vrot.slane %v718_v62, 7  ;;  %v855_v62 = vrot.slane %v848_v34, %v1782_v51 }
 0x121   :  { %vm722_vm2 = vcmp.gt.f32.partialorder %v684_v3, %v720_v33 }
 0x122   :  { %v723_v1 = vsel %vm722_vm2, %v684_v3, %v720_v33  ;;  %v725_v52 = vsel %vm722_vm2, 6, %v724_v7  ;;  %v880_v33 = vld [vmem:[#allocation2 + $0x20] sm:$0xff] }
 0x123   :  { %v727_v24 = vrot.slane %v723_v1, 7  ;;  %v730_v0 = vrot.slane %v725_v52, 7  ;;  %v866_v52 = vrot.slane %v859_v11, %v1782_v51  ;;  %v917_v31 = vcombine.high %v880_v33, %v880_v33 }
 0x125   :  { %vm729_vm5 = vcmp.gt.f32.partialorder %v684_v3, %v727_v24 }
 0x126   :  { %v731_v56 = vsel %vm729_vm5, 7, %v730_v0  ;;  %v890_v0 = vrot.slane %v880_v33, %v1782_v51 }
 0x127   :  { %1272 = vst.msk [vmem:[%s1878_s4] sm:$0x80] %vm733_vm3, %v731_v56  ;;  %vm736_vm6 = vcmp.eq.s32.totalorder %v731_v56, 0  ;;  %vm739_vm11 = vcmp.eq.s32.totalorder %v731_v56, 1  ;;  %vm743_vm12 = vcmp.eq.s32.totalorder %v731_v56, 2  ;;  %vm747_vm14 = vcmp.eq.s32.totalorder %v731_v56, 3 }
 0x128   :  { %v738_v48 = vsel %vm736_vm6, %v737_v17, 0  ;;  %v741_v5 = vsel %vm739_vm11, %v740_v63, 0  ;;  %v745_v20 = vsel %vm743_vm12, %v744_v12, 0  ;;  %vm751_vm15 = vcmp.eq.s32.totalorder %v731_v56, 4 }
 0x129   :  { %v742_v53 = vadd.s32 %v741_v5, %v738_v48  ;;  %v749_v35 = vsel %vm747_vm14, %v748_v8, 0  ;;  %vm755_vm1 = vcmp.eq.s32.totalorder %v731_v56, 5  ;;  %v753_v42 = vsel %vm751_vm15, %v752_v41, 0 }
 0x12a   :  { %vm759_vm9 = vcmp.eq.s32.totalorder %v731_v56, 6  ;;  %v766_v58 = vcombine.high %v731_v56, %v731_v56  ;;  %v757_v61 = vsel %vm755_vm1, %v756_v38, 0  ;;  %vm763_vm2 = vcmp.eq.s32.totalorder %v731_v56, 7 }
 0x12b   :  { %v746_v18 = vadd.s32 %v745_v20, %v742_v53  ;;  %v761_v6 = vsel %vm759_vm9, %v760_v44, 0  ;;  %v764_v39 = vsel %vm763_vm2, %v735_v28, 0  ;;  %vm802_vm3 = vcmask 8192  }
 0x12c   :  { %v773_v10 = vrot.slane %v766_v58, %v1782_v51  ;;  %v870_v56 = vcombine.high %v855_v62, %v855_v62  ;;  %v874_v48 = vcombine.high %v866_v52, %v866_v52  ;;  %v891_v12 = vcombine.high %v890_v0, %v890_v0 }
 0x12d   :  { %v750_v23 = vadd.s32 %v749_v35, %v746_v18  ;;  %v898_v20 = vrot.slane %v890_v0, %v1782_v51  ;;  %v924_v35 = vrot.slane %v917_v31, %v1782_v51 }
 0x12e   :  { %v774_v43 = vcombine.high %v773_v10, %v773_v10  ;;  %v905_v18 = vrot.slane %v891_v12, %v1782_v51 }
 0x12f   :  { %v754_v47 = vadd.s32 %v753_v42, %v750_v23  ;;  %v909_v23 = vcombine.high %v898_v20, %v898_v20  ;;  %v935_v58 = vcombine.high %v924_v35, %v924_v35  ;;  %v931_v59 = vrot.slane %v924_v35, %v1782_v51 }
 0x130   :  { %v781_v16 = vrot.slane %v774_v43, %v1782_v51 }
 0x131   :  { %v758_v40 = vadd.s32 %v757_v61, %v754_v47  ;;  %v913_v47 = vcombine.high %v905_v18, %v905_v18  ;;  %v942_v10 = vrot.slane %v935_v58, %v1782_v51  ;;  %v946_v43 = vcombine.high %v931_v59, %v931_v59 }
 0x132   :  { %v1789_v46 = vcombine.high %v781_v16, %v781_v16 }
 0x133   :  { %v762_v30 = vadd.s32 %v761_v6, %v758_v40  ;;  %v956_v40 = vld [vmem:[#allocation2 + $0x18] sm:$0xff]  ;;  %v950_v14 = vcombine.high %v942_v10, %v942_v10 }
 0x135   :  { %v765_v25 = vadd.s32 %v764_v39, %v762_v30 }
 0x137   :  { %v783_v55 = vcombine.high %v765_v25, %v765_v25  ;;  %v966_v25 = vrot.slane %v956_v40, %v1782_v51 }
 0x139   :  { %v790_v4 = vrot.slane %v783_v55, %v1782_v51 }
 0x13b   :  { %v791_v3 = vcombine.high %v790_v4, %v790_v4 }
 0x13d   :  { %v798_v19 = vrot.slane %v791_v3, %v1782_v51  ;;  %v967_v3 = vcombine.high %v966_v25, %v966_v25 }
 0x13f   :  { %v799_v22 = vcombine.high %v798_v19, %v798_v19  ;;  %v993_v19 = vcombine.high %v956_v40, %v956_v40 }
 0x141   :  { %v800_v60 = vsel %vm582_vm7, %v1789_v46, %v799_v22  ;;  %v974_v22 = vrot.slane %v966_v25, %v1782_v51 }
 0x142   :  { %1273 = vst.msk [vmem:[%s1878_s4 + $0x6] sm:$0x1] %vm802_vm3, %v800_v60  ;;  %vm805_vm5 = vcmp.eq.s32.totalorder %v800_v60, 0  ;;  %vm807_vm6 = vcmp.eq.s32.totalorder %v800_v60, 1  ;;  %vm832_vm11 = vcmp.eq.s32.totalorder %v800_v60, 2  ;;  %vm836_vm12 = vcmp.eq.s32.totalorder %v800_v60, 3 }
 0x143   :  { %v806_v27 = vsel %vm805_vm5, %v804_v32, 0  ;;  %v830_v15 = vsel %vm807_vm6, %v829_v9, 0  ;;  %v834_v36 = vsel %vm832_vm11, %v833_v21, 0  ;;  %vm840_vm7 = vcmp.eq.s32.totalorder %v800_v60, 4 }
 0x144   :  { %v831_v45 = vadd.s32 %v830_v15, %v806_v27  ;;  %v838_v26 = vsel %vm836_vm12, %v837_v57, 0  ;;  %vm858_vm14 = vcmp.eq.s32.totalorder %v800_v60, 5  ;;  %v856_v1 = vsel %vm840_vm7, %v855_v62, 0  ;;  %v1032_v62 = vld [vmem:[#allocation2 + $0x10] sm:$0xff] }
 0x145   :  { %vm869_vm15 = vcmp.eq.s32.totalorder %v800_v60, 6  ;;  %v867_v28 = vsel %vm858_vm14, %v866_v52, 0  ;;  %vm873_vm1 = vcmp.eq.s32.totalorder %v800_v60, 7  ;;  %v981_v60 = vrot.slane %v967_v3, %v1782_v51 }
 0x146   :  { %v835_v2 = vadd.s32 %v834_v36, %v831_v45  ;;  %v871_v63 = vsel %vm869_vm15, %v870_v56, 0  ;;  %v875_v13 = vsel %vm873_vm1, %v874_v48, 0  ;;  %v1000_v9 = vrot.slane %v993_v19, %v1782_v51 }
 0x147   :  { %v985_v15 = vcombine.high %v974_v22, %v974_v22  ;;  %v989_v36 = vcombine.high %v981_v60, %v981_v60  ;;  %v1069_v12 = vcombine.high %v1032_v62, %v1032_v62 }
 0x148   :  { %v839_v7 = vadd.s32 %v838_v26, %v835_v2  ;;  %v1011_v57 = vcombine.high %v1000_v9, %v1000_v9  ;;  %v1007_v26 = vrot.slane %v1000_v9, %v1782_v51 }
 0x14a   :  { %v857_v24 = vadd.s32 %v856_v1, %v839_v7  ;;  %v1018_v1 = vrot.slane %v1011_v57, %v1782_v51 }
 0x14c   :  { %v868_v17 = vadd.s32 %v867_v28, %v857_v24  ;;  %v1042_v24 = vrot.slane %v1032_v62, %v1782_v51  ;;  %v1022_v28 = vcombine.high %v1007_v26, %v1007_v26 }
 0x14e   :  { %v872_v5 = vadd.s32 %v871_v63, %v868_v17  ;;  %v1026_v63 = vcombine.high %v1018_v1, %v1018_v1 }
 0x150   :  { %v876_v53 = vadd.s32 %v875_v13, %v872_v5  ;;  %v1043_v5 = vcombine.high %v1042_v24, %v1042_v24 }
 0x152   :  { %v877_v8 = vsel %vm493_vm10, %v1789_v46, %v876_v53  ;;  %v1050_v53 = vrot.slane %v1042_v24, %v1782_v51 }
 0x153   :  { %1274 = vst.msk [vmem:[%s1878_s4 + $0x5] sm:$0x1] %vm802_vm3, %v877_v8  ;;  %vm881_vm9 = vcmp.eq.s32.totalorder %v877_v8, 0  ;;  %vm883_vm2 = vcmp.eq.s32.totalorder %v877_v8, 1  ;;  %vm908_vm5 = vcmp.eq.s32.totalorder %v877_v8, 2  ;;  %vm912_vm6 = vcmp.eq.s32.totalorder %v877_v8, 3 }
 0x154   :  { %v882_v41 = vsel %vm881_vm9, %v880_v33, 0  ;;  %v906_v49 = vsel %vm883_vm2, %v905_v18, 0  ;;  %v910_v38 = vsel %vm908_vm5, %v909_v23, 0  ;;  %vm916_vm10 = vcmp.eq.s32.totalorder %v877_v8, 4 }
 0x155   :  { %v907_v42 = vadd.s32 %v906_v49, %v882_v41  ;;  %v914_v44 = vsel %vm912_vm6, %v913_v47, 0  ;;  %vm934_vm11 = vcmp.eq.s32.totalorder %v877_v8, 5  ;;  %v932_v30 = vsel %vm916_vm10, %v931_v59, 0  ;;  %v1108_v59 = vld [vmem:[#allocation2 + $0x8] sm:$0xff] }
 0x156   :  { %vm945_vm12 = vcmp.eq.s32.totalorder %v877_v8, 6  ;;  %v943_v32 = vsel %vm934_vm11, %v942_v10, 0  ;;  %vm949_vm7 = vcmp.eq.s32.totalorder %v877_v8, 7  ;;  %v1057_v8 = vrot.slane %v1043_v5, %v1782_v51 }
 0x157   :  { %v911_v61 = vadd.s32 %v910_v38, %v907_v42  ;;  %v947_v4 = vsel %vm945_vm12, %v946_v43, 0  ;;  %v951_v29 = vsel %vm949_vm7, %v950_v14, 0  ;;  %v1076_v18 = vrot.slane %v1069_v12, %v1782_v51 }
 0x158   :  { %v1061_v49 = vcombine.high %v1050_v53, %v1050_v53  ;;  %v1065_v38 = vcombine.high %v1057_v8, %v1057_v8  ;;  %v1145_v3 = vcombine.high %v1108_v59, %v1108_v59 }
 0x159   :  { %v915_v6 = vadd.s32 %v914_v44, %v911_v61  ;;  %v1087_v47 = vcombine.high %v1076_v18, %v1076_v18  ;;  %v1083_v44 = vrot.slane %v1076_v18, %v1782_v51 }
 0x15b   :  { %v933_v39 = vadd.s32 %v932_v30, %v915_v6  ;;  %v1094_v30 = vrot.slane %v1087_v47, %v1782_v51 }
 0x15d   :  { %v944_v55 = vadd.s32 %v943_v32, %v933_v39  ;;  %v1118_v39 = vrot.slane %v1108_v59, %v1782_v51  ;;  %v1098_v32 = vcombine.high %v1083_v44, %v1083_v44 }
 0x15f   :  { %v948_v16 = vadd.s32 %v947_v4, %v944_v55  ;;  %v1102_v4 = vcombine.high %v1094_v30, %v1094_v30 }
 0x161   :  { %v952_v54 = vadd.s32 %v951_v29, %v948_v16  ;;  %v1119_v16 = vcombine.high %v1118_v39, %v1118_v39 }
 0x163   :  { %v953_v37 = vsel %vm404_vm8, %v1789_v46, %v952_v54  ;;  %v1126_v54 = vrot.slane %v1118_v39, %v1782_v51 }
 0x164   :  { %1275 = vst.msk [vmem:[%s1878_s4 + $0x4] sm:$0x1] %vm802_vm3, %v953_v37  ;;  %vm957_vm14 = vcmp.eq.s32.totalorder %v953_v37, 0  ;;  %vm959_vm15 = vcmp.eq.s32.totalorder %v953_v37, 1  ;;  %vm984_vm1 = vcmp.eq.s32.totalorder %v953_v37, 2  ;;  %vm988_vm9 = vcmp.eq.s32.totalorder %v953_v37, 3 }
 0x165   :  { %v958_v34 = vsel %vm957_vm14, %v956_v40, 0  ;;  %v982_v27 = vsel %vm959_vm15, %v981_v60, 0  ;;  %v986_v45 = vsel %vm984_vm1, %v985_v15, 0  ;;  %vm992_vm8 = vcmp.eq.s32.totalorder %v953_v37, 4 }
 0x166   :  { %v983_v21 = vadd.s32 %v982_v27, %v958_v34  ;;  %v990_v2 = vsel %vm988_vm9, %v989_v36, 0  ;;  %vm1010_vm2 = vcmp.eq.s32.totalorder %v953_v37, 5  ;;  %v1008_v7 = vsel %vm992_vm8, %v1007_v26, 0  ;;  %v1184_v26 = vld [vmem:[#allocation2] sm:$0xff] }
 0x167   :  { %vm1021_vm5 = vcmp.eq.s32.totalorder %v953_v37, 6  ;;  %v1019_v0 = vsel %vm1010_vm2, %v1018_v1, 0  ;;  %vm1025_vm6 = vcmp.eq.s32.totalorder %v953_v37, 7  ;;  %v1133_v37 = vrot.slane %v1119_v16, %v1782_v51 }
 0x168   :  { %v987_v11 = vadd.s32 %v986_v45, %v983_v21  ;;  %v1023_v17 = vsel %vm1021_vm5, %v1022_v28, 0  ;;  %v1027_v31 = vsel %vm1025_vm6, %v1026_v63, 0  ;;  %v1152_v60 = vrot.slane %v1145_v3, %v1782_v51 }
 0x169   :  { %v1137_v27 = vcombine.high %v1126_v54, %v1126_v54  ;;  %v1141_v45 = vcombine.high %v1133_v37, %v1133_v37  ;;  %v1221_v5 = vcombine.high %v1184_v26, %v1184_v26 }
 0x16a   :  { %v991_v33 = vadd.s32 %v990_v2, %v987_v11  ;;  %v1163_v36 = vcombine.high %v1152_v60, %v1152_v60  ;;  %v1159_v2 = vrot.slane %v1152_v60, %v1782_v51 }
 0x16c   :  { %v1009_v52 = vadd.s32 %v1008_v7, %v991_v33  ;;  %v1170_v7 = vrot.slane %v1163_v36, %v1782_v51 }
 0x16e   :  { %v1020_v56 = vadd.s32 %v1019_v0, %v1009_v52  ;;  %v1194_v52 = vrot.slane %v1184_v26, %v1782_v51  ;;  %v1174_v0 = vcombine.high %v1159_v2, %v1159_v2 }
 0x170   :  { %v1024_v48 = vadd.s32 %v1023_v17, %v1020_v56  ;;  %v1178_v17 = vcombine.high %v1170_v7, %v1170_v7 }
 0x172   :  { %v1028_v13 = vadd.s32 %v1027_v31, %v1024_v48  ;;  %v1195_v48 = vcombine.high %v1194_v52, %v1194_v52 }
 0x174   :  { %v1029_v20 = vsel %vm315_vm13, %v1789_v46, %v1028_v13  ;;  %v1202_v13 = vrot.slane %v1194_v52, %v1782_v51 }
 0x175   :  { %1276 = vst.msk [vmem:[%s1878_s4 + $0x3] sm:$0x1] %vm802_vm3, %v1029_v20  ;;  %vm1033_vm10 = vcmp.eq.s32.totalorder %v1029_v20, 0  ;;  %vm1035_vm11 = vcmp.eq.s32.totalorder %v1029_v20, 1  ;;  %vm1060_vm12 = vcmp.eq.s32.totalorder %v1029_v20, 2  ;;  %vm1064_vm7 = vcmp.eq.s32.totalorder %v1029_v20, 3 }
 0x176   :  { %v1034_v35 = vsel %vm1033_vm10, %v1032_v62, 0  ;;  %v1058_v41 = vsel %vm1035_vm11, %v1057_v8, 0  ;;  %v1062_v42 = vsel %vm1060_vm12, %v1061_v49, 0  ;;  %vm1068_vm13 = vcmp.eq.s32.totalorder %v1029_v20, 4 }
 0x177   :  { %v1059_v23 = vadd.s32 %v1058_v41, %v1034_v35  ;;  %v1066_v61 = vsel %vm1064_vm7, %v1065_v38, 0  ;;  %vm1086_vm14 = vcmp.eq.s32.totalorder %v1029_v20, 5  ;;  %v1084_v6 = vsel %vm1068_vm13, %v1083_v44, 0 }
 0x178   :  { %vm1097_vm15 = vcmp.eq.s32.totalorder %v1029_v20, 6  ;;  %v1095_v25 = vsel %vm1086_vm14, %v1094_v30, 0  ;;  %vm1101_vm1 = vcmp.eq.s32.totalorder %v1029_v20, 7  ;;  %v1209_v20 = vrot.slane %v1195_v48, %v1782_v51 }
 0x179   :  { %v1063_v58 = vadd.s32 %v1062_v42, %v1059_v23  ;;  %v1099_v55 = vsel %vm1097_vm15, %v1098_v32, 0  ;;  %v1103_v19 = vsel %vm1101_vm1, %v1102_v4, 0  ;;  %v1228_v8 = vrot.slane %v1221_v5, %v1782_v51 }
 0x17a   :  { %v1213_v41 = vcombine.high %v1202_v13, %v1202_v13  ;;  %v1217_v42 = vcombine.high %v1209_v20, %v1209_v20 }
 0x17b   :  { %v1067_v40 = vadd.s32 %v1066_v61, %v1063_v58  ;;  %v1239_v38 = vcombine.high %v1228_v8, %v1228_v8  ;;  %v1235_v61 = vrot.slane %v1228_v8, %v1782_v51 }
 0x17d   :  { %v1085_v10 = vadd.s32 %v1084_v6, %v1067_v40  ;;  %v1246_v40 = vrot.slane %v1239_v38, %v1782_v51 }
 0x17f   :  { %v1096_v43 = vadd.s32 %v1095_v25, %v1085_v10  ;;  %v1250_v10 = vcombine.high %v1235_v61, %v1235_v61  ;;  %v1254_v32 = vcombine.high %v1246_v40, %v1246_v40 }
 0x181   :  { %v1100_v14 = vadd.s32 %v1099_v55, %v1096_v43 }
 0x183   :  { %v1104_v29 = vadd.s32 %v1103_v19, %v1100_v14 }
 0x185   :  { %v1105_v22 = vsel %vm226_vm0, %v1789_v46, %v1104_v29 }
 0x186   :  { %1277 = vst.msk [vmem:[%s1878_s4 + $0x2] sm:$0x1] %vm802_vm3, %v1105_v22  ;;  %vm1109_vm9 = vcmp.eq.s32.totalorder %v1105_v22, 0  ;;  %vm1111_vm8 = vcmp.eq.s32.totalorder %v1105_v22, 1  ;;  %vm1136_vm2 = vcmp.eq.s32.totalorder %v1105_v22, 2  ;;  %vm1140_vm5 = vcmp.eq.s32.totalorder %v1105_v22, 3 }
 0x187   :  { %v1110_v9 = vsel %vm1109_vm9, %v1108_v59, 0  ;;  %v1134_v34 = vsel %vm1111_vm8, %v1133_v37, 0  ;;  %v1138_v21 = vsel %vm1136_vm2, %v1137_v27, 0  ;;  %vm1144_vm0 = vcmp.eq.s32.totalorder %v1105_v22, 4 }
 0x188   :  { %v1135_v15 = vadd.s32 %v1134_v34, %v1110_v9  ;;  %v1142_v11 = vsel %vm1140_vm5, %v1141_v45, 0  ;;  %vm1162_vm6 = vcmp.eq.s32.totalorder %v1105_v22, 5  ;;  %v1160_v33 = vsel %vm1144_vm0, %v1159_v2, 0 }
 0x189   :  { %vm1173_vm10 = vcmp.eq.s32.totalorder %v1105_v22, 6  ;;  %v1171_v24 = vsel %vm1162_vm6, %v1170_v7, 0  ;;  %vm1177_vm11 = vcmp.eq.s32.totalorder %v1105_v22, 7  ;;  %vm1257_vm8 = vcmp.eq.s32.totalorder %v1466_v50, 0 }
 0x18a   :  { %v1139_v57 = vadd.s32 %v1138_v21, %v1135_v15  ;;  %v1175_v56 = vsel %vm1173_vm10, %v1174_v0, 0  ;;  %v1179_v12 = vsel %vm1177_vm11, %v1178_v17, 0 }
 0x18c   :  { %v1143_v62 = vadd.s32 %v1142_v11, %v1139_v57 }
 0x18e   :  { %v1161_v1 = vadd.s32 %v1160_v33, %v1143_v62 }
 0x190   :  { %v1172_v28 = vadd.s32 %v1171_v24, %v1161_v1 }
 0x192   :  { %v1176_v63 = vadd.s32 %v1175_v56, %v1172_v28 }
 0x194   :  { %v1180_v31 = vadd.s32 %v1179_v12, %v1176_v63 }
 0x196   :  { %v1181_v53 = vsel %vm137_vm4, %v1789_v46, %v1180_v31 }
 0x197   :  { %1278 = vst.msk [vmem:[%s1878_s4 + $0x1] sm:$0x1] %vm802_vm3, %v1181_v53  ;;  %vm1185_vm12 = vcmp.eq.s32.totalorder %v1181_v53, 0  ;;  %vm1187_vm7 = vcmp.eq.s32.totalorder %v1181_v53, 1  ;;  %vm1212_vm13 = vcmp.eq.s32.totalorder %v1181_v53, 2  ;;  %vm1216_vm14 = vcmp.eq.s32.totalorder %v1181_v53, 3 }
 0x198   :  { %v1186_v18 = vsel %vm1185_vm12, %v1184_v26, 0  ;;  %v1210_v35 = vsel %vm1187_vm7, %v1209_v20, 0  ;;  %v1214_v23 = vsel %vm1212_vm13, %v1213_v41, 0  ;;  %vm1220_vm4 = vcmp.eq.s32.totalorder %v1181_v53, 4 }
 0x199   :  { %v1211_v49 = vadd.s32 %v1210_v35, %v1186_v18  ;;  %v1218_v58 = vsel %vm1216_vm14, %v1217_v42, 0  ;;  %vm1238_vm15 = vcmp.eq.s32.totalorder %v1181_v53, 5  ;;  %v1236_v59 = vsel %vm1220_vm4, %v1235_v61, 0 }
 0x19a   :  { %vm1249_vm1 = vcmp.eq.s32.totalorder %v1181_v53, 6  ;;  %v1247_v30 = vsel %vm1238_vm15, %v1246_v40, 0  ;;  %vm1253_vm9 = vcmp.eq.s32.totalorder %v1181_v53, 7 }
 0x19b   :  { %v1215_v47 = vadd.s32 %v1214_v23, %v1211_v49  ;;  %v1251_v25 = vsel %vm1249_vm1, %v1250_v10, 0  ;;  %v1255_v55 = vsel %vm1253_vm9, %v1254_v32, 0 }
 0x19d   :  { %v1219_v44 = vadd.s32 %v1218_v58, %v1215_v47 }
 0x19f   :  { %v1237_v6 = vadd.s32 %v1236_v59, %v1219_v44 }
 0x1a1   :  { %v1248_v39 = vadd.s32 %v1247_v30, %v1237_v6 }
 0x1a3   :  { %v1252_v43 = vadd.s32 %v1251_v25, %v1248_v39 }
 0x1a5   :  { %v1256_v4 = vadd.s32 %v1255_v55, %v1252_v43 }
 0x1a7   :  { %v1258_v14 = vsel %vm1257_vm8, %v1789_v46, %v1256_v4 }
 0x1a8   :  { %1259 = vst.msk [vmem:[%s1878_s4] sm:$0x1] %vm802_vm3, %v1258_v14 }

</bundles_post_ra>
